<compile_context>
chip_gen: v6e
topology: v6e:2x2x1
jax: 0.10.0
libtpu: 0.0.40
codegen_flags: <defaults>
</compile_context>

<pallas_src>
import jax
import jax.numpy as jnp
from jax.experimental import pallas as pl
from jax.experimental.pallas import tpu as pltpu


# ----------------------------------------------------------------------------
# Pallas kernels
# ----------------------------------------------------------------------------
def _matmul_bias_relu_kernel(x_ref, w_ref, b_ref, o_ref):
    acc = jnp.dot(x_ref[...], w_ref[...], preferred_element_type=jnp.float32)
    o_ref[...] = jnp.maximum(acc + b_ref[...], 0.0).astype(o_ref.dtype)


def matmul_bias_relu(x, w, b_row, block_m=400):
    """relu(x:[M,K](bf16) @ w:[K,N](bf16) + b:[1,N](f32)) -> bf16, M-tiled grid."""
    M, K = x.shape
    N = w.shape[1]
    bm = M if M <= block_m else block_m          # full-M block when small
    grid_m = pl.cdiv(M, bm)
    bytes_accessed = int(x.size * x.dtype.itemsize + w.size * w.dtype.itemsize
                         + b_row.size * b_row.dtype.itemsize + M * N * 2)
    return pl.pallas_call(
        _matmul_bias_relu_kernel,
        out_shape=jax.ShapeDtypeStruct((M, N), jnp.bfloat16),
        grid=(grid_m,),
        in_specs=[
            pl.BlockSpec((bm, K), lambda i: (i, 0)),
            pl.BlockSpec((K, N), lambda i: (0, 0)),
            pl.BlockSpec((1, N), lambda i: (0, 0)),
        ],
        out_specs=pl.BlockSpec((bm, N), lambda i: (i, 0)),
        compiler_params=pltpu.CompilerParams(dimension_semantics=("parallel",)),
        cost_estimate=pl.CostEstimate(flops=2 * M * K * N, transcendentals=0,
                                      bytes_accessed=bytes_accessed),
    )(x, w, b_row)


def _fused_head_kernel(feat_ref, wfc_ref, bfc_ref,
                       wmu_ref, wsig_ref, weps_ref,
                       bmu_ref, bsig_ref, beps_ref, q_ref):
    # Fused [B,3136] @ [3136, 2H] (lane-dense N=256) + bias + ReLU: both stream
    # hiddens live in registers/VMEM, never written back to HBM.
    h = jnp.dot(feat_ref[...], wfc_ref[...], preferred_element_type=jnp.float32)
    h = jnp.maximum(h + bfc_ref[...], 0.0)                      # [B, 2H]
    # Noisy weights: w = mu + sigma * eps.  mu/sigma are block-sparse so the
    # single [2H, 1+A] matmul is exactly (global head | advantage head).
    wn = wmu_ref[...] + wsig_ref[...] * weps_ref[...]           # [2H, 1+A]
    bn = bmu_ref[...] + bsig_ref[...] * beps_ref[...]           # [1, 1+A]
    qa = jnp.dot(h, wn, preferred_element_type=jnp.float32) + bn  # [B, 1+A]
    # Dueling combine: q = global_value + action_values (plain add, as in ref).
    q_ref[...] = qa[:, 0:1] + qa[:, 1:]


def fused_fc_noisy_head(feat, w_fc, b_fc, w_mu, w_sigma, w_eps, b_mu, b_sigma, b_eps):
    B, F = feat.shape
    H2 = w_fc.shape[1]
    NA = w_mu.shape[1]              # 1 + num_actions
    A = NA - 1
    bytes_accessed = int(feat.size * feat.dtype.itemsize
                         + w_fc.size * w_fc.dtype.itemsize + b_fc.size * 4
                         + 3 * w_mu.size * 4 + 3 * b_mu.size * 4 + B * A * 4)
    return pl.pallas_call(
        _fused_head_kernel,
        out_shape=jax.ShapeDtypeStruct((B, A), jnp.float32),
        grid=(1,),
        in_specs=[
            pl.BlockSpec(feat.shape, lambda i: (0, 0)),
            pl.BlockSpec(w_fc.shape, lambda i: (0, 0)),
            pl.BlockSpec(b_fc.shape, lambda i: (0, 0)),
            pl.BlockSpec(w_mu.shape, lambda i: (0, 0)),
            pl.BlockSpec(w_sigma.shape, lambda i: (0, 0)),
            pl.BlockSpec(w_eps.shape, lambda i: (0, 0)),
            pl.BlockSpec(b_mu.shape, lambda i: (0, 0)),
            pl.BlockSpec(b_sigma.shape, lambda i: (0, 0)),
            pl.BlockSpec(b_eps.shape, lambda i: (0, 0)),
        ],
        out_specs=pl.BlockSpec((B, A), lambda i: (0, 0)),
        compiler_params=pltpu.CompilerParams(dimension_semantics=("arbitrary",)),
        cost_estimate=pl.CostEstimate(flops=2 * B * F * H2 + 2 * B * H2 * NA,
                                      transcendentals=0,
                                      bytes_accessed=bytes_accessed),
    )(feat, w_fc, b_fc, w_mu, w_sigma, w_eps, b_mu, b_sigma, b_eps)


# ----------------------------------------------------------------------------
# Glue: im2col patch extraction (pure data rearrangement, plain JAX)
# ----------------------------------------------------------------------------
def im2col(x_nhwc, kh, kw, stride, padding):
    x = jnp.pad(x_nhwc, ((0, 0), (padding, padding), (padding, padding), (0, 0)))
    N, H, W, C = x.shape
    ho = (H - kh) // stride + 1
    wo = (W - kw) // stride + 1
    pieces = []
    for i in range(kh):
        for j in range(kw):
            pieces.append(x[:, i:i + ho * stride:stride, j:j + wo * stride:stride, :])
    p = jnp.stack(pieces, axis=3)                       # [N, ho, wo, kh*kw, C]
    return p.reshape(N, ho * wo, kh * kw * C), ho, wo


def conv2d_relu(x_nhwc, w_mat, b_row, ksz, stride, padding):
    # TODO(synk): conv outputs are lane-sparse (Cout=32/64<128 -> masked stores);
    # a fully fused conv1->conv2 kernel would avoid that HBM round-trip.
    B = x_nhwc.shape[0]
    patches, ho, wo = im2col(x_nhwc, ksz, ksz, stride, padding)
    M, K = B * ho * wo, w_mat.shape[0]
    out = matmul_bias_relu(patches.reshape(M, K), w_mat, b_row)
    return out.reshape(B, ho, wo, w_mat.shape[1])


# ----------------------------------------------------------------------------
# Parameter init (deterministic, synthetic) + forward
# ----------------------------------------------------------------------------
def init_params(key, input_dim=4, output_dim=4, hidden_dim=128, sigma_init=0.017):
    ks = jax.random.split(key, 7)
    feat_h = feat_w = 7
    feat_c = 64
    feat_dim = feat_c * feat_h * feat_w

    def uniform(k, shape, bound):
        return jax.random.uniform(k, shape, jnp.float32, -bound, bound)

    def conv_init(k, cout, cin, ksz):
        bound = 1.0 / (cin * ksz * ksz) ** 0.5
        kw_, kb_ = jax.random.split(k)
        w_oihw = uniform(kw_, (cout, cin, ksz, ksz), bound)
        b = uniform(kb_, (cout,), bound)
        # Hoisted once: OIHW -> [KH*KW*Cin, Cout] im2col weight matrix, bf16.
        wm = jnp.transpose(w_oihw, (2, 3, 1, 0)).reshape(ksz * ksz * cin, cout)
        return wm.astype(jnp.bfloat16), b.reshape(1, cout)

    p = {}
    p["c1_wm"], p["c1_b"] = conv_init(ks[0], 32, input_dim, 8)
    p["c2_wm"], p["c2_b"] = conv_init(ks[1], 64, 32, 4)
    p["c3_wm"], p["c3_b"] = conv_init(ks[2], 64, 64, 3)

    # Hidden Linears of both streams, fused along N (lane-dense 2*hidden=256).
    # Rows are generated in torch (C,H,W)-flatten order, then permuted ONCE to
    # NHWC-flatten order so the forward needs no per-step feature transpose.
    bound = 1.0 / feat_dim ** 0.5
    kgw, kgb = jax.random.split(ks[3])
    kaw, kab = jax.random.split(ks[4])
    g_w = uniform(kgw, (feat_dim, hidden_dim), bound)
    g_b = uniform(kgb, (hidden_dim,), bound)
    a_w = uniform(kaw, (feat_dim, hidden_dim), bound)
    a_b = uniform(kab, (hidden_dim,), bound)
    hh, ww_, cc = jnp.meshgrid(jnp.arange(feat_h), jnp.arange(feat_w),
                               jnp.arange(feat_c), indexing="ij")
    perm = (cc * (feat_h * feat_w) + hh * feat_w + ww_).reshape(-1)  # NHWC->CHW rows
    p["fc_w"] = jnp.concatenate([g_w[perm], a_w[perm]], axis=1).astype(jnp.bfloat16)
    p["fc_b"] = jnp.concatenate([g_b, a_b]).reshape(1, 2 * hidden_dim)

    # Noisy heads as one block-sparse [2*hidden, 1+A] matrix:
    #   rows [:H], col 0      -> global-value head   (sigma=sigma_init there)
    #   rows [H:], cols 1..A  -> advantage head
    # sigma = 0 off-block so epsilon cannot leak across streams.
    nbound = 1.0 / hidden_dim ** 0.5
    kngw, kngb = jax.random.split(ks[5])
    knaw, knab = jax.random.split(ks[6])
    g_mu_w = uniform(kngw, (hidden_dim, 1), nbound)
    g_mu_b = uniform(kngb, (1,), nbound)
    a_mu_w = uniform(knaw, (hidden_dim, output_dim), nbound)
    a_mu_b = uniform(knab, (output_dim,), nbound)

    H2, NA = 2 * hidden_dim, 1 + output_dim
    w_mu = jnp.zeros((H2, NA), jnp.float32)
    w_mu = w_mu.at[:hidden_dim, 0:1].set(g_mu_w)
    w_mu = w_mu.at[hidden_dim:, 1:].set(a_mu_w)
    w_sigma = jnp.zeros((H2, NA), jnp.float32)
    w_sigma = w_sigma.at[:hidden_dim, 0:1].set(sigma_init)
    w_sigma = w_sigma.at[hidden_dim:, 1:].set(sigma_init)
    p["nz_w_mu"], p["nz_w_sigma"] = w_mu, w_sigma
    p["nz_b_mu"] = jnp.concatenate([g_mu_b, a_mu_b]).reshape(1, NA)
    p["nz_b_sigma"] = jnp.full((1, NA), sigma_init, jnp.float32)
    return p


def split_q_forward(params, state_nchw, noise_key):
    # Conv trunk: NCHW -> NHWC once, bf16 activations, Pallas matmul+bias+ReLU.
    x = jnp.transpose(state_nchw, (0, 2, 3, 1)).astype(jnp.bfloat16)
    x = conv2d_relu(x, params["c1_wm"], params["c1_b"], ksz=8, stride=4, padding=1)
    x = conv2d_relu(x, params["c2_wm"], params["c2_b"], ksz=4, stride=2, padding=0)
    x = conv2d_relu(x, params["c3_wm"], params["c3_b"], ksz=3, stride=1, padding=0)
    B = x.shape[0]
    feat = x.reshape(B, -1)            # NHWC flatten; FC rows permuted at init

    # NoisyLinear epsilon: independent standard normals, resampled per forward
    # (matches the reference's weight_epsilon.normal_()).  One RNG call for
    # both weight- and bias-epsilon, then split.
    # TODO(synk): could be generated in-kernel via pltpu.prng_seed/stateful_normal.
    H2, NA = params["nz_w_mu"].shape
    eps = jax.random.normal(noise_key, (H2 + 1, NA), jnp.float32)
    w_eps, b_eps = eps[:H2], eps[H2:]

    # Fused: 256-wide FC + ReLU + noisy-weight build + dueling combine, one call.
    return fused_fc_noisy_head(feat, params["fc_w"], params["fc_b"],
                               params["nz_w_mu"], params["nz_w_sigma"], w_eps,
                               params["nz_b_mu"], params["nz_b_sigma"], b_eps)


if __name__ == "__main__":
    key = jax.random.PRNGKey(0)
    k_param, k_input, k_noise = jax.random.split(key, 3)

    # Shapes implied by the module: flatten dim 64*7*7 requires 84x84 input.
    batch, input_dim, output_dim, hidden_dim = 2, 4, 4, 128
    state = jax.random.normal(k_input, (batch, input_dim, 84, 84), jnp.float32)

    params = init_params(k_param, input_dim, output_dim, hidden_dim)
    q_values = jax.jit(split_q_forward)(params, state, k_noise)
    q_values = jax.block_until_ready(q_values)

    assert q_values.shape == (batch, output_dim), q_values.shape
    assert bool(jnp.all(jnp.isfinite(q_values)))
    print("KERNEL_OK")
</pallas_src>

<mosaic_0001>
module attributes {stable_mosaic.version = 11 : i64} {
  func.func @_matmul_bias_relu_kernel(%arg0: i32, %arg1: memref<400x256xbf16, #tpu.memory_space<vmem>>, %arg2: memref<256x32xbf16, #tpu.memory_space<vmem>>, %arg3: memref<1x32xf32, #tpu.memory_space<vmem>>, %arg4: memref<400x32xbf16, #tpu.memory_space<vmem>>) attributes {dimension_semantics = [#tpu.dimension_semantics<parallel>], iteration_bounds = array<i64: 2>, scalar_prefetch = 0 : i64, scratch_operands = 0 : i64, tpu.core_type = #tpu.core_type<tc>, window_params = [{transform_indices = @transform_0, window_bounds = array<i64: 400, 256>}, {pipeline_mode = #tpu.pipeline_mode<synchronous>, transform_indices = @transform_1, window_bounds = array<i64: 256, 32>}, {pipeline_mode = #tpu.pipeline_mode<synchronous>, transform_indices = @transform_2, window_bounds = array<i64: 1, 32>}, {transform_indices = @transform_3, window_bounds = array<i64: 400, 32>}]} {
    %c0 = arith.constant 0 : index
    %c0_0 = arith.constant 0 : index
    %0 = vector.load %arg1[%c0, %c0_0] : memref<400x256xbf16, #tpu.memory_space<vmem>>, vector<400x256xbf16>
    %c0_1 = arith.constant 0 : index
    %c0_2 = arith.constant 0 : index
    %1 = vector.load %arg2[%c0_1, %c0_2] : memref<256x32xbf16, #tpu.memory_space<vmem>>, vector<256x32xbf16>
    %cst = arith.constant dense<0.000000e+00> : vector<400x32xf32>
    %2 = tpu.matmul %0, %1, %cst {dimension_numbers = #tpu.dot_dimension_numbers<[1], [0], [0], [1], [0, 0, 1, 1], [], []>} : vector<400x256xbf16>, vector<256x32xbf16>, vector<400x32xf32> -> vector<400x32xf32>
    %c0_3 = arith.constant 0 : index
    %c0_4 = arith.constant 0 : index
    %3 = vector.load %arg3[%c0_3, %c0_4] : memref<1x32xf32, #tpu.memory_space<vmem>>, vector<1x32xf32>
    %4 = vector.broadcast %3 : vector<1x32xf32> to vector<400x32xf32>
    %5 = arith.addf %2, %4 : vector<400x32xf32>
    %cst_5 = arith.constant 0.000000e+00 : f32
    %6 = vector.broadcast %cst_5 : f32 to vector<400x32xf32>
    %7 = arith.maximumf %5, %6 : vector<400x32xf32>
    %8 = arith.truncf %7 : vector<400x32xf32> to vector<400x32xbf16>
    %c0_6 = arith.constant 0 : index
    %c0_7 = arith.constant 0 : index
    %9 = vector.load %arg4[%c0_6, %c0_7] : memref<400x32xbf16, #tpu.memory_space<vmem>>, vector<400x32xbf16>
    tpu.vector_store %arg4[%c0_6, %c0_7], %8 {strides = array<i32>} : memref<400x32xbf16, #tpu.memory_space<vmem>>, vector<400x32xbf16>,
    return
  }
  func.func @transform_0(%arg0: i32) -> (i32, i32) {
    %c0_i32 = arith.constant 0 : i32
    %c0_i32_0 = arith.constant 0 : i32
    return %arg0, %c0_i32 : i32, i32
  }
  func.func @transform_1(%arg0: i32) -> (i32, i32) {
    %c0_i32 = arith.constant 0 : i32
    %c0_i32_0 = arith.constant 0 : i32
    %c0_i32_1 = arith.constant 0 : i32
    return %c0_i32, %c0_i32_0 : i32, i32
  }
  func.func @transform_2(%arg0: i32) -> (i32, i32) {
    %c0_i32 = arith.constant 0 : i32
    %c0_i32_0 = arith.constant 0 : i32
    %c0_i32_1 = arith.constant 0 : i32
    return %c0_i32, %c0_i32_0 : i32, i32
  }
  func.func @transform_3(%arg0: i32) -> (i32, i32) {
    %c0_i32 = arith.constant 0 : i32
    %c0_i32_0 = arith.constant 0 : i32
    return %arg0, %c0_i32 : i32, i32
  }
}

module attributes {stable_mosaic.version = 11 : i64} {
  func.func @_matmul_bias_relu_kernel(%arg0: i32, %arg1: memref<162x512xbf16, #tpu.memory_space<vmem>>, %arg2: memref<512x64xbf16, #tpu.memory_space<vmem>>, %arg3: memref<1x64xf32, #tpu.memory_space<vmem>>, %arg4: memref<162x64xbf16, #tpu.memory_space<vmem>>) attributes {dimension_semantics = [#tpu.dimension_semantics<parallel>], iteration_bounds = array<i64: 1>, scalar_prefetch = 0 : i64, scratch_operands = 0 : i64, tpu.core_type = #tpu.core_type<tc>, window_params = [{transform_indices = @transform_0, window_bounds = array<i64: 162, 512>}, {pipeline_mode = #tpu.pipeline_mode<synchronous>, transform_indices = @transform_1, window_bounds = array<i64: 512, 64>}, {pipeline_mode = #tpu.pipeline_mode<synchronous>, transform_indices = @transform_2, window_bounds = array<i64: 1, 64>}, {transform_indices = @transform_3, window_bounds = array<i64: 162, 64>}]} {
    %c0 = arith.constant 0 : index
    %c0_0 = arith.constant 0 : index
    %0 = vector.load %arg1[%c0, %c0_0] : memref<162x512xbf16, #tpu.memory_space<vmem>>, vector<162x512xbf16>
    %c0_1 = arith.constant 0 : index
    %c0_2 = arith.constant 0 : index
    %1 = vector.load %arg2[%c0_1, %c0_2] : memref<512x64xbf16, #tpu.memory_space<vmem>>, vector<512x64xbf16>
    %cst = arith.constant dense<0.000000e+00> : vector<162x64xf32>
    %2 = tpu.matmul %0, %1, %cst {dimension_numbers = #tpu.dot_dimension_numbers<[1], [0], [0], [1], [0, 0, 1, 1], [], []>} : vector<162x512xbf16>, vector<512x64xbf16>, vector<162x64xf32> -> vector<162x64xf32>
    %c0_3 = arith.constant 0 : index
    %c0_4 = arith.constant 0 : index
    %3 = vector.load %arg3[%c0_3, %c0_4] : memref<1x64xf32, #tpu.memory_space<vmem>>, vector<1x64xf32>
    %4 = vector.broadcast %3 : vector<1x64xf32> to vector<162x64xf32>
    %5 = arith.addf %2, %4 : vector<162x64xf32>
    %cst_5 = arith.constant 0.000000e+00 : f32
    %6 = vector.broadcast %cst_5 : f32 to vector<162x64xf32>
    %7 = arith.maximumf %5, %6 : vector<162x64xf32>
    %8 = arith.truncf %7 : vector<162x64xf32> to vector<162x64xbf16>
    %c0_6 = arith.constant 0 : index
    %c0_7 = arith.constant 0 : index
    %9 = vector.load %arg4[%c0_6, %c0_7] : memref<162x64xbf16, #tpu.memory_space<vmem>>, vector<162x64xbf16>
    tpu.vector_store %arg4[%c0_6, %c0_7], %8 {strides = array<i32>} : memref<162x64xbf16, #tpu.memory_space<vmem>>, vector<162x64xbf16>,
    return
  }
  func.func @transform_0(%arg0: i32) -> (i32, i32) {
    %c0_i32 = arith.constant 0 : i32
    %c0_i32_0 = arith.constant 0 : i32
    return %arg0, %c0_i32 : i32, i32
  }
  func.func @transform_1(%arg0: i32) -> (i32, i32) {
    %c0_i32 = arith.constant 0 : i32
    %c0_i32_0 = arith.constant 0 : i32
    %c0_i32_1 = arith.constant 0 : i32
    return %c0_i32, %c0_i32_0 : i32, i32
  }
  func.func @transform_2(%arg0: i32) -> (i32, i32) {
    %c0_i32 = arith.constant 0 : i32
    %c0_i32_0 = arith.constant 0 : i32
    %c0_i32_1 = arith.constant 0 : i32
    return %c0_i32, %c0_i32_0 : i32, i32
  }
  func.func @transform_3(%arg0: i32) -> (i32, i32) {
    %c0_i32 = arith.constant 0 : i32
    %c0_i32_0 = arith.constant 0 : i32
    return %arg0, %c0_i32 : i32, i32
  }
}

module attributes {stable_mosaic.version = 11 : i64} {
  func.func @_matmul_bias_relu_kernel(%arg0: i32, %arg1: memref<98x576xbf16, #tpu.memory_space<vmem>>, %arg2: memref<576x64xbf16, #tpu.memory_space<vmem>>, %arg3: memref<1x64xf32, #tpu.memory_space<vmem>>, %arg4: memref<98x64xbf16, #tpu.memory_space<vmem>>) attributes {dimension_semantics = [#tpu.dimension_semantics<parallel>], iteration_bounds = array<i64: 1>, scalar_prefetch = 0 : i64, scratch_operands = 0 : i64, tpu.core_type = #tpu.core_type<tc>, window_params = [{transform_indices = @transform_0, window_bounds = array<i64: 98, 576>}, {pipeline_mode = #tpu.pipeline_mode<synchronous>, transform_indices = @transform_1, window_bounds = array<i64: 576, 64>}, {pipeline_mode = #tpu.pipeline_mode<synchronous>, transform_indices = @transform_2, window_bounds = array<i64: 1, 64>}, {transform_indices = @transform_3, window_bounds = array<i64: 98, 64>}]} {
    %c0 = arith.constant 0 : index
    %c0_0 = arith.constant 0 : index
    %0 = vector.load %arg1[%c0, %c0_0] : memref<98x576xbf16, #tpu.memory_space<vmem>>, vector<98x576xbf16>
    %c0_1 = arith.constant 0 : index
    %c0_2 = arith.constant 0 : index
    %1 = vector.load %arg2[%c0_1, %c0_2] : memref<576x64xbf16, #tpu.memory_space<vmem>>, vector<576x64xbf16>
    %cst = arith.constant dense<0.000000e+00> : vector<98x64xf32>
    %2 = tpu.matmul %0, %1, %cst {dimension_numbers = #tpu.dot_dimension_numbers<[1], [0], [0], [1], [0, 0, 1, 1], [], []>} : vector<98x576xbf16>, vector<576x64xbf16>, vector<98x64xf32> -> vector<98x64xf32>
    %c0_3 = arith.constant 0 : index
    %c0_4 = arith.constant 0 : index
    %3 = vector.load %arg3[%c0_3, %c0_4] : memref<1x64xf32, #tpu.memory_space<vmem>>, vector<1x64xf32>
    %4 = vector.broadcast %3 : vector<1x64xf32> to vector<98x64xf32>
    %5 = arith.addf %2, %4 : vector<98x64xf32>
    %cst_5 = arith.constant 0.000000e+00 : f32
    %6 = vector.broadcast %cst_5 : f32 to vector<98x64xf32>
    %7 = arith.maximumf %5, %6 : vector<98x64xf32>
    %8 = arith.truncf %7 : vector<98x64xf32> to vector<98x64xbf16>
    %c0_6 = arith.constant 0 : index
    %c0_7 = arith.constant 0 : index
    %9 = vector.load %arg4[%c0_6, %c0_7] : memref<98x64xbf16, #tpu.memory_space<vmem>>, vector<98x64xbf16>
    tpu.vector_store %arg4[%c0_6, %c0_7], %8 {strides = array<i32>} : memref<98x64xbf16, #tpu.memory_space<vmem>>, vector<98x64xbf16>,
    return
  }
  func.func @transform_0(%arg0: i32) -> (i32, i32) {
    %c0_i32 = arith.constant 0 : i32
    %c0_i32_0 = arith.constant 0 : i32
    return %arg0, %c0_i32 : i32, i32
  }
  func.func @transform_1(%arg0: i32) -> (i32, i32) {
    %c0_i32 = arith.constant 0 : i32
    %c0_i32_0 = arith.constant 0 : i32
    %c0_i32_1 = arith.constant 0 : i32
    return %c0_i32, %c0_i32_0 : i32, i32
  }
  func.func @transform_2(%arg0: i32) -> (i32, i32) {
    %c0_i32 = arith.constant 0 : i32
    %c0_i32_0 = arith.constant 0 : i32
    %c0_i32_1 = arith.constant 0 : i32
    return %c0_i32, %c0_i32_0 : i32, i32
  }
  func.func @transform_3(%arg0: i32) -> (i32, i32) {
    %c0_i32 = arith.constant 0 : i32
    %c0_i32_0 = arith.constant 0 : i32
    return %arg0, %c0_i32 : i32, i32
  }
}

module attributes {stable_mosaic.version = 11 : i64} {
  func.func @_fused_head_kernel(%arg0: i32, %arg1: memref<2x3136xbf16, #tpu.memory_space<vmem>>, %arg2: memref<3136x256xbf16, #tpu.memory_space<vmem>>, %arg3: memref<1x256xf32, #tpu.memory_space<vmem>>, %arg4: memref<256x5xf32, #tpu.memory_space<vmem>>, %arg5: memref<256x5xf32, #tpu.memory_space<vmem>>, %arg6: memref<256x5xf32, #tpu.memory_space<vmem>>, %arg7: memref<1x5xf32, #tpu.memory_space<vmem>>, %arg8: memref<1x5xf32, #tpu.memory_space<vmem>>, %arg9: memref<1x5xf32, #tpu.memory_space<vmem>>, %arg10: memref<2x4xf32, #tpu.memory_space<vmem>>) attributes {dimension_semantics = [#tpu.dimension_semantics<arbitrary>], iteration_bounds = array<i64: 1>, scalar_prefetch = 0 : i64, scratch_operands = 0 : i64, tpu.core_type = #tpu.core_type<tc>, window_params = [{pipeline_mode = #tpu.pipeline_mode<synchronous>, transform_indices = @transform_0, window_bounds = array<i64: 2, 3136>}, {pipeline_mode = #tpu.pipeline_mode<synchronous>, transform_indices = @transform_1, window_bounds = array<i64: 3136, 256>}, {pipeline_mode = #tpu.pipeline_mode<synchronous>, transform_indices = @transform_2, window_bounds = array<i64: 1, 256>}, {pipeline_mode = #tpu.pipeline_mode<synchronous>, transform_indices = @transform_3, window_bounds = array<i64: 256, 5>}, {pipeline_mode = #tpu.pipeline_mode<synchronous>, transform_indices = @transform_4, window_bounds = array<i64: 256, 5>}, {pipeline_mode = #tpu.pipeline_mode<synchronous>, transform_indices = @transform_5, window_bounds = array<i64: 256, 5>}, {pipeline_mode = #tpu.pipeline_mode<synchronous>, transform_indices = @transform_6, window_bounds = array<i64: 1, 5>}, {pipeline_mode = #tpu.pipeline_mode<synchronous>, transform_indices = @transform_7, window_bounds = array<i64: 1, 5>}, {pipeline_mode = #tpu.pipeline_mode<synchronous>, transform_indices = @transform_8, window_bounds = array<i64: 1, 5>}, {pipeline_mode = #tpu.pipeline_mode<synchronous>, transform_indices = @transform_9, window_bounds = array<i64: 2, 4>}]} {
    %c0 = arith.constant 0 : index
    %c0_0 = arith.constant 0 : index
    %0 = vector.load %arg1[%c0, %c0_0] : memref<2x3136xbf16, #tpu.memory_space<vmem>>, vector<2x3136xbf16>
    %c0_1 = arith.constant 0 : index
    %c0_2 = arith.constant 0 : index
    %1 = vector.load %arg2[%c0_1, %c0_2] : memref<3136x256xbf16, #tpu.memory_space<vmem>>, vector<3136x256xbf16>
    %cst = arith.constant dense<0.000000e+00> : vector<2x256xf32>
    %2 = tpu.matmul %0, %1, %cst {dimension_numbers = #tpu.dot_dimension_numbers<[1], [0], [0], [1], [0, 0, 1, 1], [], []>} : vector<2x3136xbf16>, vector<3136x256xbf16>, vector<2x256xf32> -> vector<2x256xf32>
    %c0_3 = arith.constant 0 : index
    %c0_4 = arith.constant 0 : index
    %3 = vector.load %arg3[%c0_3, %c0_4] : memref<1x256xf32, #tpu.memory_space<vmem>>, vector<1x256xf32>
    %4 = vector.broadcast %3 : vector<1x256xf32> to vector<2x256xf32>
    %5 = arith.addf %2, %4 : vector<2x256xf32>
    %cst_5 = arith.constant 0.000000e+00 : f32
    %6 = vector.broadcast %cst_5 : f32 to vector<2x256xf32>
    %7 = arith.maximumf %5, %6 : vector<2x256xf32>
    %c0_6 = arith.constant 0 : index
    %c0_7 = arith.constant 0 : index
    %8 = vector.load %arg4[%c0_6, %c0_7] : memref<256x5xf32, #tpu.memory_space<vmem>>, vector<256x5xf32>
    %c0_8 = arith.constant 0 : index
    %c0_9 = arith.constant 0 : index
    %9 = vector.load %arg5[%c0_8, %c0_9] : memref<256x5xf32, #tpu.memory_space<vmem>>, vector<256x5xf32>
    %c0_10 = arith.constant 0 : index
    %c0_11 = arith.constant 0 : index
    %10 = vector.load %arg6[%c0_10, %c0_11] : memref<256x5xf32, #tpu.memory_space<vmem>>, vector<256x5xf32>
    %11 = arith.mulf %9, %10 : vector<256x5xf32>
    %12 = arith.addf %8, %11 : vector<256x5xf32>
    %c0_12 = arith.constant 0 : index
    %c0_13 = arith.constant 0 : index
    %13 = vector.load %arg7[%c0_12, %c0_13] : memref<1x5xf32, #tpu.memory_space<vmem>>, vector<1x5xf32>
    %c0_14 = arith.constant 0 : index
    %c0_15 = arith.constant 0 : index
    %14 = vector.load %arg8[%c0_14, %c0_15] : memref<1x5xf32, #tpu.memory_space<vmem>>, vector<1x5xf32>
    %c0_16 = arith.constant 0 : index
    %c0_17 = arith.constant 0 : index
    %15 = vector.load %arg9[%c0_16, %c0_17] : memref<1x5xf32, #tpu.memory_space<vmem>>, vector<1x5xf32>
    %16 = arith.mulf %14, %15 : vector<1x5xf32>
    %17 = arith.addf %13, %16 : vector<1x5xf32>
    %cst_18 = arith.constant dense<0.000000e+00> : vector<2x5xf32>
    %18 = tpu.matmul %7, %12, %cst_18 {dimension_numbers = #tpu.dot_dimension_numbers<[1], [0], [0], [1], [0, 0, 1, 1], [], []>} : vector<2x256xf32>, vector<256x5xf32>, vector<2x5xf32> -> vector<2x5xf32>
    %19 = vector.broadcast %17 : vector<1x5xf32> to vector<2x5xf32>
    %20 = arith.addf %18, %19 : vector<2x5xf32>
    %21 = vector.extract_strided_slice %20 {offsets = [0, 0], sizes = [2, 1], strides = [1, 1]} : vector<2x5xf32> to vector<2x1xf32>
    %22 = vector.extract_strided_slice %20 {offsets = [0, 1], sizes = [2, 4], strides = [1, 1]} : vector<2x5xf32> to vector<2x4xf32>
    %23 = vector.broadcast %21 : vector<2x1xf32> to vector<2x4xf32>
    %24 = arith.addf %23, %22 : vector<2x4xf32>
    %c0_19 = arith.constant 0 : index
    %c0_20 = arith.constant 0 : index
    %25 = vector.load %arg10[%c0_19, %c0_20] : memref<2x4xf32, #tpu.memory_space<vmem>>, vector<2x4xf32>
    tpu.vector_store %arg10[%c0_19, %c0_20], %24 {strides = array<i32>} : memref<2x4xf32, #tpu.memory_space<vmem>>, vector<2x4xf32>,
    return
  }
  func.func @transform_0(%arg0: i32) -> (i32, i32) {
    %c0_i32 = arith.constant 0 : i32
    %c0_i32_0 = arith.constant 0 : i32
    %c0_i32_1 = arith.constant 0 : i32
    return %c0_i32, %c0_i32_0 : i32, i32
  }
  func.func @transform_1(%arg0: i32) -> (i32, i32) {
    %c0_i32 = arith.constant 0 : i32
    %c0_i32_0 = arith.constant 0 : i32
    %c0_i32_1 = arith.constant 0 : i32
    return %c0_i32, %c0_i32_0 : i32, i32
  }
  func.func @transform_2(%arg0: i32) -> (i32, i32) {
    %c0_i32 = arith.constant 0 : i32
    %c0_i32_0 = arith.constant 0 : i32
    %c0_i32_1 = arith.constant 0 : i32
    return %c0_i32, %c0_i32_0 : i32, i32
  }
  func.func @transform_3(%arg0: i32) -> (i32, i32) {
    %c0_i32 = arith.constant 0 : i32
    %c0_i32_0 = arith.constant 0 : i32
    %c0_i32_1 = arith.constant 0 : i32
    return %c0_i32, %c0_i32_0 : i32, i32
  }
  func.func @transform_4(%arg0: i32) -> (i32, i32) {
    %c0_i32 = arith.constant 0 : i32
    %c0_i32_0 = arith.constant 0 : i32
    %c0_i32_1 = arith.constant 0 : i32
    return %c0_i32, %c0_i32_0 : i32, i32
  }
  func.func @transform_5(%arg0: i32) -> (i32, i32) {
    %c0_i32 = arith.constant 0 : i32
    %c0_i32_0 = arith.constant 0 : i32
    %c0_i32_1 = arith.constant 0 : i32
    return %c0_i32, %c0_i32_0 : i32, i32
  }
  func.func @transform_6(%arg0: i32) -> (i32, i32) {
    %c0_i32 = arith.constant 0 : i32
    %c0_i32_0 = arith.constant 0 : i32
    %c0_i32_1 = arith.constant 0 : i32
    return %c0_i32, %c0_i32_0 : i32, i32
  }
  func.func @transform_7(%arg0: i32) -> (i32, i32) {
    %c0_i32 = arith.constant 0 : i32
    %c0_i32_0 = arith.constant 0 : i32
    %c0_i32_1 = arith.constant 0 : i32
    return %c0_i32, %c0_i32_0 : i32, i32
  }
  func.func @transform_8(%arg0: i32) -> (i32, i32) {
    %c0_i32 = arith.constant 0 : i32
    %c0_i32_0 = arith.constant 0 : i32
    %c0_i32_1 = arith.constant 0 : i32
    return %c0_i32, %c0_i32_0 : i32, i32
  }
  func.func @transform_9(%arg0: i32) -> (i32, i32) {
    %c0_i32 = arith.constant 0 : i32
    %c0_i32_0 = arith.constant 0 : i32
    %c0_i32_1 = arith.constant 0 : i32
    return %c0_i32, %c0_i32_0 : i32, i32
  }
}

</mosaic_0001>

<bundles_post_ra>
// kernel: split_q_forward.4
= control target key start
LH: loop header
LB: loop body
LE: loop exit
PB: predicated region body
PF: predicated region fallthrough
CT: control target
= control target key end

     0   :  { %s1542_s12 = smov 0   ;;  %s1852_s0 = inlined_call_operand.vmem [shape: bf16[800,256], index: 0, kind: input, shape index: {}]   ;;  %s1853_s1 = inlined_call_operand.vmem [shape: bf16[256,32], index: 1, kind: input, shape index: {}]   ;;  %s1854_s2 = inlined_call_operand.vmem [shape: f32[1,32], index: 2, kind: input, shape index: {}]   ;;  %s1855_s3 = inlined_call_operand.vmem [shape: bf16[800,32], index: 3, kind: output, shape index: {}]  }
   0x1 LB: > { %s1203_s13 = sadd.s32 4294967295, %s1519_s12   ;;  %p1207_p0 = scmp.ge.s32.totalorder %s1519_s12, 1  ;;  %s1519_s12 = sphi %s1542_s12, %s13_s12  }
   0x2   : > { %p139_p1 = scmp.lt.s32.totalorder %s1519_s12, 3 }
   0x4   : > { %p140_p2 = pnand %p1207_p0, %p139_p1 }
   0x5   : > { %s164_s16 = smul.u32 (!%p140_p2), 50, %s1203_s13 }
   0x6   : > { %143 = sbr.rel (%p140_p2) target bundleno = 376 (0x178), region = 32 }
   0x7   : > { %p165_p3 = scmp.lt.s32.totalorder (!%p140_p2), %s164_s16, 99 }
   0xb   : > { %v1422_v0 = vld [vmem:[%s1853_s1 + $0x38] sm:$0xff]   ;;  %v1521_v1 = vmov 0   ;;  %v1423_v2 = vld [vmem:[%s1853_s1 + $0x30] sm:$0xff]   ;;  %v1424_v3 = vld [vmem:[%s1853_s1 + $0x28] sm:$0xff]   ;;  %s1857_s16 = smov (!%p165_p3, %s164_s16), 99  ;;  %vm1096_vm0 = vcmask 257024  }
   0xc   : > { %613 = vmatprep.subr.bf16.mxu0 %v1521_v1  ;;  %1381 = vmatprep.subr.bf16.mxu1 %v1521_v1  ;;  %v1425_v4 = vld [vmem:[%s1853_s1 + $0x20] sm:$0xff]   ;;  %s1330_s23 = sshll.u32 %s1857_s16, 3  ;;  %v1426_v5 = vld [vmem:[%s1853_s1 + $0x18] sm:$0xff]   ;;  %v1427_v7 = vld [vmem:[%s1853_s1 + $0x10] sm:$0xff]   ;;  %s1210_s29 = sshll.u32 %s1857_s16, 2 }
   0xd   : > { %614 = vmatpush1.bf16.msra.mxu0 %v1422_v0  ;;  %1397 = vmatpush1.bf16.msra.mxu1 %v1422_v0  ;;  %s1579_s28 = scalar_lea.vmem %s1852_s0, %s1330_s23  ;;  %v1428_v9 = vld [vmem:[%s1853_s1 + $0x8] sm:$0xff]   ;;  %v1429_v10 = vld [vmem:[%s1853_s1] sm:$0xff]   ;;  %v1430_v11 = vld [vmem:[%s1853_s1 + $0x78] sm:$0xff]  }
   0xe   : > { %615 = vmatprep.subr.bf16.mxu0 %v1521_v1  ;;  %1382 = vmatprep.subr.bf16.mxu1 %v1521_v1  ;;  %v1440_v6 = vld [vmem:[%s1579_s28 + $0x4] ss:$8 sps:$4 sm:$0xff]   ;;  %v1443_v8 = vld [vmem:[%s1579_s28 + $0xd4] ss:$8 sps:$4 sm:$0xff]   ;;  %v1438_v19 = vld [vmem:[%s1579_s28] ss:$8 sps:$4 sm:$0xff]  }
   0xf   : > { %645 = vmatprep.mubr.bf16.mxu0 %v1440_v6  ;;  %749 = vmatprep.mubr.bf16.mxu1 %v1443_v8  ;;  %v1431_v12 = vld [vmem:[%s1853_s1 + $0x70] sm:$0xff]   ;;  %v1432_v13 = vld [vmem:[%s1853_s1 + $0x68] sm:$0xff]   ;;  %v1433_v14 = vld [vmem:[%s1853_s1 + $0x60] sm:$0xff]  }
  0x10   : > { %v1434_v15 = vld [vmem:[%s1853_s1 + $0x58] sm:$0xff]   ;;  %v1435_v16 = vld [vmem:[%s1853_s1 + $0x50] sm:$0xff]   ;;  %v1436_v17 = vld [vmem:[%s1853_s1 + $0x48] sm:$0xff]  }
  0x11   : > { %616 = vmatpush1.bf16.msra.mxu0 %v1423_v2  ;;  %1398 = vmatpush1.bf16.msra.mxu1 %v1423_v2  ;;  %v1437_v18 = vld [vmem:[%s1853_s1 + $0x40] sm:$0xff]   ;;  %v1441_v20 = vld [vmem:[%s1579_s28 + $0xd0] ss:$8 sps:$4 sm:$0xff]   ;;  %v1444_v21 = vld [vmem:[%s1579_s28 + $0x14] ss:$8 sps:$4 sm:$0xff]  }
  0x12   : > { %617 = vmatprep.subr.bf16.mxu0 %v1521_v1  ;;  %1383 = vmatprep.subr.bf16.mxu1 %v1521_v1  ;;  %v1447_v22 = vld [vmem:[%s1579_s28 + $0xe4] ss:$8 sps:$4 sm:$0xff]   ;;  %v1446_v23 = vld [vmem:[%s1579_s28 + $0x10] ss:$8 sps:$4 sm:$0xff]   ;;  %v1449_v24 = vld [vmem:[%s1579_s28 + $0xe0] ss:$8 sps:$4 sm:$0xff]  }
  0x13   : > { %v1450_v25 = vld [vmem:[%s1579_s28 + $0x24] ss:$8 sps:$4 sm:$0xff]   ;;  %v1453_v26 = vld [vmem:[%s1579_s28 + $0xf4] ss:$8 sps:$4 sm:$0xff]   ;;  %v1452_v27 = vld [vmem:[%s1579_s28 + $0x20] ss:$8 sps:$4 sm:$0xff]  }
  0x14   : > { %v1455_v28 = vld [vmem:[%s1579_s28 + $0xf0] ss:$8 sps:$4 sm:$0xff]   ;;  %v1456_v29 = vld [vmem:[%s1579_s28 + $0x34] ss:$8 sps:$4 sm:$0xff]   ;;  %v1459_v30 = vld [vmem:[%s1579_s28 + $0x104] ss:$8 sps:$4 sm:$0xff]  }
  0x15   : > { %618 = vmatpush1.bf16.msra.mxu0 %v1424_v3  ;;  %1399 = vmatpush1.bf16.msra.mxu1 %v1424_v3  ;;  %v1458_v31 = vld [vmem:[%s1579_s28 + $0x30] ss:$8 sps:$4 sm:$0xff]   ;;  %v1461_v32 = vld [vmem:[%s1579_s28 + $0x100] ss:$8 sps:$4 sm:$0xff]   ;;  %v1462_v33 = vld [vmem:[%s1579_s28 + $0x44] ss:$8 sps:$4 sm:$0xff]  }
  0x16   : > { %619 = vmatprep.subr.bf16.mxu0 %v1521_v1  ;;  %1384 = vmatprep.subr.bf16.mxu1 %v1521_v1  ;;  %v1465_v34 = vld [vmem:[%s1579_s28 + $0x114] ss:$8 sps:$4 sm:$0xff]   ;;  %v1464_v35 = vld [vmem:[%s1579_s28 + $0x40] ss:$8 sps:$4 sm:$0xff]   ;;  %v1467_v36 = vld [vmem:[%s1579_s28 + $0x110] ss:$8 sps:$4 sm:$0xff]  }
  0x17   : > { %v1468_v37 = vld [vmem:[%s1579_s28 + $0x54] ss:$8 sps:$4 sm:$0xff]   ;;  %v1471_v38 = vld [vmem:[%s1579_s28 + $0x124] ss:$8 sps:$4 sm:$0xff]   ;;  %v1470_v39 = vld [vmem:[%s1579_s28 + $0x50] ss:$8 sps:$4 sm:$0xff]  }
  0x18   : > { %v1473_v40 = vld [vmem:[%s1579_s28 + $0x120] ss:$8 sps:$4 sm:$0xff]   ;;  %v1474_v41 = vld [vmem:[%s1579_s28 + $0x64] ss:$8 sps:$4 sm:$0xff]   ;;  %v1477_v42 = vld [vmem:[%s1579_s28 + $0x134] ss:$8 sps:$4 sm:$0xff]  }
  0x19   : > { %620 = vmatpush1.bf16.msra.mxu0 %v1425_v4  ;;  %1400 = vmatpush1.bf16.msra.mxu1 %v1425_v4  ;;  %v1476_v43 = vld [vmem:[%s1579_s28 + $0x60] ss:$8 sps:$4 sm:$0xff]   ;;  %v1479_v44 = vld [vmem:[%s1579_s28 + $0x130] ss:$8 sps:$4 sm:$0xff]   ;;  %v1480_v45 = vld [vmem:[%s1579_s28 + $0x74] ss:$8 sps:$4 sm:$0xff]  }
  0x1a   : > { %621 = vmatprep.subr.bf16.mxu0 %v1521_v1  ;;  %1385 = vmatprep.subr.bf16.mxu1 %v1521_v1  ;;  %v1483_v46 = vld [vmem:[%s1579_s28 + $0x144] ss:$8 sps:$4 sm:$0xff]   ;;  %v1482_v47 = vld [vmem:[%s1579_s28 + $0x70] ss:$8 sps:$4 sm:$0xff]   ;;  %v1485_v48 = vld [vmem:[%s1579_s28 + $0x140] ss:$8 sps:$4 sm:$0xff]  }
  0x1b   : > { %v1486_v49 = vld [vmem:[%s1579_s28 + $0x84] ss:$8 sps:$4 sm:$0xff]   ;;  %v1489_v50 = vld [vmem:[%s1579_s28 + $0x154] ss:$8 sps:$4 sm:$0xff]   ;;  %v1488_v51 = vld [vmem:[%s1579_s28 + $0x80] ss:$8 sps:$4 sm:$0xff]  }
  0x1c   : > { %v1491_v52 = vld [vmem:[%s1579_s28 + $0x150] ss:$8 sps:$4 sm:$0xff]   ;;  %v1492_v53 = vld [vmem:[%s1579_s28 + $0x94] ss:$8 sps:$4 sm:$0xff]   ;;  %v1495_v54 = vld [vmem:[%s1579_s28 + $0x164] ss:$8 sps:$4 sm:$0xff]  }
  0x1d   : > { %622 = vmatpush1.bf16.msra.mxu0 %v1426_v5  ;;  %1401 = vmatpush1.bf16.msra.mxu1 %v1426_v5  ;;  %v1494_v55 = vld [vmem:[%s1579_s28 + $0x90] ss:$8 sps:$4 sm:$0xff]   ;;  %v1497_v56 = vld [vmem:[%s1579_s28 + $0x160] ss:$8 sps:$4 sm:$0xff]   ;;  %v1498_v57 = vld [vmem:[%s1579_s28 + $0xa4] ss:$8 sps:$4 sm:$0xff]  }
  0x1e   : > { %623 = vmatprep.subr.bf16.mxu0 %v1521_v1  ;;  %1386 = vmatprep.subr.bf16.mxu1 %v1521_v1  ;;  %v1501_v58 = vld [vmem:[%s1579_s28 + $0x174] ss:$8 sps:$4 sm:$0xff]   ;;  %v1500_v59 = vld [vmem:[%s1579_s28 + $0xa0] ss:$8 sps:$4 sm:$0xff]   ;;  %v1503_v60 = vld [vmem:[%s1579_s28 + $0x170] ss:$8 sps:$4 sm:$0xff]  }
  0x1f   : > { %v1504_v61 = vld [vmem:[%s1579_s28 + $0xb4] ss:$8 sps:$4 sm:$0xff]   ;;  %v1507_v62 = vld [vmem:[%s1579_s28 + $0x184] ss:$8 sps:$4 sm:$0xff]   ;;  %v1506_v63 = vld [vmem:[%s1579_s28 + $0xb0] ss:$8 sps:$4 sm:$0xff]  }
  0x20   : > { %v1509_v0 = vld [vmem:[%s1579_s28 + $0x180] ss:$8 sps:$4 sm:$0xff]  }
  0x21   : > { %624 = vmatpush1.bf16.msra.mxu0 %v1427_v7  ;;  %1402 = vmatpush1.bf16.msra.mxu1 %v1427_v7  ;;  %v1512_v2 = vld [vmem:[%s1579_s28 + $0xc0] ss:$8 sps:$4 sm:$0xff]  }
  0x22   : > { %625 = vmatprep.subr.bf16.mxu0 %v1521_v1  ;;  %1387 = vmatprep.subr.bf16.mxu1 %v1521_v1  ;;  %v1691_v3 = vld [vmem:[%s1854_s2] ss:$0 sm:$0xff] }
  0x25   : > { %626 = vmatpush1.bf16.msra.mxu0 %v1428_v9  ;;  %1403 = vmatpush1.bf16.msra.mxu1 %v1428_v9 }
  0x26   : > { %627 = vmatprep.subr.bf16.mxu0 %v1521_v1  ;;  %1388 = vmatprep.subr.bf16.mxu1 %v1521_v1 }
  0x29   : > { %628 = vmatpush1.bf16.msra.mxu0 %v1429_v10  ;;  %1404 = vmatpush1.bf16.msra.mxu1 %v1429_v10 }
  0x2a   : > { %629 = vmatprep.subr.bf16.mxu0 %v1521_v1  ;;  %1389 = vmatprep.subr.bf16.mxu1 %v1521_v1 }
  0x2d   : > { %630 = vmatpush2.bf16.msra.mxu0 %v1430_v11  ;;  %1405 = vmatpush2.bf16.msra.mxu1 %v1430_v11 }
  0x2e   : > { %631 = vmatprep.subr.bf16.mxu0 %v1521_v1  ;;  %1390 = vmatprep.subr.bf16.mxu1 %v1521_v1 }
  0x31   : > { %632 = vmatpush2.bf16.msra.mxu0 %v1431_v12  ;;  %1406 = vmatpush2.bf16.msra.mxu1 %v1431_v12 }
  0x32   : > { %633 = vmatprep.subr.bf16.mxu0 %v1521_v1  ;;  %1391 = vmatprep.subr.bf16.mxu1 %v1521_v1 }
  0x35   : > { %634 = vmatpush2.bf16.msra.mxu0 %v1432_v13  ;;  %1407 = vmatpush2.bf16.msra.mxu1 %v1432_v13 }
  0x36   : > { %635 = vmatprep.subr.bf16.mxu0 %v1521_v1  ;;  %1392 = vmatprep.subr.bf16.mxu1 %v1521_v1 }
  0x39   : > { %636 = vmatpush2.bf16.msra.mxu0 %v1433_v14  ;;  %1408 = vmatpush2.bf16.msra.mxu1 %v1433_v14 }
  0x3a   : > { %637 = vmatprep.subr.bf16.mxu0 %v1521_v1  ;;  %1393 = vmatprep.subr.bf16.mxu1 %v1521_v1 }
  0x3d   : > { %638 = vmatpush2.bf16.msra.mxu0 %v1434_v15  ;;  %1409 = vmatpush2.bf16.msra.mxu1 %v1434_v15 }
  0x3e   : > { %639 = vmatprep.subr.bf16.mxu0 %v1521_v1  ;;  %1394 = vmatprep.subr.bf16.mxu1 %v1521_v1 }
  0x41   : > { %640 = vmatpush2.bf16.msra.mxu0 %v1435_v16  ;;  %1410 = vmatpush2.bf16.msra.mxu1 %v1435_v16 }
  0x42   : > { %641 = vmatprep.subr.bf16.mxu0 %v1521_v1  ;;  %1395 = vmatprep.subr.bf16.mxu1 %v1521_v1 }
  0x45   : > { %642 = vmatpush2.bf16.msra.mxu0 %v1436_v17  ;;  %1411 = vmatpush2.bf16.msra.mxu1 %v1436_v17 }
  0x46   : > { %643 = vmatprep.subr.bf16.mxu0 %v1521_v1  ;;  %1396 = vmatprep.subr.bf16.mxu1 %v1521_v1  ;;  %v1510_v1 = vld [vmem:[%s1579_s28 + $0xc4] ss:$8 sps:$4 sm:$0xff]   ;;  %s1699_s28 = scalar_lea.vmem %s1855_s3, %s1210_s29 }
  0x49   : > { %644 = vmatpush2.bf16.msra.mxu0 %v1437_v18  ;;  %1412 = vmatpush2.bf16.msra.mxu1 %v1437_v18 }
  0x4c   : > { %646 = vmatmul.mubr.bf16.vlgmr.msra.gmra.mxu0 %v1438_v19  ;;  %750 = vmatmul.mubr.bf16.vlgmr.msra.gmra.mxu1 %v1441_v20 }
  0x4d   : > { %653 = vmatprep.mubr.bf16.mxu0 %v1444_v21  ;;  %757 = vmatprep.mubr.bf16.mxu1 %v1447_v22 }
  0x54   : > { %654 = vmatmul.mubr.bf16.gmra.mxu0 %v1446_v23  ;;  %758 = vmatmul.mubr.bf16.gmra.mxu1 %v1449_v24 }
  0x55   : > { %661 = vmatprep.mubr.bf16.mxu0 %v1450_v25  ;;  %765 = vmatprep.mubr.bf16.mxu1 %v1453_v26 }
  0x5c   : > { %662 = vmatmul.mubr.bf16.gmra.mxu0 %v1452_v27  ;;  %766 = vmatmul.mubr.bf16.gmra.mxu1 %v1455_v28 }
  0x5d   : > { %669 = vmatprep.mubr.bf16.mxu0 %v1456_v29  ;;  %773 = vmatprep.mubr.bf16.mxu1 %v1459_v30 }
  0x64   : > { %670 = vmatmul.mubr.bf16.gmra.mxu0 %v1458_v31  ;;  %774 = vmatmul.mubr.bf16.gmra.mxu1 %v1461_v32 }
  0x65   : > { %677 = vmatprep.mubr.bf16.mxu0 %v1462_v33  ;;  %781 = vmatprep.mubr.bf16.mxu1 %v1465_v34 }
  0x6c   : > { %678 = vmatmul.mubr.bf16.gmra.mxu0 %v1464_v35  ;;  %782 = vmatmul.mubr.bf16.gmra.mxu1 %v1467_v36 }
  0x6d   : > { %685 = vmatprep.mubr.bf16.mxu0 %v1468_v37  ;;  %789 = vmatprep.mubr.bf16.mxu1 %v1471_v38 }
  0x74   : > { %686 = vmatmul.mubr.bf16.gmra.mxu0 %v1470_v39  ;;  %790 = vmatmul.mubr.bf16.gmra.mxu1 %v1473_v40 }
  0x75   : > { %693 = vmatprep.mubr.bf16.mxu0 %v1474_v41  ;;  %797 = vmatprep.mubr.bf16.mxu1 %v1477_v42 }
  0x7c   : > { %694 = vmatmul.mubr.bf16.gmra.mxu0 %v1476_v43  ;;  %798 = vmatmul.mubr.bf16.gmra.mxu1 %v1479_v44 }
  0x7d   : > { %701 = vmatprep.mubr.bf16.mxu0 %v1480_v45  ;;  %805 = vmatprep.mubr.bf16.mxu1 %v1483_v46 }
  0x84   : > { %702 = vmatmul.mubr.bf16.gmra.mxu0 %v1482_v47  ;;  %806 = vmatmul.mubr.bf16.gmra.mxu1 %v1485_v48 }
  0x85   : > { %709 = vmatprep.mubr.bf16.mxu0 %v1486_v49  ;;  %813 = vmatprep.mubr.bf16.mxu1 %v1489_v50 }
  0x8c   : > { %710 = vmatmul.mubr.bf16.gmra.mxu0 %v1488_v51  ;;  %814 = vmatmul.mubr.bf16.gmra.mxu1 %v1491_v52 }
  0x8d   : > { %717 = vmatprep.mubr.bf16.mxu0 %v1492_v53  ;;  %821 = vmatprep.mubr.bf16.mxu1 %v1495_v54 }
  0x94   : > { %718 = vmatmul.mubr.bf16.gmra.mxu0 %v1494_v55  ;;  %822 = vmatmul.mubr.bf16.gmra.mxu1 %v1497_v56 }
  0x95   : > { %725 = vmatprep.mubr.bf16.mxu0 %v1498_v57  ;;  %829 = vmatprep.mubr.bf16.mxu1 %v1501_v58 }
  0x9c   : > { %726 = vmatmul.mubr.bf16.gmra.mxu0 %v1500_v59  ;;  %830 = vmatmul.mubr.bf16.gmra.mxu1 %v1503_v60 }
  0x9d   : > { %733 = vmatprep.mubr.bf16.mxu0 %v1504_v61  ;;  %837 = vmatprep.mubr.bf16.mxu1 %v1507_v62 }
  0xa4   : > { %734 = vmatmul.mubr.bf16.gmra.mxu0 %v1506_v63  ;;  %838 = vmatmul.mubr.bf16.gmra.mxu1 %v1509_v0 }
  0xa5   : > { %741 = vmatprep.mubr.bf16.mxu0 %v1510_v1 }
  0xac   : > { %742 = vmatmul.mubr.bf16.gmra.mxu0 %v1512_v2 }
 0x10c   : > { %v647_v4 = vpop.f32.mrf.mxu0  ;;  %v751_v5 = vpop.f32.mrf.mxu1 }
 0x10d   : > { %v648_v6 = vadd.f32 %v1691_v3, %v647_v4  ;;  %v752_v7 = vadd.f32 %v1691_v3, %v751_v5 }
 0x10e   : > { %v649_v8 = vpop.f32.mrf.mxu0  ;;  %v753_v9 = vpop.f32.mrf.mxu1 }
 0x10f   : > { %v846_v10 = vmax.f32 %v648_v6, 0.0  ;;  %v872_v11 = vmax.f32 %v752_v7, 0.0 }
 0x110   : > { %v650_v12 = vpop.f32.mrf.mxu0  ;;  %v754_v13 = vpop.f32.mrf.mxu1 }
 0x111   : > { %v1331_v14 = vpack.c.bf16 %v846_v10, %v846_v10  ;;  %v1357_v15 = vpack.c.bf16 %v872_v11, %v872_v11  ;;  %v651_v16 = vadd.f32 %v1691_v3, %v650_v12  ;;  %v755_v17 = vadd.f32 %v1691_v3, %v754_v13 }
 0x112   : > { %v652_v18 = vpop.f32.mrf.mxu0  ;;  %v756_v19 = vpop.f32.mrf.mxu1 }
 0x113   : > { %1097 = vst.msk [vmem:[%s1699_s28] sm:$0xf] %vm1096_vm0, %v1331_v14  ;;  %1123 = vst.msk [vmem:[%s1699_s28 + $0x68] sm:$0xf] %vm1096_vm0, %v1357_v15  ;;  %v847_v20 = vmax.f32 %v651_v16, 0.0  ;;  %v873_v21 = vmax.f32 %v755_v17, 0.0 }
 0x114   : > { %v655_v22 = vpop.f32.mrf.mxu0  ;;  %v759_v23 = vpop.f32.mrf.mxu1 }
 0x115   : > { %v1332_v24 = vpack.c.bf16 %v847_v20, %v847_v20  ;;  %v1358_v25 = vpack.c.bf16 %v873_v21, %v873_v21  ;;  %v656_v26 = vadd.f32 %v1691_v3, %v655_v22  ;;  %v760_v27 = vadd.f32 %v1691_v3, %v759_v23 }
 0x116   : > { %v657_v28 = vpop.f32.mrf.mxu0  ;;  %v761_v29 = vpop.f32.mrf.mxu1 }
 0x117   : > { %1098 = vst.msk [vmem:[%s1699_s28 + $0x4] sm:$0xf] %vm1096_vm0, %v1332_v24  ;;  %1124 = vst.msk [vmem:[%s1699_s28 + $0x6c] sm:$0xf] %vm1096_vm0, %v1358_v25  ;;  %v848_v30 = vmax.f32 %v656_v26, 0.0  ;;  %v874_v31 = vmax.f32 %v760_v27, 0.0 }
 0x118   : > { %v658_v32 = vpop.f32.mrf.mxu0  ;;  %v762_v33 = vpop.f32.mrf.mxu1 }
 0x119   : > { %v1333_v34 = vpack.c.bf16 %v848_v30, %v848_v30  ;;  %v1359_v35 = vpack.c.bf16 %v874_v31, %v874_v31  ;;  %v659_v36 = vadd.f32 %v1691_v3, %v658_v32  ;;  %v763_v37 = vadd.f32 %v1691_v3, %v762_v33 }
 0x11a   : > { %v660_v38 = vpop.f32.mrf.mxu0  ;;  %v764_v39 = vpop.f32.mrf.mxu1 }
 0x11b   : > { %1099 = vst.msk [vmem:[%s1699_s28 + $0x8] sm:$0xf] %vm1096_vm0, %v1333_v34  ;;  %1125 = vst.msk [vmem:[%s1699_s28 + $0x70] sm:$0xf] %vm1096_vm0, %v1359_v35  ;;  %v849_v40 = vmax.f32 %v659_v36, 0.0  ;;  %v875_v41 = vmax.f32 %v763_v37, 0.0 }
 0x11c   : > { %v663_v42 = vpop.f32.mrf.mxu0  ;;  %v767_v43 = vpop.f32.mrf.mxu1 }
 0x11d   : > { %v1334_v44 = vpack.c.bf16 %v849_v40, %v849_v40  ;;  %v1360_v45 = vpack.c.bf16 %v875_v41, %v875_v41  ;;  %v664_v46 = vadd.f32 %v1691_v3, %v663_v42  ;;  %v768_v47 = vadd.f32 %v1691_v3, %v767_v43 }
 0x11e   : > { %v665_v48 = vpop.f32.mrf.mxu0  ;;  %v769_v49 = vpop.f32.mrf.mxu1 }
 0x11f   : > { %1100 = vst.msk [vmem:[%s1699_s28 + $0xc] sm:$0xf] %vm1096_vm0, %v1334_v44  ;;  %1126 = vst.msk [vmem:[%s1699_s28 + $0x74] sm:$0xf] %vm1096_vm0, %v1360_v45  ;;  %v850_v50 = vmax.f32 %v664_v46, 0.0  ;;  %v876_v51 = vmax.f32 %v768_v47, 0.0 }
 0x120   : > { %v666_v52 = vpop.f32.mrf.mxu0  ;;  %v770_v53 = vpop.f32.mrf.mxu1 }
 0x121   : > { %v1335_v54 = vpack.c.bf16 %v850_v50, %v850_v50  ;;  %v1361_v55 = vpack.c.bf16 %v876_v51, %v876_v51  ;;  %v667_v56 = vadd.f32 %v1691_v3, %v666_v52  ;;  %v771_v57 = vadd.f32 %v1691_v3, %v770_v53 }
 0x122   : > { %v668_v58 = vpop.f32.mrf.mxu0  ;;  %v772_v59 = vpop.f32.mrf.mxu1 }
 0x123   : > { %1101 = vst.msk [vmem:[%s1699_s28 + $0x10] sm:$0xf] %vm1096_vm0, %v1335_v54  ;;  %1127 = vst.msk [vmem:[%s1699_s28 + $0x78] sm:$0xf] %vm1096_vm0, %v1361_v55  ;;  %v851_v60 = vmax.f32 %v667_v56, 0.0  ;;  %v877_v61 = vmax.f32 %v771_v57, 0.0 }
 0x124   : > { %v671_v62 = vpop.f32.mrf.mxu0  ;;  %v775_v63 = vpop.f32.mrf.mxu1 }
 0x125   : > { %v1336_v0 = vpack.c.bf16 %v851_v60, %v851_v60  ;;  %v1362_v1 = vpack.c.bf16 %v877_v61, %v877_v61  ;;  %v672_v2 = vadd.f32 %v1691_v3, %v671_v62  ;;  %v776_v4 = vadd.f32 %v1691_v3, %v775_v63 }
 0x126   : > { %v673_v5 = vpop.f32.mrf.mxu0  ;;  %v777_v6 = vpop.f32.mrf.mxu1 }
 0x127   : > { %1102 = vst.msk [vmem:[%s1699_s28 + $0x14] sm:$0xf] %vm1096_vm0, %v1336_v0  ;;  %1128 = vst.msk [vmem:[%s1699_s28 + $0x7c] sm:$0xf] %vm1096_vm0, %v1362_v1  ;;  %v852_v7 = vmax.f32 %v672_v2, 0.0  ;;  %v878_v8 = vmax.f32 %v776_v4, 0.0 }
 0x128   : > { %v674_v9 = vpop.f32.mrf.mxu0  ;;  %v778_v10 = vpop.f32.mrf.mxu1 }
 0x129   : > { %v1337_v11 = vpack.c.bf16 %v852_v7, %v852_v7  ;;  %v1363_v12 = vpack.c.bf16 %v878_v8, %v878_v8  ;;  %v675_v13 = vadd.f32 %v1691_v3, %v674_v9  ;;  %v779_v14 = vadd.f32 %v1691_v3, %v778_v10 }
 0x12a   : > { %v676_v15 = vpop.f32.mrf.mxu0  ;;  %v780_v16 = vpop.f32.mrf.mxu1 }
 0x12b   : > { %1103 = vst.msk [vmem:[%s1699_s28 + $0x18] sm:$0xf] %vm1096_vm0, %v1337_v11  ;;  %1129 = vst.msk [vmem:[%s1699_s28 + $0x80] sm:$0xf] %vm1096_vm0, %v1363_v12  ;;  %v853_v17 = vmax.f32 %v675_v13, 0.0  ;;  %v879_v18 = vmax.f32 %v779_v14, 0.0 }
 0x12c   : > { %v679_v19 = vpop.f32.mrf.mxu0  ;;  %v783_v20 = vpop.f32.mrf.mxu1 }
 0x12d   : > { %v1338_v21 = vpack.c.bf16 %v853_v17, %v853_v17  ;;  %v1364_v22 = vpack.c.bf16 %v879_v18, %v879_v18  ;;  %v680_v23 = vadd.f32 %v1691_v3, %v679_v19  ;;  %v784_v24 = vadd.f32 %v1691_v3, %v783_v20 }
 0x12e   : > { %v681_v25 = vpop.f32.mrf.mxu0  ;;  %v785_v26 = vpop.f32.mrf.mxu1 }
 0x12f   : > { %1104 = vst.msk [vmem:[%s1699_s28 + $0x1c] sm:$0xf] %vm1096_vm0, %v1338_v21  ;;  %1130 = vst.msk [vmem:[%s1699_s28 + $0x84] sm:$0xf] %vm1096_vm0, %v1364_v22  ;;  %v854_v27 = vmax.f32 %v680_v23, 0.0  ;;  %v880_v28 = vmax.f32 %v784_v24, 0.0 }
 0x130   : > { %v682_v29 = vpop.f32.mrf.mxu0  ;;  %v786_v30 = vpop.f32.mrf.mxu1 }
 0x131   : > { %v1339_v31 = vpack.c.bf16 %v854_v27, %v854_v27  ;;  %v1365_v32 = vpack.c.bf16 %v880_v28, %v880_v28  ;;  %v683_v33 = vadd.f32 %v1691_v3, %v682_v29  ;;  %v787_v34 = vadd.f32 %v1691_v3, %v786_v30 }
 0x132   : > { %v684_v35 = vpop.f32.mrf.mxu0  ;;  %v788_v36 = vpop.f32.mrf.mxu1 }
 0x133   : > { %1105 = vst.msk [vmem:[%s1699_s28 + $0x20] sm:$0xf] %vm1096_vm0, %v1339_v31  ;;  %1131 = vst.msk [vmem:[%s1699_s28 + $0x88] sm:$0xf] %vm1096_vm0, %v1365_v32  ;;  %v855_v37 = vmax.f32 %v683_v33, 0.0  ;;  %v881_v38 = vmax.f32 %v787_v34, 0.0 }
 0x134   : > { %v687_v39 = vpop.f32.mrf.mxu0  ;;  %v791_v40 = vpop.f32.mrf.mxu1 }
 0x135   : > { %v1340_v41 = vpack.c.bf16 %v855_v37, %v855_v37  ;;  %v1366_v42 = vpack.c.bf16 %v881_v38, %v881_v38  ;;  %v688_v43 = vadd.f32 %v1691_v3, %v687_v39  ;;  %v792_v44 = vadd.f32 %v1691_v3, %v791_v40 }
 0x136   : > { %v689_v45 = vpop.f32.mrf.mxu0  ;;  %v793_v46 = vpop.f32.mrf.mxu1 }
 0x137   : > { %1106 = vst.msk [vmem:[%s1699_s28 + $0x24] sm:$0xf] %vm1096_vm0, %v1340_v41  ;;  %1132 = vst.msk [vmem:[%s1699_s28 + $0x8c] sm:$0xf] %vm1096_vm0, %v1366_v42  ;;  %v856_v47 = vmax.f32 %v688_v43, 0.0  ;;  %v882_v48 = vmax.f32 %v792_v44, 0.0 }
 0x138   : > { %v690_v49 = vpop.f32.mrf.mxu0  ;;  %v794_v50 = vpop.f32.mrf.mxu1 }
 0x139   : > { %v1341_v51 = vpack.c.bf16 %v856_v47, %v856_v47  ;;  %v1367_v52 = vpack.c.bf16 %v882_v48, %v882_v48  ;;  %v691_v53 = vadd.f32 %v1691_v3, %v690_v49  ;;  %v795_v54 = vadd.f32 %v1691_v3, %v794_v50 }
 0x13a   : > { %v692_v55 = vpop.f32.mrf.mxu0  ;;  %v796_v56 = vpop.f32.mrf.mxu1 }
 0x13b   : > { %1107 = vst.msk [vmem:[%s1699_s28 + $0x28] sm:$0xf] %vm1096_vm0, %v1341_v51  ;;  %1133 = vst.msk [vmem:[%s1699_s28 + $0x90] sm:$0xf] %vm1096_vm0, %v1367_v52  ;;  %v857_v57 = vmax.f32 %v691_v53, 0.0  ;;  %v883_v58 = vmax.f32 %v795_v54, 0.0 }
 0x13c   : > { %v695_v59 = vpop.f32.mrf.mxu0  ;;  %v799_v60 = vpop.f32.mrf.mxu1 }
 0x13d   : > { %v1342_v61 = vpack.c.bf16 %v857_v57, %v857_v57  ;;  %v1368_v62 = vpack.c.bf16 %v883_v58, %v883_v58  ;;  %v696_v63 = vadd.f32 %v1691_v3, %v695_v59  ;;  %v800_v0 = vadd.f32 %v1691_v3, %v799_v60 }
 0x13e   : > { %v697_v1 = vpop.f32.mrf.mxu0  ;;  %v801_v2 = vpop.f32.mrf.mxu1 }
 0x13f   : > { %1108 = vst.msk [vmem:[%s1699_s28 + $0x2c] sm:$0xf] %vm1096_vm0, %v1342_v61  ;;  %1134 = vst.msk [vmem:[%s1699_s28 + $0x94] sm:$0xf] %vm1096_vm0, %v1368_v62  ;;  %v858_v4 = vmax.f32 %v696_v63, 0.0  ;;  %v884_v5 = vmax.f32 %v800_v0, 0.0 }
 0x140   : > { %v698_v6 = vpop.f32.mrf.mxu0  ;;  %v802_v7 = vpop.f32.mrf.mxu1 }
 0x141   : > { %v1343_v8 = vpack.c.bf16 %v858_v4, %v858_v4  ;;  %v1369_v9 = vpack.c.bf16 %v884_v5, %v884_v5  ;;  %v699_v10 = vadd.f32 %v1691_v3, %v698_v6  ;;  %v803_v11 = vadd.f32 %v1691_v3, %v802_v7 }
 0x142   : > { %v700_v12 = vpop.f32.mrf.mxu0  ;;  %v804_v13 = vpop.f32.mrf.mxu1 }
 0x143   : > { %1109 = vst.msk [vmem:[%s1699_s28 + $0x30] sm:$0xf] %vm1096_vm0, %v1343_v8  ;;  %1135 = vst.msk [vmem:[%s1699_s28 + $0x98] sm:$0xf] %vm1096_vm0, %v1369_v9  ;;  %v859_v14 = vmax.f32 %v699_v10, 0.0  ;;  %v885_v15 = vmax.f32 %v803_v11, 0.0 }
 0x144   : > { %v703_v16 = vpop.f32.mrf.mxu0  ;;  %v807_v17 = vpop.f32.mrf.mxu1 }
 0x145   : > { %v1344_v18 = vpack.c.bf16 %v859_v14, %v859_v14  ;;  %v1370_v19 = vpack.c.bf16 %v885_v15, %v885_v15  ;;  %v704_v20 = vadd.f32 %v1691_v3, %v703_v16  ;;  %v808_v21 = vadd.f32 %v1691_v3, %v807_v17 }
 0x146   : > { %v705_v22 = vpop.f32.mrf.mxu0  ;;  %v809_v23 = vpop.f32.mrf.mxu1 }
 0x147   : > { %1110 = vst.msk [vmem:[%s1699_s28 + $0x34] sm:$0xf] %vm1096_vm0, %v1344_v18  ;;  %1136 = vst.msk [vmem:[%s1699_s28 + $0x9c] sm:$0xf] %vm1096_vm0, %v1370_v19  ;;  %v860_v24 = vmax.f32 %v704_v20, 0.0  ;;  %v886_v25 = vmax.f32 %v808_v21, 0.0 }
 0x148   : > { %v706_v26 = vpop.f32.mrf.mxu0  ;;  %v810_v27 = vpop.f32.mrf.mxu1 }
 0x149   : > { %v1345_v28 = vpack.c.bf16 %v860_v24, %v860_v24  ;;  %v1371_v29 = vpack.c.bf16 %v886_v25, %v886_v25  ;;  %v707_v30 = vadd.f32 %v1691_v3, %v706_v26  ;;  %v811_v31 = vadd.f32 %v1691_v3, %v810_v27 }
 0x14a   : > { %v708_v32 = vpop.f32.mrf.mxu0  ;;  %v812_v33 = vpop.f32.mrf.mxu1 }
 0x14b   : > { %1111 = vst.msk [vmem:[%s1699_s28 + $0x38] sm:$0xf] %vm1096_vm0, %v1345_v28  ;;  %1137 = vst.msk [vmem:[%s1699_s28 + $0xa0] sm:$0xf] %vm1096_vm0, %v1371_v29  ;;  %v861_v34 = vmax.f32 %v707_v30, 0.0  ;;  %v887_v35 = vmax.f32 %v811_v31, 0.0 }
 0x14c   : > { %v711_v36 = vpop.f32.mrf.mxu0  ;;  %v815_v37 = vpop.f32.mrf.mxu1 }
 0x14d   : > { %v1346_v38 = vpack.c.bf16 %v861_v34, %v861_v34  ;;  %v1372_v39 = vpack.c.bf16 %v887_v35, %v887_v35  ;;  %v712_v40 = vadd.f32 %v1691_v3, %v711_v36  ;;  %v816_v41 = vadd.f32 %v1691_v3, %v815_v37 }
 0x14e   : > { %v713_v42 = vpop.f32.mrf.mxu0  ;;  %v817_v43 = vpop.f32.mrf.mxu1 }
 0x14f   : > { %1112 = vst.msk [vmem:[%s1699_s28 + $0x3c] sm:$0xf] %vm1096_vm0, %v1346_v38  ;;  %1138 = vst.msk [vmem:[%s1699_s28 + $0xa4] sm:$0xf] %vm1096_vm0, %v1372_v39  ;;  %v862_v44 = vmax.f32 %v712_v40, 0.0  ;;  %v888_v45 = vmax.f32 %v816_v41, 0.0 }
 0x150   : > { %v714_v46 = vpop.f32.mrf.mxu0  ;;  %v818_v47 = vpop.f32.mrf.mxu1 }
 0x151   : > { %v1347_v48 = vpack.c.bf16 %v862_v44, %v862_v44  ;;  %v1373_v49 = vpack.c.bf16 %v888_v45, %v888_v45  ;;  %v715_v50 = vadd.f32 %v1691_v3, %v714_v46  ;;  %v819_v51 = vadd.f32 %v1691_v3, %v818_v47 }
 0x152   : > { %v716_v52 = vpop.f32.mrf.mxu0  ;;  %v820_v53 = vpop.f32.mrf.mxu1 }
 0x153   : > { %1113 = vst.msk [vmem:[%s1699_s28 + $0x40] sm:$0xf] %vm1096_vm0, %v1347_v48  ;;  %1139 = vst.msk [vmem:[%s1699_s28 + $0xa8] sm:$0xf] %vm1096_vm0, %v1373_v49  ;;  %v863_v54 = vmax.f32 %v715_v50, 0.0  ;;  %v889_v55 = vmax.f32 %v819_v51, 0.0 }
 0x154   : > { %v719_v56 = vpop.f32.mrf.mxu0  ;;  %v823_v57 = vpop.f32.mrf.mxu1 }
 0x155   : > { %v1348_v58 = vpack.c.bf16 %v863_v54, %v863_v54  ;;  %v1374_v59 = vpack.c.bf16 %v889_v55, %v889_v55  ;;  %v720_v60 = vadd.f32 %v1691_v3, %v719_v56  ;;  %v824_v61 = vadd.f32 %v1691_v3, %v823_v57 }
 0x156   : > { %v721_v62 = vpop.f32.mrf.mxu0  ;;  %v825_v63 = vpop.f32.mrf.mxu1 }
 0x157   : > { %1114 = vst.msk [vmem:[%s1699_s28 + $0x44] sm:$0xf] %vm1096_vm0, %v1348_v58  ;;  %1140 = vst.msk [vmem:[%s1699_s28 + $0xac] sm:$0xf] %vm1096_vm0, %v1374_v59  ;;  %v864_v0 = vmax.f32 %v720_v60, 0.0  ;;  %v890_v1 = vmax.f32 %v824_v61, 0.0 }
 0x158   : > { %v722_v2 = vpop.f32.mrf.mxu0  ;;  %v826_v4 = vpop.f32.mrf.mxu1 }
 0x159   : > { %v1349_v5 = vpack.c.bf16 %v864_v0, %v864_v0  ;;  %v1375_v6 = vpack.c.bf16 %v890_v1, %v890_v1  ;;  %v723_v7 = vadd.f32 %v1691_v3, %v722_v2  ;;  %v827_v8 = vadd.f32 %v1691_v3, %v826_v4 }
 0x15a   : > { %v724_v9 = vpop.f32.mrf.mxu0  ;;  %v828_v10 = vpop.f32.mrf.mxu1 }
 0x15b   : > { %1115 = vst.msk [vmem:[%s1699_s28 + $0x48] sm:$0xf] %vm1096_vm0, %v1349_v5  ;;  %1141 = vst.msk [vmem:[%s1699_s28 + $0xb0] sm:$0xf] %vm1096_vm0, %v1375_v6  ;;  %v865_v11 = vmax.f32 %v723_v7, 0.0  ;;  %v891_v12 = vmax.f32 %v827_v8, 0.0 }
 0x15c   : > { %v727_v13 = vpop.f32.mrf.mxu0  ;;  %v831_v14 = vpop.f32.mrf.mxu1 }
 0x15d   : > { %v1350_v15 = vpack.c.bf16 %v865_v11, %v865_v11  ;;  %v1376_v16 = vpack.c.bf16 %v891_v12, %v891_v12  ;;  %v728_v17 = vadd.f32 %v1691_v3, %v727_v13  ;;  %v832_v18 = vadd.f32 %v1691_v3, %v831_v14 }
 0x15e   : > { %v729_v19 = vpop.f32.mrf.mxu0  ;;  %v833_v20 = vpop.f32.mrf.mxu1 }
 0x15f   : > { %1116 = vst.msk [vmem:[%s1699_s28 + $0x4c] sm:$0xf] %vm1096_vm0, %v1350_v15  ;;  %1142 = vst.msk [vmem:[%s1699_s28 + $0xb4] sm:$0xf] %vm1096_vm0, %v1376_v16  ;;  %v866_v21 = vmax.f32 %v728_v17, 0.0  ;;  %v892_v22 = vmax.f32 %v832_v18, 0.0 }
 0x160   : > { %v730_v23 = vpop.f32.mrf.mxu0  ;;  %v834_v24 = vpop.f32.mrf.mxu1 }
 0x161   : > { %v1351_v25 = vpack.c.bf16 %v866_v21, %v866_v21  ;;  %v1377_v26 = vpack.c.bf16 %v892_v22, %v892_v22  ;;  %v731_v27 = vadd.f32 %v1691_v3, %v730_v23  ;;  %v835_v28 = vadd.f32 %v1691_v3, %v834_v24 }
 0x162   : > { %v732_v29 = vpop.f32.mrf.mxu0  ;;  %v836_v30 = vpop.f32.mrf.mxu1 }
 0x163   : > { %1117 = vst.msk [vmem:[%s1699_s28 + $0x50] sm:$0xf] %vm1096_vm0, %v1351_v25  ;;  %1143 = vst.msk [vmem:[%s1699_s28 + $0xb8] sm:$0xf] %vm1096_vm0, %v1377_v26  ;;  %v867_v31 = vmax.f32 %v731_v27, 0.0  ;;  %v893_v32 = vmax.f32 %v835_v28, 0.0 }
 0x164   : > { %v735_v33 = vpop.f32.mrf.mxu0  ;;  %v839_v34 = vpop.f32.mrf.mxu1 }
 0x165   : > { %v1352_v35 = vpack.c.bf16 %v867_v31, %v867_v31  ;;  %v1378_v36 = vpack.c.bf16 %v893_v32, %v893_v32  ;;  %v736_v37 = vadd.f32 %v1691_v3, %v735_v33  ;;  %v840_v38 = vadd.f32 %v1691_v3, %v839_v34 }
 0x166   : > { %v737_v39 = vpop.f32.mrf.mxu0  ;;  %v841_v40 = vpop.f32.mrf.mxu1 }
 0x167   : > { %1118 = vst.msk [vmem:[%s1699_s28 + $0x54] sm:$0xf] %vm1096_vm0, %v1352_v35  ;;  %1144 = vst.msk [vmem:[%s1699_s28 + $0xbc] sm:$0xf] %vm1096_vm0, %v1378_v36  ;;  %v868_v41 = vmax.f32 %v736_v37, 0.0  ;;  %v894_v42 = vmax.f32 %v840_v38, 0.0 }
 0x168   : > { %v738_v43 = vpop.f32.mrf.mxu0  ;;  %v842_v44 = vpop.f32.mrf.mxu1 }
 0x169   : > { %v1353_v45 = vpack.c.bf16 %v868_v41, %v868_v41  ;;  %v1379_v46 = vpack.c.bf16 %v894_v42, %v894_v42  ;;  %v739_v47 = vadd.f32 %v1691_v3, %v738_v43  ;;  %v843_v48 = vadd.f32 %v1691_v3, %v842_v44 }
 0x16a   : > { %v740_v49 = vpop.f32.mrf.mxu0  ;;  %v844_v50 = vpop.f32.mrf.mxu1 }
 0x16b   : > { %1119 = vst.msk [vmem:[%s1699_s28 + $0x58] sm:$0xf] %vm1096_vm0, %v1353_v45  ;;  %1145 = vst.msk [vmem:[%s1699_s28 + $0xc0] sm:$0xf] %vm1096_vm0, %v1379_v46  ;;  %v869_v51 = vmax.f32 %v739_v47, 0.0  ;;  %v895_v52 = vmax.f32 %v843_v48, 0.0 }
 0x16c   : > { %v743_v53 = vpop.f32.mrf.mxu0 }
 0x16d   : > { %v1354_v54 = vpack.c.bf16 %v869_v51, %v869_v51  ;;  %v1380_v55 = vpack.c.bf16 %v895_v52, %v895_v52  ;;  %v744_v56 = vadd.f32 %v1691_v3, %v743_v53 }
 0x16e   : > { %v745_v57 = vpop.f32.mrf.mxu0 }
 0x16f   : > { %1120 = vst.msk [vmem:[%s1699_s28 + $0x5c] sm:$0xf] %vm1096_vm0, %v1354_v54  ;;  %1146 = vst.msk [vmem:[%s1699_s28 + $0xc4] sm:$0xf] %vm1096_vm0, %v1380_v55  ;;  %v870_v58 = vmax.f32 %v744_v56, 0.0 }
 0x170   : > { %v746_v59 = vpop.f32.mrf.mxu0 }
 0x171   : > { %v1355_v60 = vpack.c.bf16 %v870_v58, %v870_v58  ;;  %v747_v61 = vadd.f32 %v1691_v3, %v746_v59 }
 0x172   : > { %v748_v62 = vpop.f32.mrf.mxu0 }
 0x173   : > { %1121 = vst.msk [vmem:[%s1699_s28 + $0x60] sm:$0xf] %vm1096_vm0, %v1355_v60  ;;  %v871_v63 = vmax.f32 %v747_v61, 0.0 }
 0x175   : > { %v1356_v0 = vpack.c.bf16 %v871_v63, %v871_v63 }
 0x177   : > { %1122 = vst.msk [vmem:[%s1699_s28 + $0x64] sm:$0xf] %vm1096_vm0, %v1356_v0 }
 0x178 PF: > { %s13_s12 = sadd.s32 1, %s1519_s12  }
 0x179   : > { %p10_p4 = scmp.ge.s32.totalorder %s13_s12, 4  }
 0x17b   :  { %12 = sbr.rel (!%p10_p4) target bundleno = 1 (0x1), region = 62 }

// kernel: split_q_forward.5
= control target key start
LH: loop header
LB: loop body
LE: loop exit
PB: predicated region body
PF: predicated region fallthrough
CT: control target
= control target key end

     0   :  { %vm880_vm0 = vcmask 519168   ;;  %vm901_vm1 = vcmask 516096   ;;  %s1637_s1 = inlined_call_operand.vmem [shape: bf16[512,64], index: 1, kind: input, shape index: {}]   ;;  %s1638_s0 = inlined_call_operand.vmem [shape: bf16[162,512], index: 0, kind: input, shape index: {}]   ;;  %s1639_s2 = inlined_call_operand.vmem [shape: f32[1,64], index: 2, kind: input, shape index: {}]   ;;  %s1640_s3 = inlined_call_operand.vmem [shape: bf16[162,64], index: 3, kind: output, shape index: {}]  }
   0x1   :  { %v1190_v0 = vld [vmem:[%s1637_s1 + $0x78] sm:$0xff]   ;;  %v1194_v4 = vld [vmem:[%s1637_s1 + $0x70] sm:$0xff]   ;;  %v1198_v8 = vld [vmem:[%s1637_s1 + $0x68] sm:$0xff]  }
   0x2   :  { %v1191_v1 = vld [vmem:[%s1637_s1 + $0xf8] sm:$0xff]   ;;  %1026 = vmatprep.subr.bf16.mxu0 %v1190_v0  ;;  %v1195_v5 = vld [vmem:[%s1637_s1 + $0xf0] sm:$0xff]   ;;  %v1199_v9 = vld [vmem:[%s1637_s1 + $0xe8] sm:$0xff]  }
   0x3   :  { %v1192_v2 = vld [vmem:[%s1637_s1 + $0x38] sm:$0xff]   ;;  %1108 = vmatprep.subr.bf16.mxu1 %v1191_v1  ;;  %v1196_v6 = vld [vmem:[%s1637_s1 + $0x30] sm:$0xff]   ;;  %v1200_v10 = vld [vmem:[%s1637_s1 + $0x28] sm:$0xff]  }
   0x4   :  { %v1193_v3 = vld [vmem:[%s1637_s1 + $0xb8] sm:$0xff]   ;;  %1027 = vmatpush3.bf16.msra.mxu0 %v1192_v2  ;;  %v1197_v7 = vld [vmem:[%s1637_s1 + $0xb0] sm:$0xff]   ;;  %v1201_v11 = vld [vmem:[%s1637_s1 + $0xa8] sm:$0xff]  }
   0x5   :  { %1109 = vmatpush3.bf16.msra.mxu1 %v1193_v3  ;;  %1028 = vmatprep.subr.bf16.mxu0 %v1194_v4  ;;  %v1202_v12 = vld [vmem:[%s1637_s1 + $0x60] sm:$0xff]   ;;  %v1206_v16 = vld [vmem:[%s1637_s1 + $0x58] sm:$0xff]   ;;  %v1210_v20 = vld [vmem:[%s1637_s1 + $0x50] sm:$0xff]  }
   0x6   :  { %1110 = vmatprep.subr.bf16.mxu1 %v1195_v5  ;;  %v1203_v13 = vld [vmem:[%s1637_s1 + $0xe0] sm:$0xff]   ;;  %v1207_v17 = vld [vmem:[%s1637_s1 + $0xd8] sm:$0xff]   ;;  %v1211_v21 = vld [vmem:[%s1637_s1 + $0xd0] sm:$0xff]  }
   0x7   :  { %v1204_v14 = vld [vmem:[%s1637_s1 + $0x20] sm:$0xff]   ;;  %v1208_v18 = vld [vmem:[%s1637_s1 + $0x18] sm:$0xff]   ;;  %v1212_v22 = vld [vmem:[%s1637_s1 + $0x10] sm:$0xff]  }
   0x8   :  { %1029 = vmatpush3.bf16.msra.mxu0 %v1196_v6  ;;  %v1205_v15 = vld [vmem:[%s1637_s1 + $0xa0] sm:$0xff]   ;;  %v1209_v19 = vld [vmem:[%s1637_s1 + $0x98] sm:$0xff]   ;;  %v1213_v23 = vld [vmem:[%s1637_s1 + $0x90] sm:$0xff]  }
   0x9   :  { %1111 = vmatpush3.bf16.msra.mxu1 %v1197_v7  ;;  %1030 = vmatprep.subr.bf16.mxu0 %v1198_v8  ;;  %v1214_v24 = vld [vmem:[%s1637_s1 + $0x48] sm:$0xff]   ;;  %v1218_v28 = vld [vmem:[%s1637_s1 + $0x40] sm:$0xff]  }
   0xa   :  { %1112 = vmatprep.subr.bf16.mxu1 %v1199_v9  ;;  %v1215_v25 = vld [vmem:[%s1637_s1 + $0xc8] sm:$0xff]   ;;  %v1219_v29 = vld [vmem:[%s1637_s1 + $0xc0] sm:$0xff]  }
   0xb   :  { %v1216_v26 = vld [vmem:[%s1637_s1 + $0x8] sm:$0xff]   ;;  %v1220_v30 = vld [vmem:[%s1637_s1] sm:$0xff]  }
   0xc   :  { %1031 = vmatpush3.bf16.msra.mxu0 %v1200_v10  ;;  %v1217_v27 = vld [vmem:[%s1637_s1 + $0x88] sm:$0xff]   ;;  %v1221_v31 = vld [vmem:[%s1637_s1 + $0x80] sm:$0xff]  }
   0xd   :  { %1113 = vmatpush3.bf16.msra.mxu1 %v1201_v11  ;;  %1032 = vmatprep.subr.bf16.mxu0 %v1202_v12  ;;  %v1222_v32 = vld [vmem:[%s1638_s0] ss:$16 sps:$4 sm:$0xff]   ;;  %v1224_v33 = vld [vmem:[%s1638_s0 + $0x4] ss:$16 sps:$4 sm:$0xff]   ;;  %v1225_v34 = vld [vmem:[%s1638_s0 + $0x8] ss:$16 sps:$4 sm:$0xff]  }
   0xe   :  { %1114 = vmatprep.subr.bf16.mxu1 %v1203_v13  ;;  %v1227_v35 = vld [vmem:[%s1638_s0 + $0xc] ss:$16 sps:$4 sm:$0xff]   ;;  %566 = vmatprep.mubr.bf16.mxu0 %v1224_v33  ;;  %v1228_v36 = vld [vmem:[%s1638_s0 + $0x24] ss:$16 sps:$4 sm:$0xff]   ;;  %v1232_v38 = vld [vmem:[%s1638_s0 + $0x20] ss:$16 sps:$4 sm:$0xff]  }
   0xf   :  { %686 = vmatprep.mubr.bf16.mxu1 %v1227_v35  ;;  %v1230_v37 = vld [vmem:[%s1638_s0 + $0x2c] ss:$16 sps:$4 sm:$0xff]   ;;  %v1233_v39 = vld [vmem:[%s1638_s0 + $0x28] ss:$16 sps:$4 sm:$0xff]   ;;  %v1234_v40 = vld [vmem:[%s1638_s0 + $0x44] ss:$16 sps:$4 sm:$0xff]  }
  0x10   :  { %1033 = vmatpush3.bf16.msra.mxu0 %v1204_v14  ;;  %v1236_v41 = vld [vmem:[%s1638_s0 + $0x4c] ss:$16 sps:$4 sm:$0xff]   ;;  %v1238_v42 = vld [vmem:[%s1638_s0 + $0x40] ss:$16 sps:$4 sm:$0xff]   ;;  %v1239_v43 = vld [vmem:[%s1638_s0 + $0x48] ss:$16 sps:$4 sm:$0xff]  }
  0x11   :  { %1115 = vmatpush3.bf16.msra.mxu1 %v1205_v15  ;;  %1034 = vmatprep.subr.bf16.mxu0 %v1206_v16  ;;  %v1240_v44 = vld [vmem:[%s1638_s0 + $0x64] ss:$16 sps:$4 sm:$0xff]   ;;  %v1242_v45 = vld [vmem:[%s1638_s0 + $0x6c] ss:$16 sps:$4 sm:$0xff]   ;;  %v1244_v46 = vld [vmem:[%s1638_s0 + $0x60] ss:$16 sps:$4 sm:$0xff]  }
  0x12   :  { %1116 = vmatprep.subr.bf16.mxu1 %v1207_v17  ;;  %v1245_v47 = vld [vmem:[%s1638_s0 + $0x68] ss:$16 sps:$4 sm:$0xff]   ;;  %v1246_v48 = vld [vmem:[%s1638_s0 + $0x84] ss:$16 sps:$4 sm:$0xff]   ;;  %v1248_v49 = vld [vmem:[%s1638_s0 + $0x8c] ss:$16 sps:$4 sm:$0xff]  }
  0x13   :  { %v1250_v50 = vld [vmem:[%s1638_s0 + $0x80] ss:$16 sps:$4 sm:$0xff]   ;;  %v1251_v51 = vld [vmem:[%s1638_s0 + $0x88] ss:$16 sps:$4 sm:$0xff]   ;;  %v1252_v52 = vld [vmem:[%s1638_s0 + $0xa4] ss:$16 sps:$4 sm:$0xff]  }
  0x14   :  { %1035 = vmatpush3.bf16.msra.mxu0 %v1208_v18  ;;  %v1254_v53 = vld [vmem:[%s1638_s0 + $0xac] ss:$16 sps:$4 sm:$0xff]   ;;  %v1256_v54 = vld [vmem:[%s1638_s0 + $0xa0] ss:$16 sps:$4 sm:$0xff]   ;;  %v1257_v55 = vld [vmem:[%s1638_s0 + $0xa8] ss:$16 sps:$4 sm:$0xff]  }
  0x15   :  { %1117 = vmatpush3.bf16.msra.mxu1 %v1209_v19  ;;  %1036 = vmatprep.subr.bf16.mxu0 %v1210_v20  ;;  %v1258_v56 = vld [vmem:[%s1638_s0 + $0xc4] ss:$16 sps:$4 sm:$0xff]   ;;  %v1260_v57 = vld [vmem:[%s1638_s0 + $0xcc] ss:$16 sps:$4 sm:$0xff]   ;;  %v1262_v58 = vld [vmem:[%s1638_s0 + $0xc0] ss:$16 sps:$4 sm:$0xff]  }
  0x16   :  { %1118 = vmatprep.subr.bf16.mxu1 %v1211_v21  ;;  %v1263_v59 = vld [vmem:[%s1638_s0 + $0xc8] ss:$16 sps:$4 sm:$0xff]   ;;  %v1264_v60 = vld [vmem:[%s1638_s0 + $0xe4] ss:$16 sps:$4 sm:$0xff]   ;;  %v1266_v61 = vld [vmem:[%s1638_s0 + $0xec] ss:$16 sps:$4 sm:$0xff]  }
  0x17   :  { %v1268_v62 = vld [vmem:[%s1638_s0 + $0xe0] ss:$16 sps:$4 sm:$0xff]   ;;  %v1269_v63 = vld [vmem:[%s1638_s0 + $0xe8] ss:$16 sps:$4 sm:$0xff]   ;;  %v1270_v0 = vld [vmem:[%s1638_s0 + $0x104] ss:$16 sps:$4 sm:$0xff]  }
  0x18   :  { %1037 = vmatpush3.bf16.msra.mxu0 %v1212_v22  ;;  %v1272_v1 = vld [vmem:[%s1638_s0 + $0x10c] ss:$16 sps:$4 sm:$0xff]   ;;  %v1274_v2 = vld [vmem:[%s1638_s0 + $0x100] ss:$16 sps:$4 sm:$0xff]   ;;  %v1275_v3 = vld [vmem:[%s1638_s0 + $0x108] ss:$16 sps:$4 sm:$0xff]  }
  0x19   :  { %1119 = vmatpush3.bf16.msra.mxu1 %v1213_v23  ;;  %1038 = vmatprep.subr.bf16.mxu0 %v1214_v24  ;;  %v1276_v4 = vld [vmem:[%s1638_s0 + $0x124] ss:$16 sps:$4 sm:$0xff]   ;;  %v1278_v5 = vld [vmem:[%s1638_s0 + $0x12c] ss:$16 sps:$4 sm:$0xff]   ;;  %v1280_v8 = vld [vmem:[%s1638_s0 + $0x120] ss:$16 sps:$4 sm:$0xff]  }
  0x1a   :  { %1120 = vmatprep.subr.bf16.mxu1 %v1215_v25  ;;  %v55_v6 = vld [vmem:[%s1638_s0 + $0x140] sm:$0x11]  ;;  %v56_v7 = vld [vmem:[%s1638_s0 + $0x148] sm:$0x11] }
  0x1b   :  { %v1281_v9 = vld [vmem:[%s1638_s0 + $0x128] ss:$16 sps:$4 sm:$0xff]   ;;  %v949_v10 = vcombine.high %v55_v6, %v55_v6  ;;  %v951_v11 = vcombine.high %v56_v7, %v56_v7  ;;  %v948_v12 = vcombine.low %v55_v6, %v55_v6  ;;  %v950_v13 = vcombine.low %v56_v7, %v56_v7  ;;  %v1531_v16 = vld [vmem:[%s1639_s2] ss:$0 sm:$0xff] }
  0x1c   :  { %1039 = vmatpush3.bf16.msra.mxu0 %v1216_v26 }
  0x1d   :  { %1121 = vmatpush3.bf16.msra.mxu1 %v1217_v27  ;;  %1040 = vmatprep.subr.bf16.mxu0 %v1218_v28 }
  0x1e   :  { %1122 = vmatprep.subr.bf16.mxu1 %v1219_v29 }
  0x20   :  { %1041 = vmatpush3.bf16.msra.mxu0 %v1220_v30 }
  0x21   :  { %1123 = vmatpush3.bf16.msra.mxu1 %v1221_v31 }
  0x23   :  { %567 = vmatmul.mubr.bf16.vlgmr.msra.gmra.mxu0 %v1222_v32 }
  0x24   :  { %687 = vmatmul.mubr.bf16.vlgmr.msra.gmra.mxu1 %v1225_v34  ;;  %574 = vmatprep.mubr.bf16.mxu0 %v1228_v36 }
  0x25   :  { %694 = vmatprep.mubr.bf16.mxu1 %v1230_v37 }
  0x2b   :  { %575 = vmatmul.mubr.bf16.gmra.mxu0 %v1232_v38 }
  0x2c   :  { %695 = vmatmul.mubr.bf16.gmra.mxu1 %v1233_v39  ;;  %582 = vmatprep.mubr.bf16.mxu0 %v1234_v40 }
  0x2d   :  { %702 = vmatprep.mubr.bf16.mxu1 %v1236_v41 }
  0x33   :  { %583 = vmatmul.mubr.bf16.gmra.mxu0 %v1238_v42 }
  0x34   :  { %703 = vmatmul.mubr.bf16.gmra.mxu1 %v1239_v43  ;;  %590 = vmatprep.mubr.bf16.mxu0 %v1240_v44 }
  0x35   :  { %710 = vmatprep.mubr.bf16.mxu1 %v1242_v45 }
  0x3b   :  { %591 = vmatmul.mubr.bf16.gmra.mxu0 %v1244_v46 }
  0x3c   :  { %711 = vmatmul.mubr.bf16.gmra.mxu1 %v1245_v47  ;;  %598 = vmatprep.mubr.bf16.mxu0 %v1246_v48 }
  0x3d   :  { %718 = vmatprep.mubr.bf16.mxu1 %v1248_v49 }
  0x43   :  { %599 = vmatmul.mubr.bf16.gmra.mxu0 %v1250_v50 }
  0x44   :  { %719 = vmatmul.mubr.bf16.gmra.mxu1 %v1251_v51  ;;  %606 = vmatprep.mubr.bf16.mxu0 %v1252_v52 }
  0x45   :  { %726 = vmatprep.mubr.bf16.mxu1 %v1254_v53 }
  0x4b   :  { %607 = vmatmul.mubr.bf16.gmra.mxu0 %v1256_v54 }
  0x4c   :  { %727 = vmatmul.mubr.bf16.gmra.mxu1 %v1257_v55  ;;  %614 = vmatprep.mubr.bf16.mxu0 %v1258_v56 }
  0x4d   :  { %734 = vmatprep.mubr.bf16.mxu1 %v1260_v57 }
  0x53   :  { %615 = vmatmul.mubr.bf16.gmra.mxu0 %v1262_v58 }
  0x54   :  { %735 = vmatmul.mubr.bf16.gmra.mxu1 %v1263_v59  ;;  %622 = vmatprep.mubr.bf16.mxu0 %v1264_v60 }
  0x55   :  { %742 = vmatprep.mubr.bf16.mxu1 %v1266_v61 }
  0x5b   :  { %623 = vmatmul.mubr.bf16.gmra.mxu0 %v1268_v62 }
  0x5c   :  { %743 = vmatmul.mubr.bf16.gmra.mxu1 %v1269_v63  ;;  %630 = vmatprep.mubr.bf16.mxu0 %v1270_v0 }
  0x5d   :  { %750 = vmatprep.mubr.bf16.mxu1 %v1272_v1 }
  0x63   :  { %631 = vmatmul.mubr.bf16.gmra.mxu0 %v1274_v2 }
  0x64   :  { %751 = vmatmul.mubr.bf16.gmra.mxu1 %v1275_v3  ;;  %638 = vmatprep.mubr.bf16.mxu0 %v1276_v4 }
  0x65   :  { %758 = vmatprep.mubr.bf16.mxu1 %v1278_v5 }
  0x6b   :  { %639 = vmatmul.mubr.bf16.gmra.mxu0 %v1280_v8 }
  0x6c   :  { %759 = vmatmul.mubr.bf16.gmra.mxu1 %v1281_v9  ;;  %646 = vmatprep.mubr.bf16.mxu0 %v949_v10 }
  0x6d   :  { %766 = vmatprep.mubr.bf16.mxu1 %v951_v11 }
  0x73   :  { %647 = vmatmul.mubr.bf16.gmra.mxu0 %v948_v12 }
  0x74   :  { %767 = vmatmul.mubr.bf16.gmra.mxu1 %v950_v13 }
  0xe3   :  { %v1042_v14 = vpop.f32.mrf.mxu0 }
  0xe4   :  { %v1124_v15 = vpop.f32.mrf.mxu1 }
  0xe5   :  { %v1043_v17 = vpop.f32.mrf.mxu0 }
  0xe6   :  { %v1044_v18 = vadd.f32 %v1043_v17, %v1042_v14  ;;  %v1125_v19 = vpop.f32.mrf.mxu1 }
  0xe7   :  { %v1045_v20 = vpop.f32.mrf.mxu0  ;;  %v1126_v22 = vadd.f32 %v1125_v19, %v1124_v15 }
  0xe8   :  { %v569_v21 = vadd.f32 %v1044_v18, %v1531_v16  ;;  %v1127_v23 = vpop.f32.mrf.mxu1 }
  0xe9   :  { %v1046_v24 = vpop.f32.mrf.mxu0 }
  0xea   :  { %v689_v25 = vadd.f32 %v1126_v22, %v569_v21  ;;  %v1047_v26 = vadd.f32 %v1046_v24, %v1045_v20  ;;  %v1128_v27 = vpop.f32.mrf.mxu1 }
  0xeb   :  { %v1048_v28 = vpop.f32.mrf.mxu0  ;;  %v1129_v31 = vadd.f32 %v1128_v27, %v1127_v23 }
  0xec   :  { %v774_v29 = vmax.f32 %v689_v25, 0.0  ;;  %v572_v30 = vadd.f32 %v1047_v26, %v1531_v16  ;;  %v1130_v32 = vpop.f32.mrf.mxu1 }
  0xed   :  { %v1049_v33 = vpop.f32.mrf.mxu0 }
  0xee   :  { %v1005_v34 = vpack.c.bf16 %v774_v29, %v774_v29  ;;  %v692_v35 = vadd.f32 %v1129_v31, %v572_v30  ;;  %v1050_v36 = vadd.f32 %v1049_v33, %v1048_v28  ;;  %v1131_v37 = vpop.f32.mrf.mxu1 }
  0xef   :  { %v1051_v38 = vpop.f32.mrf.mxu0  ;;  %v1132_v41 = vadd.f32 %v1131_v37, %v1130_v32 }
  0xf0   :  { %881 = vst.msk [vmem:[%s1640_s3] sm:$0xf] %vm880_vm0, %v1005_v34  ;;  %v775_v39 = vmax.f32 %v692_v35, 0.0  ;;  %v577_v40 = vadd.f32 %v1050_v36, %v1531_v16  ;;  %v1133_v42 = vpop.f32.mrf.mxu1 }
  0xf1   :  { %v1052_v43 = vpop.f32.mrf.mxu0 }
  0xf2   :  { %v1006_v44 = vpack.c.bf16 %v775_v39, %v775_v39  ;;  %v697_v45 = vadd.f32 %v1132_v41, %v577_v40  ;;  %v1053_v46 = vadd.f32 %v1052_v43, %v1051_v38  ;;  %v1134_v47 = vpop.f32.mrf.mxu1 }
  0xf3   :  { %v1054_v48 = vpop.f32.mrf.mxu0  ;;  %v1135_v51 = vadd.f32 %v1134_v47, %v1133_v42 }
  0xf4   :  { %882 = vst.msk [vmem:[%s1640_s3 + $0x4] sm:$0xf] %vm880_vm0, %v1006_v44  ;;  %v776_v49 = vmax.f32 %v697_v45, 0.0  ;;  %v580_v50 = vadd.f32 %v1053_v46, %v1531_v16  ;;  %v1136_v52 = vpop.f32.mrf.mxu1 }
  0xf5   :  { %v1055_v53 = vpop.f32.mrf.mxu0 }
  0xf6   :  { %v1007_v54 = vpack.c.bf16 %v776_v49, %v776_v49  ;;  %v700_v55 = vadd.f32 %v1135_v51, %v580_v50  ;;  %v1056_v56 = vadd.f32 %v1055_v53, %v1054_v48  ;;  %v1137_v57 = vpop.f32.mrf.mxu1 }
  0xf7   :  { %v1057_v58 = vpop.f32.mrf.mxu0  ;;  %v1138_v61 = vadd.f32 %v1137_v57, %v1136_v52 }
  0xf8   :  { %883 = vst.msk [vmem:[%s1640_s3 + $0x8] sm:$0xf] %vm880_vm0, %v1007_v54  ;;  %v777_v59 = vmax.f32 %v700_v55, 0.0  ;;  %v585_v60 = vadd.f32 %v1056_v56, %v1531_v16  ;;  %v1139_v62 = vpop.f32.mrf.mxu1 }
  0xf9   :  { %v1058_v63 = vpop.f32.mrf.mxu0 }
  0xfa   :  { %v1008_v0 = vpack.c.bf16 %v777_v59, %v777_v59  ;;  %v705_v1 = vadd.f32 %v1138_v61, %v585_v60  ;;  %v1059_v2 = vadd.f32 %v1058_v63, %v1057_v58  ;;  %v1140_v3 = vpop.f32.mrf.mxu1 }
  0xfb   :  { %v1060_v4 = vpop.f32.mrf.mxu0  ;;  %v1141_v7 = vadd.f32 %v1140_v3, %v1139_v62 }
  0xfc   :  { %884 = vst.msk [vmem:[%s1640_s3 + $0xc] sm:$0xf] %vm880_vm0, %v1008_v0  ;;  %v778_v5 = vmax.f32 %v705_v1, 0.0  ;;  %v588_v6 = vadd.f32 %v1059_v2, %v1531_v16  ;;  %v1142_v8 = vpop.f32.mrf.mxu1 }
  0xfd   :  { %v1061_v9 = vpop.f32.mrf.mxu0 }
  0xfe   :  { %v1009_v10 = vpack.c.bf16 %v778_v5, %v778_v5  ;;  %v708_v11 = vadd.f32 %v1141_v7, %v588_v6  ;;  %v1062_v12 = vadd.f32 %v1061_v9, %v1060_v4  ;;  %v1143_v13 = vpop.f32.mrf.mxu1 }
  0xff   :  { %v1063_v14 = vpop.f32.mrf.mxu0  ;;  %v1144_v18 = vadd.f32 %v1143_v13, %v1142_v8 }
 0x100   :  { %885 = vst.msk [vmem:[%s1640_s3 + $0x10] sm:$0xf] %vm880_vm0, %v1009_v10  ;;  %v779_v15 = vmax.f32 %v708_v11, 0.0  ;;  %v593_v17 = vadd.f32 %v1062_v12, %v1531_v16  ;;  %v1145_v19 = vpop.f32.mrf.mxu1 }
 0x101   :  { %v1064_v20 = vpop.f32.mrf.mxu0 }
 0x102   :  { %v1010_v21 = vpack.c.bf16 %v779_v15, %v779_v15  ;;  %v713_v22 = vadd.f32 %v1144_v18, %v593_v17  ;;  %v1065_v23 = vadd.f32 %v1064_v20, %v1063_v14  ;;  %v1146_v24 = vpop.f32.mrf.mxu1 }
 0x103   :  { %v1066_v25 = vpop.f32.mrf.mxu0  ;;  %v1147_v28 = vadd.f32 %v1146_v24, %v1145_v19 }
 0x104   :  { %886 = vst.msk [vmem:[%s1640_s3 + $0x14] sm:$0xf] %vm880_vm0, %v1010_v21  ;;  %v780_v26 = vmax.f32 %v713_v22, 0.0  ;;  %v596_v27 = vadd.f32 %v1065_v23, %v1531_v16  ;;  %v1148_v29 = vpop.f32.mrf.mxu1 }
 0x105   :  { %v1067_v30 = vpop.f32.mrf.mxu0 }
 0x106   :  { %v1011_v31 = vpack.c.bf16 %v780_v26, %v780_v26  ;;  %v716_v32 = vadd.f32 %v1147_v28, %v596_v27  ;;  %v1068_v33 = vadd.f32 %v1067_v30, %v1066_v25  ;;  %v1149_v34 = vpop.f32.mrf.mxu1 }
 0x107   :  { %v1069_v35 = vpop.f32.mrf.mxu0  ;;  %v1150_v38 = vadd.f32 %v1149_v34, %v1148_v29 }
 0x108   :  { %887 = vst.msk [vmem:[%s1640_s3 + $0x18] sm:$0xf] %vm880_vm0, %v1011_v31  ;;  %v781_v36 = vmax.f32 %v716_v32, 0.0  ;;  %v601_v37 = vadd.f32 %v1068_v33, %v1531_v16  ;;  %v1151_v39 = vpop.f32.mrf.mxu1 }
 0x109   :  { %v1070_v40 = vpop.f32.mrf.mxu0 }
 0x10a   :  { %v1012_v41 = vpack.c.bf16 %v781_v36, %v781_v36  ;;  %v721_v42 = vadd.f32 %v1150_v38, %v601_v37  ;;  %v1071_v43 = vadd.f32 %v1070_v40, %v1069_v35  ;;  %v1152_v44 = vpop.f32.mrf.mxu1 }
 0x10b   :  { %v1072_v45 = vpop.f32.mrf.mxu0  ;;  %v1153_v48 = vadd.f32 %v1152_v44, %v1151_v39 }
 0x10c   :  { %888 = vst.msk [vmem:[%s1640_s3 + $0x1c] sm:$0xf] %vm880_vm0, %v1012_v41  ;;  %v782_v46 = vmax.f32 %v721_v42, 0.0  ;;  %v604_v47 = vadd.f32 %v1071_v43, %v1531_v16  ;;  %v1154_v49 = vpop.f32.mrf.mxu1 }
 0x10d   :  { %v1073_v50 = vpop.f32.mrf.mxu0 }
 0x10e   :  { %v1013_v51 = vpack.c.bf16 %v782_v46, %v782_v46  ;;  %v724_v52 = vadd.f32 %v1153_v48, %v604_v47  ;;  %v1074_v53 = vadd.f32 %v1073_v50, %v1072_v45  ;;  %v1155_v54 = vpop.f32.mrf.mxu1 }
 0x10f   :  { %v1075_v55 = vpop.f32.mrf.mxu0  ;;  %v1156_v58 = vadd.f32 %v1155_v54, %v1154_v49 }
 0x110   :  { %889 = vst.msk [vmem:[%s1640_s3 + $0x20] sm:$0xf] %vm880_vm0, %v1013_v51  ;;  %v783_v56 = vmax.f32 %v724_v52, 0.0  ;;  %v609_v57 = vadd.f32 %v1074_v53, %v1531_v16  ;;  %v1157_v59 = vpop.f32.mrf.mxu1 }
 0x111   :  { %v1076_v60 = vpop.f32.mrf.mxu0 }
 0x112   :  { %v1014_v61 = vpack.c.bf16 %v783_v56, %v783_v56  ;;  %v729_v62 = vadd.f32 %v1156_v58, %v609_v57  ;;  %v1077_v63 = vadd.f32 %v1076_v60, %v1075_v55  ;;  %v1158_v0 = vpop.f32.mrf.mxu1 }
 0x113   :  { %v1078_v1 = vpop.f32.mrf.mxu0  ;;  %v1159_v4 = vadd.f32 %v1158_v0, %v1157_v59 }
 0x114   :  { %890 = vst.msk [vmem:[%s1640_s3 + $0x24] sm:$0xf] %vm880_vm0, %v1014_v61  ;;  %v784_v2 = vmax.f32 %v729_v62, 0.0  ;;  %v612_v3 = vadd.f32 %v1077_v63, %v1531_v16  ;;  %v1160_v5 = vpop.f32.mrf.mxu1 }
 0x115   :  { %v1079_v6 = vpop.f32.mrf.mxu0 }
 0x116   :  { %v1015_v7 = vpack.c.bf16 %v784_v2, %v784_v2  ;;  %v732_v8 = vadd.f32 %v1159_v4, %v612_v3  ;;  %v1080_v9 = vadd.f32 %v1079_v6, %v1078_v1  ;;  %v1161_v10 = vpop.f32.mrf.mxu1 }
 0x117   :  { %v1081_v11 = vpop.f32.mrf.mxu0  ;;  %v1162_v14 = vadd.f32 %v1161_v10, %v1160_v5 }
 0x118   :  { %891 = vst.msk [vmem:[%s1640_s3 + $0x28] sm:$0xf] %vm880_vm0, %v1015_v7  ;;  %v785_v12 = vmax.f32 %v732_v8, 0.0  ;;  %v617_v13 = vadd.f32 %v1080_v9, %v1531_v16  ;;  %v1163_v15 = vpop.f32.mrf.mxu1 }
 0x119   :  { %v1082_v17 = vpop.f32.mrf.mxu0 }
 0x11a   :  { %v1016_v18 = vpack.c.bf16 %v785_v12, %v785_v12  ;;  %v737_v19 = vadd.f32 %v1162_v14, %v617_v13  ;;  %v1083_v20 = vadd.f32 %v1082_v17, %v1081_v11  ;;  %v1164_v21 = vpop.f32.mrf.mxu1 }
 0x11b   :  { %v1084_v22 = vpop.f32.mrf.mxu0  ;;  %v1165_v25 = vadd.f32 %v1164_v21, %v1163_v15 }
 0x11c   :  { %892 = vst.msk [vmem:[%s1640_s3 + $0x2c] sm:$0xf] %vm880_vm0, %v1016_v18  ;;  %v786_v23 = vmax.f32 %v737_v19, 0.0  ;;  %v620_v24 = vadd.f32 %v1083_v20, %v1531_v16  ;;  %v1166_v26 = vpop.f32.mrf.mxu1 }
 0x11d   :  { %v1085_v27 = vpop.f32.mrf.mxu0 }
 0x11e   :  { %v1017_v28 = vpack.c.bf16 %v786_v23, %v786_v23  ;;  %v740_v29 = vadd.f32 %v1165_v25, %v620_v24  ;;  %v1086_v30 = vadd.f32 %v1085_v27, %v1084_v22  ;;  %v1167_v31 = vpop.f32.mrf.mxu1 }
 0x11f   :  { %v1087_v32 = vpop.f32.mrf.mxu0  ;;  %v1168_v35 = vadd.f32 %v1167_v31, %v1166_v26 }
 0x120   :  { %893 = vst.msk [vmem:[%s1640_s3 + $0x30] sm:$0xf] %vm880_vm0, %v1017_v28  ;;  %v787_v33 = vmax.f32 %v740_v29, 0.0  ;;  %v625_v34 = vadd.f32 %v1086_v30, %v1531_v16  ;;  %v1169_v36 = vpop.f32.mrf.mxu1 }
 0x121   :  { %v1088_v37 = vpop.f32.mrf.mxu0 }
 0x122   :  { %v1018_v38 = vpack.c.bf16 %v787_v33, %v787_v33  ;;  %v745_v39 = vadd.f32 %v1168_v35, %v625_v34  ;;  %v1089_v40 = vadd.f32 %v1088_v37, %v1087_v32  ;;  %v1170_v41 = vpop.f32.mrf.mxu1 }
 0x123   :  { %v1090_v42 = vpop.f32.mrf.mxu0  ;;  %v1171_v45 = vadd.f32 %v1170_v41, %v1169_v36 }
 0x124   :  { %894 = vst.msk [vmem:[%s1640_s3 + $0x34] sm:$0xf] %vm880_vm0, %v1018_v38  ;;  %v788_v43 = vmax.f32 %v745_v39, 0.0  ;;  %v628_v44 = vadd.f32 %v1089_v40, %v1531_v16  ;;  %v1172_v46 = vpop.f32.mrf.mxu1 }
 0x125   :  { %v1091_v47 = vpop.f32.mrf.mxu0 }
 0x126   :  { %v1019_v48 = vpack.c.bf16 %v788_v43, %v788_v43  ;;  %v748_v49 = vadd.f32 %v1171_v45, %v628_v44  ;;  %v1092_v50 = vadd.f32 %v1091_v47, %v1090_v42  ;;  %v1173_v51 = vpop.f32.mrf.mxu1 }
 0x127   :  { %v1093_v52 = vpop.f32.mrf.mxu0  ;;  %v1174_v55 = vadd.f32 %v1173_v51, %v1172_v46 }
 0x128   :  { %895 = vst.msk [vmem:[%s1640_s3 + $0x38] sm:$0xf] %vm880_vm0, %v1019_v48  ;;  %v789_v53 = vmax.f32 %v748_v49, 0.0  ;;  %v633_v54 = vadd.f32 %v1092_v50, %v1531_v16  ;;  %v1175_v56 = vpop.f32.mrf.mxu1 }
 0x129   :  { %v1094_v57 = vpop.f32.mrf.mxu0 }
 0x12a   :  { %v1020_v58 = vpack.c.bf16 %v789_v53, %v789_v53  ;;  %v753_v59 = vadd.f32 %v1174_v55, %v633_v54  ;;  %v1095_v60 = vadd.f32 %v1094_v57, %v1093_v52  ;;  %v1176_v61 = vpop.f32.mrf.mxu1 }
 0x12b   :  { %v1096_v62 = vpop.f32.mrf.mxu0  ;;  %v1177_v1 = vadd.f32 %v1176_v61, %v1175_v56 }
 0x12c   :  { %896 = vst.msk [vmem:[%s1640_s3 + $0x3c] sm:$0xf] %vm880_vm0, %v1020_v58  ;;  %v790_v63 = vmax.f32 %v753_v59, 0.0  ;;  %v636_v0 = vadd.f32 %v1095_v60, %v1531_v16  ;;  %v1178_v2 = vpop.f32.mrf.mxu1 }
 0x12d   :  { %v1097_v3 = vpop.f32.mrf.mxu0 }
 0x12e   :  { %v1021_v4 = vpack.c.bf16 %v790_v63, %v790_v63  ;;  %v756_v5 = vadd.f32 %v1177_v1, %v636_v0  ;;  %v1098_v6 = vadd.f32 %v1097_v3, %v1096_v62  ;;  %v1179_v7 = vpop.f32.mrf.mxu1 }
 0x12f   :  { %v1099_v8 = vpop.f32.mrf.mxu0  ;;  %v1180_v11 = vadd.f32 %v1179_v7, %v1178_v2 }
 0x130   :  { %897 = vst.msk [vmem:[%s1640_s3 + $0x40] sm:$0xf] %vm880_vm0, %v1021_v4  ;;  %v791_v9 = vmax.f32 %v756_v5, 0.0  ;;  %v641_v10 = vadd.f32 %v1098_v6, %v1531_v16  ;;  %v1181_v12 = vpop.f32.mrf.mxu1 }
 0x131   :  { %v1100_v13 = vpop.f32.mrf.mxu0 }
 0x132   :  { %v1022_v14 = vpack.c.bf16 %v791_v9, %v791_v9  ;;  %v761_v15 = vadd.f32 %v1180_v11, %v641_v10  ;;  %v1101_v17 = vadd.f32 %v1100_v13, %v1099_v8  ;;  %v1182_v18 = vpop.f32.mrf.mxu1 }
 0x133   :  { %v1102_v19 = vpop.f32.mrf.mxu0  ;;  %v1183_v22 = vadd.f32 %v1182_v18, %v1181_v12 }
 0x134   :  { %898 = vst.msk [vmem:[%s1640_s3 + $0x44] sm:$0xf] %vm880_vm0, %v1022_v14  ;;  %v792_v20 = vmax.f32 %v761_v15, 0.0  ;;  %v644_v21 = vadd.f32 %v1101_v17, %v1531_v16  ;;  %v1184_v23 = vpop.f32.mrf.mxu1 }
 0x135   :  { %v1103_v24 = vpop.f32.mrf.mxu0 }
 0x136   :  { %v1023_v25 = vpack.c.bf16 %v792_v20, %v792_v20  ;;  %v764_v26 = vadd.f32 %v1183_v22, %v644_v21  ;;  %v1104_v27 = vadd.f32 %v1103_v24, %v1102_v19  ;;  %v1185_v28 = vpop.f32.mrf.mxu1 }
 0x137   :  { %v1105_v29 = vpop.f32.mrf.mxu0  ;;  %v1186_v32 = vadd.f32 %v1185_v28, %v1184_v23 }
 0x138   :  { %899 = vst.msk [vmem:[%s1640_s3 + $0x48] sm:$0xf] %vm880_vm0, %v1023_v25  ;;  %v793_v30 = vmax.f32 %v764_v26, 0.0  ;;  %v649_v31 = vadd.f32 %v1104_v27, %v1531_v16  ;;  %v1187_v33 = vpop.f32.mrf.mxu1 }
 0x139   :  { %v1106_v34 = vpop.f32.mrf.mxu0 }
 0x13a   :  { %v1024_v35 = vpack.c.bf16 %v793_v30, %v793_v30  ;;  %v769_v36 = vadd.f32 %v1186_v32, %v649_v31  ;;  %v1188_v37 = vpop.f32.mrf.mxu1 }
 0x13c   :  { %900 = vst.msk [vmem:[%s1640_s3 + $0x4c] sm:$0xf] %vm880_vm0, %v1024_v35  ;;  %v794_v38 = vmax.f32 %v769_v36, 0.0 }
 0x13e   :  { %v1025_v39 = vpack.c.bf16 %v794_v38, %v794_v38 }
 0x140   :  { %902 = vst.msk [vmem:[%s1640_s3 + $0x50] sm:$0x1] %vm901_vm1, %v1025_v39 }

// kernel: split_q_forward.6
= control target key start
LH: loop header
LB: loop body
LE: loop exit
PB: predicated region body
PF: predicated region fallthrough
CT: control target
= control target key end

     0   :  { %v1248_v34 = vmov 0.0   ;;  %vm1249_vm0 = vmmov 0   ;;  %vm516_vm1 = vcmask 523264   ;;  %vm868_vm2 = vcmask 519168   ;;  %s1647_s1 = inlined_call_operand.vmem [shape: bf16[576,64], index: 1, kind: input, shape index: {}]   ;;  %s1648_s0 = inlined_call_operand.vmem [shape: bf16[98,576], index: 0, kind: input, shape index: {}]   ;;  %s1649_s2 = inlined_call_operand.vmem [shape: f32[1,64], index: 2, kind: input, shape index: {}]   ;;  %s1650_s3 = inlined_call_operand.vmem [shape: bf16[98,64], index: 3, kind: output, shape index: {}]  }
   0x1   :  { %v1165_v0 = vld [vmem:[%s1647_s1 + $0x78] sm:$0xff]   ;;  %v1169_v4 = vld [vmem:[%s1647_s1 + $0x70] sm:$0xff]   ;;  %v1173_v8 = vld [vmem:[%s1647_s1 + $0x68] sm:$0xff]   ;;  %vm881_vm3 = vcmask 516096  }
   0x2   :  { %v1166_v1 = vld [vmem:[%s1647_s1 + $0xf8] sm:$0xff]   ;;  %992 = vmatprep.subr.bf16.mxu0 %v1165_v0  ;;  %v1170_v5 = vld [vmem:[%s1647_s1 + $0xf0] sm:$0xff]   ;;  %v1174_v9 = vld [vmem:[%s1647_s1 + $0xe8] sm:$0xff]  }
   0x3   :  { %v1167_v2 = vld [vmem:[%s1647_s1 + $0x38] sm:$0xff]   ;;  %1050 = vmatprep.subr.bf16.mxu1 %v1166_v1  ;;  %v1171_v6 = vld [vmem:[%s1647_s1 + $0x30] sm:$0xff]   ;;  %v1175_v10 = vld [vmem:[%s1647_s1 + $0x28] sm:$0xff]  }
   0x4   :  { %v1168_v3 = vld [vmem:[%s1647_s1 + $0xb8] sm:$0xff]   ;;  %993 = vmatpush3.bf16.msra.mxu0 %v1167_v2  ;;  %v1172_v7 = vld [vmem:[%s1647_s1 + $0xb0] sm:$0xff]   ;;  %v1176_v11 = vld [vmem:[%s1647_s1 + $0xa8] sm:$0xff]  }
   0x5   :  { %1051 = vmatpush3.bf16.msra.mxu1 %v1168_v3  ;;  %994 = vmatprep.subr.bf16.mxu0 %v1169_v4  ;;  %v1177_v12 = vld [vmem:[%s1647_s1 + $0x60] sm:$0xff]   ;;  %v1181_v16 = vld [vmem:[%s1647_s1 + $0x58] sm:$0xff]   ;;  %v1185_v20 = vld [vmem:[%s1647_s1 + $0x50] sm:$0xff]  }
   0x6   :  { %1052 = vmatprep.subr.bf16.mxu1 %v1170_v5  ;;  %v1178_v13 = vld [vmem:[%s1647_s1 + $0xe0] sm:$0xff]   ;;  %v1182_v17 = vld [vmem:[%s1647_s1 + $0xd8] sm:$0xff]   ;;  %v1186_v21 = vld [vmem:[%s1647_s1 + $0xd0] sm:$0xff]  }
   0x7   :  { %v1179_v14 = vld [vmem:[%s1647_s1 + $0x20] sm:$0xff]   ;;  %v1183_v18 = vld [vmem:[%s1647_s1 + $0x18] sm:$0xff]   ;;  %v1187_v22 = vld [vmem:[%s1647_s1 + $0x10] sm:$0xff]  }
   0x8   :  { %995 = vmatpush3.bf16.msra.mxu0 %v1171_v6  ;;  %v1180_v15 = vld [vmem:[%s1647_s1 + $0xa0] sm:$0xff]   ;;  %v1184_v19 = vld [vmem:[%s1647_s1 + $0x98] sm:$0xff]   ;;  %v1188_v23 = vld [vmem:[%s1647_s1 + $0x90] sm:$0xff]  }
   0x9   :  { %1053 = vmatpush3.bf16.msra.mxu1 %v1172_v7  ;;  %996 = vmatprep.subr.bf16.mxu0 %v1173_v8  ;;  %v1189_v24 = vld [vmem:[%s1647_s1 + $0x48] sm:$0xff]   ;;  %v1193_v28 = vld [vmem:[%s1647_s1 + $0x40] sm:$0xff]   ;;  %v1203_v37 = vld [vmem:[%s1647_s1 + $0x118] sm:$0xff]  }
   0xa   :  { %1054 = vmatprep.subr.bf16.mxu1 %v1174_v9  ;;  %v1190_v25 = vld [vmem:[%s1647_s1 + $0xc8] sm:$0xff]   ;;  %v1194_v29 = vld [vmem:[%s1647_s1 + $0xc0] sm:$0xff]   ;;  %v1214_v43 = vld [vmem:[%s1647_s1 + $0x110] sm:$0xff]  }
   0xb   :  { %v1191_v26 = vld [vmem:[%s1647_s1 + $0x8] sm:$0xff]   ;;  %v1195_v30 = vld [vmem:[%s1647_s1] sm:$0xff]   ;;  %v1212_v44 = vld [vmem:[%s1648_s0 + $0x5c] ss:$20 sps:$4 sm:$0xff]  }
   0xc   :  { %997 = vmatpush3.bf16.msra.mxu0 %v1175_v10  ;;  %v1192_v27 = vld [vmem:[%s1647_s1 + $0x88] sm:$0xff]   ;;  %v1196_v31 = vld [vmem:[%s1647_s1 + $0x80] sm:$0xff]   ;;  %v1217_v48 = vld [vmem:[%s1648_s0 + $0x7c] ss:$20 sps:$4 sm:$0xff]  }
   0xd   :  { %1055 = vmatpush3.bf16.msra.mxu1 %v1176_v11  ;;  %998 = vmatprep.subr.bf16.mxu0 %v1177_v12  ;;  %v1197_v32 = vld [vmem:[%s1648_s0] ss:$20 sps:$4 sm:$0xff]   ;;  %v1199_v33 = vld [vmem:[%s1648_s0 + $0x4] ss:$20 sps:$4 sm:$0xff]   ;;  %v1200_v35 = vld [vmem:[%s1648_s0 + $0x8] ss:$20 sps:$4 sm:$0xff]  }
   0xe   :  { %1056 = vmatprep.subr.bf16.mxu1 %v1178_v13  ;;  %v1202_v36 = vld [vmem:[%s1648_s0 + $0xc] ss:$20 sps:$4 sm:$0xff]   ;;  %570 = vmatprep.mubr.bf16.mxu0 %v1199_v33  ;;  %v1206_v39 = vld [vmem:[%s1648_s0 + $0x34] ss:$20 sps:$4 sm:$0xff]   ;;  %v1209_v41 = vld [vmem:[%s1648_s0 + $0x30] ss:$20 sps:$4 sm:$0xff]  }
   0xf   :  { %658 = vmatprep.mubr.bf16.mxu1 %v1202_v36  ;;  %v1204_v38 = vld [vmem:[%s1648_s0 + $0x2c] ss:$20 sps:$4 sm:$0xff]   ;;  %v1208_v40 = vld [vmem:[%s1648_s0 + $0x28] ss:$20 sps:$4 sm:$0xff]   ;;  %v1215_v46 = vld [vmem:[%s1648_s0 + $0x50] ss:$20 sps:$4 sm:$0xff]  }
  0x10   :  { %999 = vmatpush3.bf16.msra.mxu0 %v1179_v14  ;;  %v1210_v42 = vld [vmem:[%s1648_s0 + $0x54] ss:$20 sps:$4 sm:$0xff]   ;;  %v1216_v47 = vld [vmem:[%s1648_s0 + $0x58] ss:$20 sps:$4 sm:$0xff]   ;;  %v1236_v50 = vld [vmem:[%s1647_s1 + $0x100] sm:$0xff]  }
  0x11   :  { %1057 = vmatpush3.bf16.msra.mxu1 %v1180_v15  ;;  %1000 = vmatprep.subr.bf16.mxu0 %v1181_v16  ;;  %v1223_v45 = vld [vmem:[%s1647_s1 + $0x108] sm:$0xff]   ;;  %v1219_v49 = vld [vmem:[%s1648_s0 + $0x84] ss:$20 sps:$4 sm:$0xff]   ;;  %v1222_v52 = vld [vmem:[%s1648_s0 + $0x80] ss:$20 sps:$4 sm:$0xff]  }
  0x12   :  { %1058 = vmatprep.subr.bf16.mxu1 %v1182_v17  ;;  %v1221_v51 = vld [vmem:[%s1648_s0 + $0x78] ss:$20 sps:$4 sm:$0xff]   ;;  %v1228_v55 = vld [vmem:[%s1648_s0 + $0xa0] ss:$20 sps:$4 sm:$0xff]   ;;  %v1229_v56 = vld [vmem:[%s1648_s0 + $0xa8] ss:$20 sps:$4 sm:$0xff]  }
  0x13   :  { %v1224_v53 = vld [vmem:[%s1648_s0 + $0xa4] ss:$20 sps:$4 sm:$0xff]   ;;  %v1226_v54 = vld [vmem:[%s1648_s0 + $0xac] ss:$20 sps:$4 sm:$0xff]   ;;  %v1232_v58 = vld [vmem:[%s1648_s0 + $0xd4] ss:$20 sps:$4 sm:$0xff]  }
  0x14   :  { %1001 = vmatpush3.bf16.msra.mxu0 %v1183_v18  ;;  %v1230_v57 = vld [vmem:[%s1648_s0 + $0xcc] ss:$20 sps:$4 sm:$0xff]   ;;  %v51_v59 = vld [vmem:[%s1648_s0 + $0xf0] sm:$0x11]  ;;  %v52_v60 = vld [vmem:[%s1648_s0 + $0xf8] sm:$0x11] }
  0x15   :  { %1059 = vmatpush3.bf16.msra.mxu1 %v1184_v19  ;;  %1002 = vmatprep.subr.bf16.mxu0 %v1185_v20  ;;  %v1234_v61 = vld [vmem:[%s1648_s0 + $0xc8] ss:$20 sps:$4 sm:$0xff]   ;;  %v1235_v62 = vld [vmem:[%s1648_s0 + $0xd0] ss:$20 sps:$4 sm:$0xff]   ;;  %v919_v63 = vcombine.high %v51_v59, %v51_v59  ;;  %v921_v0 = vcombine.high %v52_v60, %v52_v60  ;;  %v918_v1 = vcombine.low %v51_v59, %v51_v59  ;;  %v1243_v5 = vld [vmem:[%s1648_s0 + $0x38] ss:$20 sps:$4 sm:$0xff]  }
  0x16   :  { %1060 = vmatprep.subr.bf16.mxu1 %v1186_v21  ;;  %v920_v2 = vcombine.low %v52_v60, %v52_v60  ;;  %v1241_v3 = vld [vmem:[%s1648_s0 + $0x10] ss:$20 sps:$4 sm:$0xff]   ;;  %v1244_v6 = vld [vmem:[%s1648_s0 + $0xd8] ss:$20 sps:$4 sm:$0xff]   ;;  %v1245_v7 = vld [vmem:[%s1648_s0 + $0x60] ss:$20 sps:$4 sm:$0xff]  }
  0x17   :  { %v1242_v4 = vld [vmem:[%s1648_s0 + $0xb0] ss:$20 sps:$4 sm:$0xff]   ;;  %v1246_v8 = vld [vmem:[%s1648_s0 + $0x100] ss:$0 sps:$4 sm:$0x11]  }
  0x18   :  { %1003 = vmatpush3.bf16.msra.mxu0 %v1187_v22  ;;  %v1247_v9 = vld [vmem:[%s1648_s0 + $0x88] ss:$20 sps:$4 sm:$0xff]   ;;  %v1553_v59 = vld [vmem:[%s1649_s2] ss:$0 sm:$0xff] }
  0x19   :  { %1061 = vmatpush3.bf16.msra.mxu1 %v1188_v23  ;;  %1004 = vmatprep.subr.bf16.mxu0 %v1189_v24 }
  0x1a   :  { %1062 = vmatprep.subr.bf16.mxu1 %v1190_v25 }
  0x1c   :  { %1005 = vmatpush3.bf16.msra.mxu0 %v1191_v26 }
  0x1d   :  { %1063 = vmatpush3.bf16.msra.mxu1 %v1192_v27  ;;  %1006 = vmatprep.subr.bf16.mxu0 %v1193_v28 }
  0x1e   :  { %1064 = vmatprep.subr.bf16.mxu1 %v1194_v29 }
  0x20   :  { %1007 = vmatpush3.bf16.msra.mxu0 %v1195_v30 }
  0x21   :  { %1065 = vmatpush3.bf16.msra.mxu1 %v1196_v31  ;;  %1119 = vmatprep.subr.bf16.mxu0 %v1248_v34 }
  0x22   :  { %1155 = vmatprep.subr.bf16.mxu1 %v1248_v34 }
  0x23   :  { %571 = vmatmul.mubr.bf16.vlgmr.msra.gmra.mxu0 %v1197_v32 }
  0x24   :  { %659 = vmatmul.mubr.bf16.vlgmr.msra.gmra.mxu1 %v1200_v35  ;;  %1120 = vmatpush3.bf16.msra.mxu0 %v1203_v37 }
  0x25   :  { %578 = vmatprep.mubr.bf16.mxu0 %v1204_v38  ;;  %1159 = vmatpush3.bf16.msra.mxu1 %v1203_v37 }
  0x26   :  { %666 = vmatprep.mubr.bf16.mxu1 %v1206_v39  ;;  %1121 = vmatprep.subr.bf16.mxu0 %v1248_v34 }
  0x27   :  { %1156 = vmatprep.subr.bf16.mxu1 %v1248_v34 }
  0x28   :  { %1122 = vmatpush3.bf16.msra.mxu0 %v1214_v43 }
  0x29   :  { %1160 = vmatpush3.bf16.msra.mxu1 %v1214_v43  ;;  %1123 = vmatprep.subr.bf16.mxu0 %v1248_v34 }
  0x2a   :  { %1157 = vmatprep.subr.bf16.mxu1 %v1248_v34 }
  0x2b   :  { %579 = vmatmul.mubr.bf16.gmra.mxu0 %v1208_v40 }
  0x2c   :  { %667 = vmatmul.mubr.bf16.gmra.mxu1 %v1209_v41  ;;  %586 = vmatprep.mubr.bf16.mxu0 %v1210_v42 }
  0x2d   :  { %674 = vmatprep.mubr.bf16.mxu1 %v1212_v44  ;;  %1124 = vmatpush3.bf16.msra.mxu0 %v1223_v45 }
  0x2e   :  { %1161 = vmatpush3.bf16.msra.mxu1 %v1223_v45  ;;  %1125 = vmatprep.subr.bf16.mxu0 %v1248_v34 }
  0x2f   :  { %1158 = vmatprep.subr.bf16.mxu1 %v1248_v34 }
  0x31   :  { %1126 = vmatpush3.bf16.msra.mxu0 %v1236_v50 }
  0x32   :  { %1162 = vmatpush3.bf16.msra.mxu1 %v1236_v50 }
  0x33   :  { %587 = vmatmul.mubr.bf16.gmra.mxu0 %v1215_v46 }
  0x34   :  { %675 = vmatmul.mubr.bf16.gmra.mxu1 %v1216_v47  ;;  %594 = vmatprep.mubr.bf16.mxu0 %v1217_v48 }
  0x35   :  { %682 = vmatprep.mubr.bf16.mxu1 %v1219_v49 }
  0x3b   :  { %595 = vmatmul.mubr.bf16.gmra.mxu0 %v1221_v51 }
  0x3c   :  { %683 = vmatmul.mubr.bf16.gmra.mxu1 %v1222_v52  ;;  %602 = vmatprep.mubr.bf16.mxu0 %v1224_v53 }
  0x3d   :  { %690 = vmatprep.mubr.bf16.mxu1 %v1226_v54 }
  0x43   :  { %603 = vmatmul.mubr.bf16.gmra.mxu0 %v1228_v55 }
  0x44   :  { %691 = vmatmul.mubr.bf16.gmra.mxu1 %v1229_v56  ;;  %610 = vmatprep.mubr.bf16.mxu0 %v1230_v57 }
  0x45   :  { %698 = vmatprep.mubr.bf16.mxu1 %v1232_v58 }
  0x4b   :  { %611 = vmatmul.mubr.bf16.gmra.mxu0 %v1234_v61 }
  0x4c   :  { %699 = vmatmul.mubr.bf16.gmra.mxu1 %v1235_v62  ;;  %618 = vmatprep.mubr.bf16.mxu0 %v919_v63 }
  0x4d   :  { %706 = vmatprep.mubr.bf16.mxu1 %v921_v0 }
  0x53   :  { %619 = vmatmul.mubr.bf16.gmra.mxu0 %v918_v1 }
  0x54   :  { %707 = vmatmul.mubr.bf16.gmra.mxu1 %v920_v2  ;;  %1127 = vmatprep.mubr.msk.bf16.mxu0 %vm1249_vm0, %v1248_v34 }
  0x55   :  { %1143 = vmatprep.mubr.msk.bf16.mxu1 %vm1249_vm0, %v1248_v34 }
  0x5b   :  { %1128 = vmatmul.mubr.msk.bf16.vlgmr.msra.gmra.mxu0 %vm516_vm1, %v1241_v3 }
  0x5c   :  { %1144 = vmatmul.mubr.msk.bf16.vlgmr.msra.gmra.mxu1 %vm516_vm1, %v1242_v4  ;;  %1131 = vmatprep.mubr.msk.bf16.mxu0 %vm1249_vm0, %v1248_v34 }
  0x5d   :  { %1147 = vmatprep.mubr.msk.bf16.mxu1 %vm1249_vm0, %v1248_v34 }
  0x63   :  { %1132 = vmatmul.mubr.msk.bf16.gmra.mxu0 %vm516_vm1, %v1243_v5 }
  0x64   :  { %1148 = vmatmul.mubr.msk.bf16.gmra.mxu1 %vm516_vm1, %v1244_v6  ;;  %1135 = vmatprep.mubr.msk.bf16.mxu0 %vm1249_vm0, %v1248_v34 }
  0x65   :  { %1151 = vmatprep.mubr.msk.bf16.mxu1 %vm1249_vm0, %v1248_v34 }
  0x6b   :  { %1136 = vmatmul.mubr.msk.bf16.gmra.mxu0 %vm516_vm1, %v1245_v7 }
  0x6c   :  { %1152 = vmatmul.mubr.msk.bf16.gmra.mxu1 %vm516_vm1, %v1246_v8  ;;  %1139 = vmatprep.mubr.msk.bf16.mxu0 %vm1249_vm0, %v1248_v34 }
  0x73   :  { %1140 = vmatmul.mubr.msk.bf16.gmra.mxu0 %vm516_vm1, %v1247_v9 }
  0xe3   :  { %v1008_v10 = vpop.f32.mrf.mxu0 }
  0xe4   :  { %v1066_v11 = vpop.f32.mrf.mxu1 }
  0xe5   :  { %v1009_v12 = vpop.f32.mrf.mxu0 }
  0xe6   :  { %v1067_v13 = vpop.f32.mrf.mxu1  ;;  %v1010_v57 = vadd.f32 %v1009_v12, %v1008_v10 }
  0xe7   :  { %v1011_v14 = vpop.f32.mrf.mxu0  ;;  %v1068_v2 = vadd.f32 %v1067_v13, %v1066_v11 }
  0xe8   :  { %v1069_v15 = vpop.f32.mrf.mxu1  ;;  %v573_v1 = vadd.f32 %v1010_v57, %v1553_v59 }
  0xe9   :  { %v1012_v16 = vpop.f32.mrf.mxu0 }
  0xea   :  { %v1070_v17 = vpop.f32.mrf.mxu1  ;;  %v1013_v63 = vadd.f32 %v1012_v16, %v1011_v14  ;;  %v661_v14 = vadd.f32 %v1068_v2, %v573_v1 }
  0xeb   :  { %v1014_v18 = vpop.f32.mrf.mxu0  ;;  %v1071_v10 = vadd.f32 %v1070_v17, %v1069_v15 }
  0xec   :  { %v1506_v19 = vpop.f32.mrf.mxu1  ;;  %v576_v9 = vadd.f32 %v1013_v63, %v1553_v59 }
  0xed   :  { %v1015_v20 = vpop.f32.mrf.mxu0 }
  0xee   :  { %v1508_v21 = vpop.f32.mrf.mxu1  ;;  %v1016_v12 = vadd.f32 %v1015_v20, %v1014_v18  ;;  %v664_v15 = vadd.f32 %v1071_v10, %v576_v9 }
  0xef   :  { %v1510_v22 = vpop.f32.mrf.mxu0 }
  0xf0   :  { %v1512_v23 = vpop.f32.mrf.mxu1 }
  0xf1   :  { %v1514_v24 = vpop.f32.mrf.mxu0 }
  0xf2   :  { %v1516_v25 = vpop.f32.mrf.mxu1  ;;  %v1019_v17 = vadd.f32 %v1514_v24, %v1510_v22 }
  0xf3   :  { %v1518_v26 = vpop.f32.mrf.mxu0 }
  0xf4   :  { %v1520_v27 = vpop.f32.mrf.mxu1  ;;  %v584_v24 = vadd.f32 %v1019_v17, %v1553_v59 }
  0xf5   :  { %v1522_v28 = vpop.f32.mrf.mxu0 }
  0xf6   :  { %v1524_v29 = vpop.f32.mrf.mxu1 }
  0xf7   :  { %v1526_v30 = vpop.f32.mrf.mxu0 }
  0xf8   :  { %v1528_v31 = vpop.f32.mrf.mxu1 }
  0xf9   :  { %v1530_v32 = vpop.f32.mrf.mxu0 }
  0xfa   :  { %v1532_v33 = vpop.f32.mrf.mxu1 }
  0xfb   :  { %v1534_v34 = vpop.f32.mrf.mxu0 }
  0xfc   :  { %v1536_v35 = vpop.f32.mrf.mxu1 }
  0xfd   :  { %v1538_v36 = vpop.f32.mrf.mxu0 }
  0xfe   :  { %v1540_v37 = vpop.f32.mrf.mxu1 }
  0xff   :  { %v1542_v38 = vpop.f32.mrf.mxu0 }
 0x100   :  { %v1544_v39 = vpop.f32.mrf.mxu1 }
 0x101   :  { %1651 = vst [vmem:[#allocation2_spill] sm:$0xff] %v1544_v39  ;;  %v1546_v40 = vpop.f32.mrf.mxu0 }
 0x102   :  { %1652 = vst [vmem:[#allocation3_spill] sm:$0xff] %v1546_v40  ;;  %v1548_v41 = vpop.f32.mrf.mxu1 }
 0x103   :  { %1653 = vst [vmem:[#allocation4_spill] sm:$0xff] %v1548_v41  ;;  %v1032_v42 = vpop.f32.mrf.mxu0 }
 0x104   :  { %v1090_v43 = vpop.f32.mrf.mxu1 }
 0x105   :  { %v1033_v44 = vpop.f32.mrf.mxu0 }
 0x106   :  { %v1091_v45 = vpop.f32.mrf.mxu1  ;;  %v1034_v60 = vadd.f32 %v1033_v44, %v1032_v42 }
 0x107   :  { %v1035_v46 = vpop.f32.mrf.mxu0  ;;  %v1092_v5 = vadd.f32 %v1091_v45, %v1090_v43  ;;  %v581_v43 = vadd.f32 %v1016_v12, %v1553_v59  ;;  %v1074_v45 = vadd.f32 %v1508_v21, %v1506_v19  ;;  %v1077_v19 = vadd.f32 %v1516_v25, %v1512_v23 }
 0x108   :  { %v1093_v47 = vpop.f32.mrf.mxu1  ;;  %v605_v4 = vadd.f32 %v1034_v60, %v1553_v59 }
 0x109   :  { %v1036_v48 = vpop.f32.mrf.mxu0  ;;  %v669_v22 = vadd.f32 %v1074_v45, %v581_v43 }
 0x10a   :  { %v1094_v49 = vpop.f32.mrf.mxu1  ;;  %v1037_v6 = vadd.f32 %v1036_v48, %v1035_v46  ;;  %v693_v13 = vadd.f32 %v1092_v5, %v605_v4 }
 0x10b   :  { %v1038_v50 = vpop.f32.mrf.mxu0  ;;  %v1095_v57 = vadd.f32 %v1094_v49, %v1093_v47 }
 0x10c   :  { %v1096_v51 = vpop.f32.mrf.mxu1  ;;  %v608_v16 = vadd.f32 %v1037_v6, %v1553_v59 }
 0x10d   :  { %v1039_v52 = vpop.f32.mrf.mxu0 }
 0x10e   :  { %v1097_v53 = vpop.f32.mrf.mxu1  ;;  %v1040_v44 = vadd.f32 %v1039_v52, %v1038_v50  ;;  %v696_v60 = vadd.f32 %v1095_v57, %v608_v16 }
 0x10f   :  { %v1041_v54 = vpop.f32.mrf.mxu0  ;;  %v1098_v20 = vadd.f32 %v1097_v53, %v1096_v51 }
 0x110   :  { %v1099_v55 = vpop.f32.mrf.mxu1  ;;  %v613_v18 = vadd.f32 %v1040_v44, %v1553_v59 }
 0x111   :  { %v1042_v56 = vpop.f32.mrf.mxu0 }
 0x112   :  { %v1100_v58 = vpop.f32.mrf.mxu1  ;;  %v1043_v49 = vadd.f32 %v1042_v56, %v1041_v54  ;;  %v701_v54 = vadd.f32 %v1098_v20, %v613_v18 }
 0x113   :  { %v1044_v61 = vpop.f32.mrf.mxu0  ;;  %v1101_v23 = vadd.f32 %v1100_v58, %v1099_v55  ;;  %v1080_v55 = vadd.f32 %v1524_v29, %v1520_v27 }
 0x114   :  { %v1555_v62 = vpop.f32.mrf.mxu1  ;;  %v616_v56 = vadd.f32 %v1043_v49, %v1553_v59 }
 0x115   :  { %v1045_v0 = vpop.f32.mrf.mxu0 }
 0x116   :  { %v1558_v3 = vpop.f32.mrf.mxu1  ;;  %v1046_v25 = vadd.f32 %v1045_v0, %v1044_v61  ;;  %v672_v0 = vadd.f32 %v1077_v19, %v584_v24  ;;  %v704_v29 = vadd.f32 %v1101_v23, %v616_v56  ;;  %v1655_v24 = vld [vmem:[#allocation2_spill] sm:$0xff] }
 0x117   :  { %v1047_v7 = vpop.f32.mrf.mxu0 }
 0x118   :  { %v1105_v8 = vpop.f32.mrf.mxu1  ;;  %v621_v44 = vadd.f32 %v1046_v25, %v1553_v59 }
 0x119   :  { %v1048_v42 = vpop.f32.mrf.mxu0  ;;  %v1025_v8 = vadd.f32 %v1530_v32, %v1526_v30  ;;  %v1104_v30 = vadd.f32 %v1558_v3, %v1555_v62  ;;  %v1028_v62 = vadd.f32 %v1538_v36, %v1534_v34 }
 0x11a   :  { %v1106_v41 = vpop.f32.mrf.mxu1 }
 0x11b   :  { %v748_v11 = vpop.f32.mrf.mxu0  ;;  %v709_v17 = vadd.f32 %v1104_v30, %v621_v44 }
 0x11c   :  { %v749_v39 = vadd.f32 %v748_v11, %v661_v14  ;;  %v780_v40 = vpop.f32.mrf.mxu1  ;;  %v592_v11 = vadd.f32 %v1025_v8, %v1553_v59 }
 0x11d   :  { %v781_v46 = vadd.f32 %v780_v40, %v693_v13  ;;  %v1129_v48 = vpop.f32.mrf.mxu0  ;;  %v1083_v13 = vadd.f32 %v1532_v33, %v1528_v31 }
 0x11e   :  { %v802_v41 = vmax.f32 %v749_v39, 0.0  ;;  %v1145_v47 = vpop.f32.mrf.mxu1  ;;  %v1022_v39 = vadd.f32 %v1522_v28, %v1518_v26 }
 0x11f   :  { %v810_v50 = vmax.f32 %v781_v46, 0.0  ;;  %v751_v52 = vpop.f32.mrf.mxu0  ;;  %v680_v49 = vadd.f32 %v1083_v13, %v592_v11 }
 0x120   :  { %v979_v63 = vpack.c.bf16 %v802_v41, %v802_v41  ;;  %v752_v1 = vadd.f32 %v751_v52, %v664_v15  ;;  %v783_v2 = vpop.f32.mrf.mxu1  ;;  %v589_v42 = vadd.f32 %v1022_v39, %v1553_v59  ;;  %v1086_v52 = vadd.f32 %v1540_v37, %v1536_v35  ;;  %v1656_v39 = vld [vmem:[#allocation4_spill] sm:$0xff] }
 0x121   :  { %v987_v21 = vpack.c.bf16 %v810_v50, %v810_v50  ;;  %v784_v40 = vadd.f32 %v783_v2, %v696_v60  ;;  %v1130_v4 = vpop.f32.mrf.mxu0  ;;  %v597_v50 = vadd.f32 %v1028_v62, %v1553_v59  ;;  %v1654_v60 = vld [vmem:[#allocation3_spill] sm:$0xff] }
 0x122   :  { %869 = vst.msk [vmem:[%s1650_s3] sm:$0xf] %vm868_vm2, %v979_v63  ;;  %v803_v51 = vmax.f32 %v752_v1, 0.0  ;;  %v1146_v53 = vpop.f32.mrf.mxu1  ;;  %v677_v15 = vadd.f32 %v1080_v55, %v589_v42  ;;  %v1031_v63 = vadd.f32 %v1654_v60, %v1542_v38 }
 0x123   :  { %877 = vst.msk [vmem:[%s1650_s3 + $0x20] sm:$0xf] %vm868_vm2, %v987_v21  ;;  %v811_v5 = vmax.f32 %v784_v40, 0.0  ;;  %v756_v6 = vpop.f32.mrf.mxu0 }
 0x124   :  { %v980_v26 = vpack.c.bf16 %v803_v51, %v803_v51  ;;  %v757_v28 = vadd.f32 %v756_v6, %v669_v22  ;;  %v788_v7 = vpop.f32.mrf.mxu1  ;;  %v600_v22 = vadd.f32 %v1031_v63, %v1553_v59  ;;  %v1089_v51 = vadd.f32 %v1656_v39, %v1655_v24 }
 0x125   :  { %v988_v9 = vpack.c.bf16 %v811_v5, %v811_v5  ;;  %v789_v10 = vadd.f32 %v788_v7, %v701_v54  ;;  %v1133_v12 = vpop.f32.mrf.mxu0  ;;  %v685_v54 = vadd.f32 %v1086_v52, %v597_v50 }
 0x126   :  { %870 = vst.msk [vmem:[%s1650_s3 + $0x4] sm:$0xf] %vm868_vm2, %v980_v26  ;;  %v804_v58 = vmax.f32 %v757_v28, 0.0  ;;  %v1149_v61 = vpop.f32.mrf.mxu1  ;;  %v688_v26 = vadd.f32 %v1089_v51, %v600_v22 }
 0x127   :  { %878 = vst.msk [vmem:[%s1650_s3 + $0x24] sm:$0xf] %vm868_vm2, %v988_v9  ;;  %v812_v32 = vmax.f32 %v789_v10, 0.0  ;;  %v759_v27 = vpop.f32.mrf.mxu0 }
 0x128   :  { %v981_v14 = vpack.c.bf16 %v804_v58, %v804_v58  ;;  %v760_v16 = vadd.f32 %v759_v27, %v672_v0  ;;  %v791_v57 = vpop.f32.mrf.mxu1 }
 0x129   :  { %v989_v43 = vpack.c.bf16 %v812_v32, %v812_v32  ;;  %v792_v45 = vadd.f32 %v791_v57, %v704_v29  ;;  %v1134_v46 = vpop.f32.mrf.mxu0 }
 0x12a   :  { %871 = vst.msk [vmem:[%s1650_s3 + $0x8] sm:$0xf] %vm868_vm2, %v981_v14  ;;  %v805_v3 = vmax.f32 %v760_v16, 0.0  ;;  %v1150_v48 = vpop.f32.mrf.mxu1 }
 0x12b   :  { %879 = vst.msk [vmem:[%s1650_s3 + $0x28] sm:$0xf] %vm868_vm2, %v989_v43  ;;  %v813_v31 = vmax.f32 %v792_v45, 0.0  ;;  %v764_v33 = vpop.f32.mrf.mxu0 }
 0x12c   :  { %v982_v18 = vpack.c.bf16 %v805_v3, %v805_v3  ;;  %v765_v20 = vadd.f32 %v764_v33, %v677_v15  ;;  %v796_v41 = vpop.f32.mrf.mxu1 }
 0x12d   :  { %v990_v34 = vpack.c.bf16 %v813_v31, %v813_v31  ;;  %v797_v36 = vadd.f32 %v796_v41, %v709_v17  ;;  %v1137_v47 = vpop.f32.mrf.mxu0 }
 0x12e   :  { %872 = vst.msk [vmem:[%s1650_s3 + $0xc] sm:$0xf] %vm868_vm2, %v982_v18  ;;  %v806_v1 = vmax.f32 %v765_v20, 0.0  ;;  %v1153_v2 = vpop.f32.mrf.mxu1 }
 0x12f   :  { %880 = vst.msk [vmem:[%s1650_s3 + $0x2c] sm:$0xf] %vm868_vm2, %v990_v34  ;;  %v814_v19 = vmax.f32 %v797_v36, 0.0  ;;  %v767_v21 = vpop.f32.mrf.mxu0 }
 0x130   :  { %v983_v40 = vpack.c.bf16 %v806_v1, %v806_v1  ;;  %v768_v35 = vadd.f32 %v767_v21, %v680_v49  ;;  %v799_v37 = vpop.f32.mrf.mxu1 }
 0x131   :  { %v991_v4 = vpack.c.bf16 %v814_v19, %v814_v19  ;;  %v1138_v38 = vpop.f32.mrf.mxu0 }
 0x132   :  { %873 = vst.msk [vmem:[%s1650_s3 + $0x10] sm:$0xf] %vm868_vm2, %v983_v40  ;;  %v807_v53 = vmax.f32 %v768_v35, 0.0  ;;  %v1154_v56 = vpop.f32.mrf.mxu1 }
 0x133   :  { %882 = vst.msk [vmem:[%s1650_s3 + $0x30] sm:$0x1] %vm881_vm3, %v991_v4  ;;  %v772_v23 = vpop.f32.mrf.mxu0 }
 0x134   :  { %v984_v25 = vpack.c.bf16 %v807_v53, %v807_v53  ;;  %v773_v5 = vadd.f32 %v772_v23, %v685_v54 }
 0x135   :  { %v1141_v6 = vpop.f32.mrf.mxu0 }
 0x136   :  { %874 = vst.msk [vmem:[%s1650_s3 + $0x14] sm:$0xf] %vm868_vm2, %v984_v25  ;;  %v808_v59 = vmax.f32 %v773_v5, 0.0 }
 0x137   :  { %v775_v28 = vpop.f32.mrf.mxu0 }
 0x138   :  { %v985_v7 = vpack.c.bf16 %v808_v59, %v808_v59  ;;  %v776_v8 = vadd.f32 %v775_v28, %v688_v26 }
 0x139   :  { %v1142_v9 = vpop.f32.mrf.mxu0 }
 0x13a   :  { %875 = vst.msk [vmem:[%s1650_s3 + $0x18] sm:$0xf] %vm868_vm2, %v985_v7  ;;  %v809_v10 = vmax.f32 %v776_v8, 0.0 }
 0x13c   :  { %v986_v12 = vpack.c.bf16 %v809_v10, %v809_v10 }
 0x13e   :  { %876 = vst.msk [vmem:[%s1650_s3 + $0x1c] sm:$0xf] %vm868_vm2, %v986_v12 }

// kernel: split_q_forward.7
= control target key start
LH: loop header
LB: loop body
LE: loop exit
PB: predicated region body
PF: predicated region fallthrough
CT: control target
= control target key end

     0   :  { %v432_v35 = vlaneseq  ;;  %v4444_v36 = vmov 1966171168   ;;  %s6081_s0 = inlined_call_operand.vmem [shape: bf16[2,3136], index: 0, kind: input, shape index: {}]   ;;  %s6082_s1 = inlined_call_operand.vmem [shape: bf16[3136,256], index: 1, kind: input, shape index: {}]   ;;  %s6083_s2 = inlined_call_operand.vmem [shape: f32[1,256], index: 2, kind: input, shape index: {}]   ;;  %s6084_s3 = inlined_call_operand.vmem [shape: f32[256,5], index: 3, kind: input, shape index: {}]   ;;  %s6085_s4 = inlined_call_operand.vmem [shape: f32[256,5], index: 4, kind: input, shape index: {}]   ;;  %s6086_s5 = inlined_call_operand.vmem [shape: f32[256,5], index: 5, kind: input, shape index: {}]   ;;  %s6087_s6 = inlined_call_operand.vmem [shape: f32[1,5], index: 6, kind: input, shape index: {}]   ;;  %s6088_s7 = inlined_call_operand.vmem [shape: f32[1,5], index: 7, kind: input, shape index: {}]   ;;  %s6089_s8 = inlined_call_operand.vmem [shape: f32[1,5], index: 8, kind: input, shape index: {}]   ;;  %s6090_s9 = inlined_call_operand.hbm [shape: f32[2,4], index: 9, kind: output, shape index: {}]  }
   0x1   :  { %v3831_v0 = vld [vmem:[%s6082_s1 + $0x74] ss:$8 sps:$4 sm:$0xff]   ;;  %v3833_v1 = vld [vmem:[%s6082_s1 + $0x70] ss:$8 sps:$4 sm:$0xff]   ;;  %v3837_v4 = vld [vmem:[%s6082_s1 + $0x64] ss:$8 sps:$4 sm:$0xff]   ;;  %v448_v37 = vunpack.c.l.s4 %v4444_v36 }
   0x2   :  { %2595 = vmatprep.subr.bf16.mxu0 %v3831_v0  ;;  %v3834_v2 = vld [vmem:[%s6082_s1 + $0x174] ss:$8 sps:$4 sm:$0xff]   ;;  %v3836_v3 = vld [vmem:[%s6082_s1 + $0x170] ss:$8 sps:$4 sm:$0xff]   ;;  %v3839_v5 = vld [vmem:[%s6082_s1 + $0x60] ss:$8 sps:$4 sm:$0xff]  }
   0x3   :  { %2596 = vmatpush1.bf16.msra.mxu0 %v3833_v1  ;;  %2636 = vmatprep.subr.bf16.mxu1 %v3834_v2  ;;  %v3840_v6 = vld [vmem:[%s6082_s1 + $0x164] ss:$8 sps:$4 sm:$0xff]   ;;  %v3842_v7 = vld [vmem:[%s6082_s1 + $0x160] ss:$8 sps:$4 sm:$0xff]   ;;  %v3843_v8 = vld [vmem:[%s6082_s1 + $0x54] ss:$8 sps:$4 sm:$0xff]   ;;  %v449_v43 = vunpack.c.0.s8 %v448_v37 }
   0x4   :  { %2637 = vmatpush1.bf16.msra.mxu1 %v3836_v3  ;;  %2597 = vmatprep.subr.bf16.mxu0 %v3837_v4  ;;  %v3845_v9 = vld [vmem:[%s6082_s1 + $0x50] ss:$8 sps:$4 sm:$0xff]   ;;  %v3846_v10 = vld [vmem:[%s6082_s1 + $0x154] ss:$8 sps:$4 sm:$0xff]   ;;  %v3849_v11 = vld [vmem:[%s6082_s1 + $0x44] ss:$8 sps:$4 sm:$0xff]  }
   0x5   :  { %2638 = vmatprep.subr.bf16.mxu1 %v3840_v6  ;;  %v3848_v12 = vld [vmem:[%s6082_s1 + $0x150] ss:$8 sps:$4 sm:$0xff]   ;;  %v3852_v13 = vld [vmem:[%s6082_s1 + $0x144] ss:$8 sps:$4 sm:$0xff]   ;;  %v3851_v14 = vld [vmem:[%s6082_s1 + $0x40] ss:$8 sps:$4 sm:$0xff]  }
   0x6   :  { %v3855_v15 = vld [vmem:[%s6082_s1 + $0x34] ss:$8 sps:$4 sm:$0xff]   ;;  %v3854_v16 = vld [vmem:[%s6082_s1 + $0x140] ss:$8 sps:$4 sm:$0xff]   ;;  %v3857_v18 = vld [vmem:[%s6082_s1 + $0x30] ss:$8 sps:$4 sm:$0xff]  }
   0x7   :  { %2598 = vmatpush1.bf16.msra.mxu0 %v3839_v5  ;;  %v3858_v17 = vld [vmem:[%s6082_s1 + $0x134] ss:$8 sps:$4 sm:$0xff]   ;;  %v3861_v19 = vld [vmem:[%s6082_s1 + $0x24] ss:$8 sps:$4 sm:$0xff]   ;;  %v3860_v20 = vld [vmem:[%s6082_s1 + $0x130] ss:$8 sps:$4 sm:$0xff]  }
   0x8   :  { %2599 = vmatprep.subr.bf16.mxu0 %v3843_v8  ;;  %2639 = vmatpush1.bf16.msra.mxu1 %v3842_v7  ;;  %v3864_v21 = vld [vmem:[%s6082_s1 + $0x124] ss:$8 sps:$4 sm:$0xff]   ;;  %v3863_v22 = vld [vmem:[%s6082_s1 + $0x20] ss:$8 sps:$4 sm:$0xff]   ;;  %v3867_v23 = vld [vmem:[%s6082_s1 + $0x14] ss:$8 sps:$4 sm:$0xff]  }
   0x9   :  { %2640 = vmatprep.subr.bf16.mxu1 %v3846_v10  ;;  %v3866_v24 = vld [vmem:[%s6082_s1 + $0x120] ss:$8 sps:$4 sm:$0xff]   ;;  %v3870_v25 = vld [vmem:[%s6082_s1 + $0x114] ss:$8 sps:$4 sm:$0xff]   ;;  %v3869_v26 = vld [vmem:[%s6082_s1 + $0x10] ss:$8 sps:$4 sm:$0xff]  }
   0xa   :  { %v3873_v27 = vld [vmem:[%s6082_s1 + $0x4] ss:$8 sps:$4 sm:$0xff]   ;;  %v3872_v28 = vld [vmem:[%s6082_s1 + $0x110] ss:$8 sps:$4 sm:$0xff]   ;;  %v3875_v30 = vld [vmem:[%s6082_s1] ss:$8 sps:$4 sm:$0xff]  }
   0xb   :  { %2600 = vmatpush1.bf16.msra.mxu0 %v3845_v9  ;;  %v3876_v29 = vld [vmem:[%s6082_s1 + $0x104] ss:$8 sps:$4 sm:$0xff]   ;;  %v3879_v31 = vld [vmem:[%s6082_s1 + $0xf4] ss:$8 sps:$4 sm:$0xff]   ;;  %v3878_v32 = vld [vmem:[%s6082_s1 + $0x100] ss:$8 sps:$4 sm:$0xff]  }
   0xc   :  { %2601 = vmatprep.subr.bf16.mxu0 %v3849_v11  ;;  %2641 = vmatpush1.bf16.msra.mxu1 %v3848_v12  ;;  %v3882_v33 = vld [vmem:[%s6082_s1 + $0x1f4] ss:$8 sps:$4 sm:$0xff]   ;;  %v3881_v34 = vld [vmem:[%s6082_s1 + $0xf0] ss:$8 sps:$4 sm:$0xff]   ;;  %v3885_v38 = vld [vmem:[%s6082_s1 + $0xe4] ss:$8 sps:$4 sm:$0xff]  }
   0xd   :  { %2642 = vmatprep.subr.bf16.mxu1 %v3852_v13  ;;  %v3884_v39 = vld [vmem:[%s6082_s1 + $0x1f0] ss:$8 sps:$4 sm:$0xff]   ;;  %v3888_v40 = vld [vmem:[%s6082_s1 + $0x1e4] ss:$8 sps:$4 sm:$0xff]   ;;  %v3887_v41 = vld [vmem:[%s6082_s1 + $0xe0] ss:$8 sps:$4 sm:$0xff]  }
   0xe   :  { %v4615_v42 = vshrl.u32 %v432_v35, 7  ;;  %v3891_v44 = vld [vmem:[%s6082_s1 + $0xd4] ss:$8 sps:$4 sm:$0xff]   ;;  %v3890_v45 = vld [vmem:[%s6082_s1 + $0x1e0] ss:$8 sps:$4 sm:$0xff]  }
   0xf   :  { %2602 = vmatpush1.bf16.msra.mxu0 %v3851_v14  ;;  %v3894_v46 = vld [vmem:[%s6082_s1 + $0x1d4] ss:$8 sps:$4 sm:$0xff]   ;;  %v3893_v47 = vld [vmem:[%s6082_s1 + $0xd0] ss:$8 sps:$4 sm:$0xff]   ;;  %v3897_v49 = vld [vmem:[%s6082_s1 + $0xc4] ss:$8 sps:$4 sm:$0xff]  }
  0x10   :  { %2603 = vmatprep.subr.bf16.mxu0 %v3855_v15  ;;  %2643 = vmatpush1.bf16.msra.mxu1 %v3854_v16  ;;  %v4630_v48 = vsub.s32 %v449_v43, %v4615_v42  ;;  %v3896_v50 = vld [vmem:[%s6082_s1 + $0x1d0] ss:$8 sps:$4 sm:$0xff]   ;;  %v3900_v51 = vld [vmem:[%s6082_s1 + $0x1c4] ss:$8 sps:$4 sm:$0xff]   ;;  %v3899_v53 = vld [vmem:[%s6082_s1 + $0xc0] ss:$8 sps:$4 sm:$0xff]  }
  0x11   :  { %2644 = vmatprep.subr.bf16.mxu1 %v3858_v17  ;;  %v34_v52 = vld [vmem:[%s6081_s0] sm:$0xff]  ;;  %v3903_v55 = vld [vmem:[%s6082_s1 + $0xb4] ss:$8 sps:$4 sm:$0xff]   ;;  %v3905_v59 = vld [vmem:[%s6082_s1 + $0xb0] ss:$8 sps:$4 sm:$0xff]  }
  0x12   :  { %v453_v54 = vrot.slane %v34_v52, %v4630_v48  ;;  %v3902_v56 = vld [vmem:[%s6082_s1 + $0x1c0] ss:$8 sps:$4 sm:$0xff]   ;;  %v3906_v58 = vld [vmem:[%s6082_s1 + $0x1b4] ss:$8 sps:$4 sm:$0xff]   ;;  %v3909_v61 = vld [vmem:[%s6082_s1 + $0xa4] ss:$8 sps:$4 sm:$0xff]   ;;  %v446_v63 = vcombine.high %v34_v52, %v34_v52 }
  0x13   :  { %2604 = vmatpush1.bf16.msra.mxu0 %v3857_v18  ;;  %v3908_v62 = vld [vmem:[%s6082_s1 + $0x1b0] ss:$8 sps:$4 sm:$0xff]   ;;  %v3912_v1 = vld [vmem:[%s6082_s1 + $0x1a4] ss:$8 sps:$4 sm:$0xff]   ;;  %v3911_v2 = vld [vmem:[%s6082_s1 + $0xa0] ss:$8 sps:$4 sm:$0xff]  }
  0x14   :  { %2605 = vmatprep.subr.bf16.mxu0 %v3861_v19  ;;  %2645 = vmatpush1.bf16.msra.mxu1 %v3860_v20  ;;  %v461_v57 = vcombine.high %v453_v54, %v453_v54  ;;  %v3915_v3 = vld [vmem:[%s6082_s1 + $0x94] ss:$8 sps:$4 sm:$0xff]   ;;  %v3914_v4 = vld [vmem:[%s6082_s1 + $0x1a0] ss:$8 sps:$4 sm:$0xff]   ;;  %v4680_v5 = vrot.slane %v446_v63, %v4630_v48  ;;  %v3917_v7 = vld [vmem:[%s6082_s1 + $0x90] ss:$8 sps:$4 sm:$0xff]   ;;  %v469_v13 = vrot.slane %v453_v54, %v4630_v48 }
  0x15   :  { %2646 = vmatprep.subr.bf16.mxu1 %v3864_v21  ;;  %v3918_v6 = vld [vmem:[%s6082_s1 + $0x194] ss:$8 sps:$4 sm:$0xff]   ;;  %v3921_v8 = vld [vmem:[%s6082_s1 + $0x84] ss:$8 sps:$4 sm:$0xff]   ;;  %v3920_v9 = vld [vmem:[%s6082_s1 + $0x190] ss:$8 sps:$4 sm:$0xff]  }
  0x16   :  { %v483_v60 = vrot.slane %v461_v57, %v4630_v48  ;;  %v462_v10 = vcombine.high %v4680_v5, %v4680_v5  ;;  %v3924_v11 = vld [vmem:[%s6082_s1 + $0x184] ss:$8 sps:$4 sm:$0xff]   ;;  %v3923_v12 = vld [vmem:[%s6082_s1 + $0x80] ss:$8 sps:$4 sm:$0xff]   ;;  %v3930_v14 = vld [vmem:[%s6082_s1 + $0x274] ss:$8 sps:$4 sm:$0xff]   ;;  %v491_v19 = vcombine.high %v469_v13, %v469_v13 }
  0x17   :  { %2606 = vmatpush1.bf16.msra.mxu0 %v3863_v22  ;;  %v3927_v15 = vld [vmem:[%s6082_s1 + $0x180] ss:$8 sps:$4 sm:$0xff]   ;;  %v3933_v17 = vld [vmem:[%s6082_s1 + $0x374] ss:$8 sps:$4 sm:$0xff]   ;;  %v3928_v18 = vld [vmem:[%s6082_s1 + $0x270] ss:$8 sps:$4 sm:$0xff]  }
  0x18   :  { %2607 = vmatprep.subr.bf16.mxu0 %v3867_v23  ;;  %2647 = vmatpush1.bf16.msra.mxu1 %v3866_v24  ;;  %v493_v0 = vcombine.high %v483_v60, %v483_v60  ;;  %v490_v16 = vrot.slane %v462_v10, %v4630_v48  ;;  %v3936_v20 = vld [vmem:[%s6082_s1 + $0x264] ss:$8 sps:$4 sm:$0xff]   ;;  %v3931_v21 = vld [vmem:[%s6082_s1 + $0x370] ss:$8 sps:$4 sm:$0xff]   ;;  %v3934_v24 = vld [vmem:[%s6082_s1 + $0x260] ss:$8 sps:$4 sm:$0xff]  }
  0x19   :  { %2648 = vmatprep.subr.bf16.mxu1 %v3870_v25  ;;  %2627 = vmatprep.mubr.bf16.mxu0 %v483_v60  ;;  %v3939_v23 = vld [vmem:[%s6082_s1 + $0x364] ss:$8 sps:$4 sm:$0xff]   ;;  %v3942_v25 = vld [vmem:[%s6082_s1 + $0x254] ss:$8 sps:$4 sm:$0xff]   ;;  %v3952_v36 = vld [vmem:[%s6082_s1 + $0x230] ss:$8 sps:$4 sm:$0xff]  }
  0x1a   :  { %2668 = vmatprep.mubr.bf16.mxu1 %v493_v0  ;;  %v494_v22 = vcombine.high %v490_v16, %v490_v16  ;;  %v3957_v35 = vld [vmem:[%s6082_s1 + $0x334] ss:$8 sps:$4 sm:$0xff]   ;;  %v3960_v37 = vld [vmem:[%s6082_s1 + $0x224] ss:$8 sps:$4 sm:$0xff]   ;;  %v3961_v43 = vld [vmem:[%s6082_s1 + $0x320] ss:$8 sps:$4 sm:$0xff]  }
  0x1b   :  { %2608 = vmatpush1.bf16.msra.mxu0 %v3869_v26  ;;  %v3937_v26 = vld [vmem:[%s6082_s1 + $0x360] ss:$8 sps:$4 sm:$0xff]   ;;  %v3976_v54 = vld [vmem:[%s6082_s1 + $0x2f0] ss:$8 sps:$4 sm:$0xff]   ;;  %v3987_v57 = vld [vmem:[%s6082_s1 + $0x3e4] ss:$8 sps:$4 sm:$0xff]  }
  0x1c   :  { %2609 = vmatprep.subr.bf16.mxu0 %v3873_v27  ;;  %2649 = vmatpush1.bf16.msra.mxu1 %v3872_v28  ;;  %v3945_v27 = vld [vmem:[%s6082_s1 + $0x354] ss:$8 sps:$4 sm:$0xff]   ;;  %v3940_v28 = vld [vmem:[%s6082_s1 + $0x250] ss:$8 sps:$4 sm:$0xff]   ;;  %v3973_v52 = vld [vmem:[%s6082_s1 + $0x300] ss:$8 sps:$4 sm:$0xff]  }
  0x1d   :  { %2650 = vmatprep.subr.bf16.mxu1 %v3876_v29  ;;  %v3948_v29 = vld [vmem:[%s6082_s1 + $0x244] ss:$8 sps:$4 sm:$0xff]   ;;  %v3985_v60 = vld [vmem:[%s6082_s1 + $0x3e0] ss:$8 sps:$4 sm:$0xff]   ;;  %v3991_v0 = vld [vmem:[%s6082_s1 + $0x3d0] ss:$8 sps:$4 sm:$0xff]  }
  0x1e   :  { %v3996_v63 = vld [vmem:[%s6082_s1 + $0x2c4] ss:$8 sps:$4 sm:$0xff]  }
  0x1f   :  { %2610 = vmatpush1.bf16.msra.mxu0 %v3875_v30  ;;  %v3943_v30 = vld [vmem:[%s6082_s1 + $0x350] ss:$8 sps:$4 sm:$0xff]   ;;  %v4011_v10 = vld [vmem:[%s6082_s1 + $0x3a4] ss:$8 sps:$4 sm:$0xff]  }
  0x20   :  { %2611 = vmatprep.subr.bf16.mxu0 %v3879_v31  ;;  %2651 = vmatpush1.bf16.msra.mxu1 %v3878_v32  ;;  %v3951_v31 = vld [vmem:[%s6082_s1 + $0x344] ss:$8 sps:$4 sm:$0xff]   ;;  %v3946_v32 = vld [vmem:[%s6082_s1 + $0x240] ss:$8 sps:$4 sm:$0xff]  }
  0x21   :  { %2652 = vmatprep.subr.bf16.mxu1 %v3882_v33  ;;  %v3954_v33 = vld [vmem:[%s6082_s1 + $0x234] ss:$8 sps:$4 sm:$0xff]  }
  0x23   :  { %2612 = vmatpush2.bf16.msra.mxu0 %v3881_v34  ;;  %v3949_v34 = vld [vmem:[%s6082_s1 + $0x340] ss:$8 sps:$4 sm:$0xff]  }
  0x24   :  { %2613 = vmatprep.subr.bf16.mxu0 %v3885_v38  ;;  %2653 = vmatpush2.bf16.msra.mxu1 %v3884_v39  ;;  %v3955_v38 = vld [vmem:[%s6082_s1 + $0x330] ss:$8 sps:$4 sm:$0xff]   ;;  %v3963_v39 = vld [vmem:[%s6082_s1 + $0x324] ss:$8 sps:$4 sm:$0xff]  }
  0x25   :  { %2654 = vmatprep.subr.bf16.mxu1 %v3888_v40  ;;  %v3958_v40 = vld [vmem:[%s6082_s1 + $0x220] ss:$8 sps:$4 sm:$0xff]  }
  0x27   :  { %2614 = vmatpush2.bf16.msra.mxu0 %v3887_v41  ;;  %v3966_v41 = vld [vmem:[%s6082_s1 + $0x214] ss:$8 sps:$4 sm:$0xff]  }
  0x28   :  { %2615 = vmatprep.subr.bf16.mxu0 %v3891_v44  ;;  %2655 = vmatpush2.bf16.msra.mxu1 %v3890_v45  ;;  %v3969_v44 = vld [vmem:[%s6082_s1 + $0x314] ss:$8 sps:$4 sm:$0xff]   ;;  %v3964_v45 = vld [vmem:[%s6082_s1 + $0x210] ss:$8 sps:$4 sm:$0xff]  }
  0x29   :  { %2656 = vmatprep.subr.bf16.mxu1 %v3894_v46  ;;  %v3972_v46 = vld [vmem:[%s6082_s1 + $0x204] ss:$8 sps:$4 sm:$0xff]  }
  0x2b   :  { %2616 = vmatpush2.bf16.msra.mxu0 %v3893_v47  ;;  %v3967_v47 = vld [vmem:[%s6082_s1 + $0x310] ss:$8 sps:$4 sm:$0xff]  }
  0x2c   :  { %2617 = vmatprep.subr.bf16.mxu0 %v3897_v49  ;;  %2657 = vmatpush2.bf16.msra.mxu1 %v3896_v50  ;;  %v3975_v49 = vld [vmem:[%s6082_s1 + $0x304] ss:$8 sps:$4 sm:$0xff]   ;;  %v3970_v50 = vld [vmem:[%s6082_s1 + $0x200] ss:$8 sps:$4 sm:$0xff]  }
  0x2d   :  { %2658 = vmatprep.subr.bf16.mxu1 %v3900_v51  ;;  %v3978_v51 = vld [vmem:[%s6082_s1 + $0x2f4] ss:$8 sps:$4 sm:$0xff]  }
  0x2f   :  { %2618 = vmatpush2.bf16.msra.mxu0 %v3899_v53  ;;  %v3981_v53 = vld [vmem:[%s6082_s1 + $0x3f4] ss:$8 sps:$4 sm:$0xff]  }
  0x30   :  { %2619 = vmatprep.subr.bf16.mxu0 %v3903_v55  ;;  %2659 = vmatpush2.bf16.msra.mxu1 %v3902_v56  ;;  %v3984_v55 = vld [vmem:[%s6082_s1 + $0x2e4] ss:$8 sps:$4 sm:$0xff]   ;;  %v3979_v56 = vld [vmem:[%s6082_s1 + $0x3f0] ss:$8 sps:$4 sm:$0xff]  }
  0x31   :  { %2660 = vmatprep.subr.bf16.mxu1 %v3906_v58  ;;  %v3982_v58 = vld [vmem:[%s6082_s1 + $0x2e0] ss:$8 sps:$4 sm:$0xff]  }
  0x33   :  { %2620 = vmatpush2.bf16.msra.mxu0 %v3905_v59  ;;  %v3990_v59 = vld [vmem:[%s6082_s1 + $0x2d4] ss:$8 sps:$4 sm:$0xff]  }
  0x34   :  { %2621 = vmatprep.subr.bf16.mxu0 %v3909_v61  ;;  %2661 = vmatpush2.bf16.msra.mxu1 %v3908_v62  ;;  %v3993_v61 = vld [vmem:[%s6082_s1 + $0x3d4] ss:$8 sps:$4 sm:$0xff]   ;;  %v3988_v62 = vld [vmem:[%s6082_s1 + $0x2d0] ss:$8 sps:$4 sm:$0xff]  }
  0x35   :  { %2662 = vmatprep.subr.bf16.mxu1 %v3912_v1  ;;  %v3999_v1 = vld [vmem:[%s6082_s1 + $0x3c4] ss:$8 sps:$4 sm:$0xff]  }
  0x37   :  { %2622 = vmatpush2.bf16.msra.mxu0 %v3911_v2  ;;  %v3994_v2 = vld [vmem:[%s6082_s1 + $0x2c0] ss:$8 sps:$4 sm:$0xff]  }
  0x38   :  { %2623 = vmatprep.subr.bf16.mxu0 %v3915_v3  ;;  %2663 = vmatpush2.bf16.msra.mxu1 %v3914_v4  ;;  %v4002_v3 = vld [vmem:[%s6082_s1 + $0x2b4] ss:$8 sps:$4 sm:$0xff]   ;;  %v3997_v4 = vld [vmem:[%s6082_s1 + $0x3c0] ss:$8 sps:$4 sm:$0xff]  }
  0x39   :  { %2664 = vmatprep.subr.bf16.mxu1 %v3918_v6  ;;  %v4005_v6 = vld [vmem:[%s6082_s1 + $0x3b4] ss:$8 sps:$4 sm:$0xff]  }
  0x3b   :  { %2624 = vmatpush2.bf16.msra.mxu0 %v3917_v7  ;;  %v4000_v7 = vld [vmem:[%s6082_s1 + $0x2b0] ss:$8 sps:$4 sm:$0xff]  }
  0x3c   :  { %2625 = vmatprep.subr.bf16.mxu0 %v3921_v8  ;;  %2665 = vmatpush2.bf16.msra.mxu1 %v3920_v9  ;;  %v4008_v8 = vld [vmem:[%s6082_s1 + $0x2a4] ss:$8 sps:$4 sm:$0xff]   ;;  %v4003_v9 = vld [vmem:[%s6082_s1 + $0x3b0] ss:$8 sps:$4 sm:$0xff]  }
  0x3d   :  { %2666 = vmatprep.subr.bf16.mxu1 %v3924_v11  ;;  %v4006_v11 = vld [vmem:[%s6082_s1 + $0x2a0] ss:$8 sps:$4 sm:$0xff]  }
  0x3f   :  { %2626 = vmatpush2.bf16.msra.mxu0 %v3923_v12  ;;  %v4014_v12 = vld [vmem:[%s6082_s1 + $0x294] ss:$8 sps:$4 sm:$0xff]  }
  0x40   :  { %2677 = vmatprep.subr.bf16.mxu0 %v3930_v14  ;;  %2667 = vmatpush2.bf16.msra.mxu1 %v3927_v15  ;;  %v4017_v14 = vld [vmem:[%s6082_s1 + $0x394] ss:$8 sps:$4 sm:$0xff]   ;;  %v4012_v15 = vld [vmem:[%s6082_s1 + $0x290] ss:$8 sps:$4 sm:$0xff]  }
  0x41   :  { %2718 = vmatprep.subr.bf16.mxu1 %v3933_v17  ;;  %v4015_v17 = vld [vmem:[%s6082_s1 + $0x390] ss:$8 sps:$4 sm:$0xff]  }
  0x42   :  { %2628 = vmatmul.mubr.bf16.vlgmr.msra.gmra.mxu0 %v469_v13  ;;  %v4009_v13 = vld [vmem:[%s6082_s1 + $0x3a0] ss:$8 sps:$4 sm:$0xff]  }
  0x43   :  { %2678 = vmatpush1.bf16.msra.mxu0 %v3928_v18  ;;  %2709 = vmatprep.mubr.bf16.mxu0 %v490_v16  ;;  %v4020_v16 = vld [vmem:[%s6082_s1 + $0x284] ss:$8 sps:$4 sm:$0xff]  }
  0x44   :  { %2669 = vmatmul.mubr.bf16.vlgmr.msra.gmra.mxu1 %v491_v19  ;;  %2679 = vmatprep.subr.bf16.mxu0 %v3936_v20  ;;  %v4023_v18 = vld [vmem:[%s6082_s1 + $0x384] ss:$8 sps:$4 sm:$0xff]   ;;  %v4018_v19 = vld [vmem:[%s6082_s1 + $0x280] ss:$8 sps:$4 sm:$0xff]   ;;  %v476_v20 = vrot.slane %v4680_v5, %v4630_v48 }
  0x45   :  { %2719 = vmatpush1.bf16.msra.mxu1 %v3931_v21  ;;  %2750 = vmatprep.mubr.bf16.mxu1 %v494_v22  ;;  %v4026_v21 = vld [vmem:[%s6082_s1 + $0x474] ss:$8 sps:$4 sm:$0xff]   ;;  %v4021_v22 = vld [vmem:[%s6082_s1 + $0x380] ss:$8 sps:$4 sm:$0xff]  }
  0x46   :  { %2720 = vmatprep.subr.bf16.mxu1 %v3939_v23  ;;  %v4029_v23 = vld [vmem:[%s6082_s1 + $0x574] ss:$8 sps:$4 sm:$0xff]   ;;  %v492_v5 = vcombine.high %v476_v20, %v476_v20 }
  0x47   :  { %2680 = vmatpush1.bf16.msra.mxu0 %v3934_v24  ;;  %v4024_v24 = vld [vmem:[%s6082_s1 + $0x470] ss:$8 sps:$4 sm:$0xff]  }
  0x48   :  { %2681 = vmatprep.subr.bf16.mxu0 %v3942_v25  ;;  %v4032_v25 = vld [vmem:[%s6082_s1 + $0x464] ss:$8 sps:$4 sm:$0xff]  }
  0x49   :  { %2721 = vmatpush1.bf16.msra.mxu1 %v3937_v26  ;;  %v4916_v26 = vld [vmem:[%s6081_s0 + $0x8] sm:$0xff] }
  0x4a   :  { %2722 = vmatprep.subr.bf16.mxu1 %v3945_v27  ;;  %v4027_v27 = vld [vmem:[%s6082_s1 + $0x570] ss:$8 sps:$4 sm:$0xff]  }
  0x4b   :  { %2682 = vmatpush1.bf16.msra.mxu0 %v3940_v28  ;;  %v4923_v28 = vrot.slane %v4916_v26, %v4630_v48 }
  0x4c   :  { %2683 = vmatprep.subr.bf16.mxu0 %v3948_v29  ;;  %v4035_v29 = vld [vmem:[%s6082_s1 + $0x564] ss:$8 sps:$4 sm:$0xff]  }
  0x4d   :  { %2723 = vmatpush1.bf16.msra.mxu1 %v3943_v30  ;;  %v4030_v30 = vld [vmem:[%s6082_s1 + $0x460] ss:$8 sps:$4 sm:$0xff]  }
  0x4e   :  { %2724 = vmatprep.subr.bf16.mxu1 %v3951_v31  ;;  %v510_v31 = vcombine.high %v4923_v28, %v4923_v28 }
  0x4f   :  { %2684 = vmatpush1.bf16.msra.mxu0 %v3946_v32  ;;  %v4038_v32 = vld [vmem:[%s6082_s1 + $0x454] ss:$8 sps:$4 sm:$0xff]  }
  0x50   :  { %2685 = vmatprep.subr.bf16.mxu0 %v3954_v33  ;;  %v4033_v33 = vld [vmem:[%s6082_s1 + $0x560] ss:$8 sps:$4 sm:$0xff]  }
  0x51   :  { %2725 = vmatpush1.bf16.msra.mxu1 %v3949_v34  ;;  %v532_v34 = vrot.slane %v510_v31, %v4630_v48  ;;  %v4114_v31 = vld [vmem:[%s6082_s1 + $0x480] ss:$8 sps:$4 sm:$0xff]  }
  0x52   :  { %2726 = vmatprep.subr.bf16.mxu1 %v3957_v35  ;;  %v4041_v35 = vld [vmem:[%s6082_s1 + $0x554] ss:$8 sps:$4 sm:$0xff]  }
  0x53   :  { %2686 = vmatpush1.bf16.msra.mxu0 %v3952_v36  ;;  %v4036_v36 = vld [vmem:[%s6082_s1 + $0x450] ss:$8 sps:$4 sm:$0xff]  }
  0x54   :  { %2687 = vmatprep.subr.bf16.mxu0 %v3960_v37  ;;  %v542_v37 = vcombine.high %v532_v34, %v532_v34 }
  0x55   :  { %2727 = vmatpush1.bf16.msra.mxu1 %v3955_v38  ;;  %v4044_v38 = vld [vmem:[%s6082_s1 + $0x444] ss:$8 sps:$4 sm:$0xff]  }
  0x56   :  { %2728 = vmatprep.subr.bf16.mxu1 %v3963_v39  ;;  %v4039_v39 = vld [vmem:[%s6082_s1 + $0x550] ss:$8 sps:$4 sm:$0xff]  }
  0x57   :  { %2688 = vmatpush1.bf16.msra.mxu0 %v3958_v40  ;;  %v4047_v40 = vld [vmem:[%s6082_s1 + $0x544] ss:$8 sps:$4 sm:$0xff]  }
  0x58   :  { %2689 = vmatprep.subr.bf16.mxu0 %v3966_v41  ;;  %v4042_v41 = vld [vmem:[%s6082_s1 + $0x440] ss:$8 sps:$4 sm:$0xff]  }
  0x59   :  { %2729 = vmatpush1.bf16.msra.mxu1 %v3961_v43  ;;  %v4050_v43 = vld [vmem:[%s6082_s1 + $0x434] ss:$8 sps:$4 sm:$0xff]  }
  0x5a   :  { %2730 = vmatprep.subr.bf16.mxu1 %v3969_v44  ;;  %v4045_v44 = vld [vmem:[%s6082_s1 + $0x540] ss:$8 sps:$4 sm:$0xff]  }
  0x5b   :  { %2690 = vmatpush1.bf16.msra.mxu0 %v3964_v45  ;;  %v4053_v45 = vld [vmem:[%s6082_s1 + $0x534] ss:$8 sps:$4 sm:$0xff]  }
  0x5c   :  { %2691 = vmatprep.subr.bf16.mxu0 %v3972_v46  ;;  %v4048_v46 = vld [vmem:[%s6082_s1 + $0x430] ss:$8 sps:$4 sm:$0xff]  }
  0x5d   :  { %2731 = vmatpush1.bf16.msra.mxu1 %v3967_v47  ;;  %v4056_v47 = vld [vmem:[%s6082_s1 + $0x424] ss:$8 sps:$4 sm:$0xff]  }
  0x5e   :  { %2732 = vmatprep.subr.bf16.mxu1 %v3975_v49  ;;  %v4051_v49 = vld [vmem:[%s6082_s1 + $0x530] ss:$8 sps:$4 sm:$0xff]  }
  0x5f   :  { %2692 = vmatpush1.bf16.msra.mxu0 %v3970_v50  ;;  %v4059_v50 = vld [vmem:[%s6082_s1 + $0x524] ss:$8 sps:$4 sm:$0xff]  }
  0x60   :  { %2693 = vmatprep.subr.bf16.mxu0 %v3978_v51  ;;  %v4054_v51 = vld [vmem:[%s6082_s1 + $0x420] ss:$8 sps:$4 sm:$0xff]  }
  0x61   :  { %2733 = vmatpush1.bf16.msra.mxu1 %v3973_v52  ;;  %v4062_v52 = vld [vmem:[%s6082_s1 + $0x414] ss:$8 sps:$4 sm:$0xff]  }
  0x62   :  { %2734 = vmatprep.subr.bf16.mxu1 %v3981_v53  ;;  %v4057_v53 = vld [vmem:[%s6082_s1 + $0x520] ss:$8 sps:$4 sm:$0xff]  }
  0x63   :  { %2694 = vmatpush2.bf16.msra.mxu0 %v3976_v54  ;;  %v4065_v54 = vld [vmem:[%s6082_s1 + $0x514] ss:$8 sps:$4 sm:$0xff]  }
  0x64   :  { %2695 = vmatprep.subr.bf16.mxu0 %v3984_v55  ;;  %v4060_v55 = vld [vmem:[%s6082_s1 + $0x410] ss:$8 sps:$4 sm:$0xff]  }
  0x65   :  { %2735 = vmatpush2.bf16.msra.mxu1 %v3979_v56  ;;  %v4068_v56 = vld [vmem:[%s6082_s1 + $0x404] ss:$8 sps:$4 sm:$0xff]  }
  0x66   :  { %2736 = vmatprep.subr.bf16.mxu1 %v3987_v57  ;;  %v4063_v57 = vld [vmem:[%s6082_s1 + $0x510] ss:$8 sps:$4 sm:$0xff]  }
  0x67   :  { %2696 = vmatpush2.bf16.msra.mxu0 %v3982_v58  ;;  %v4071_v58 = vld [vmem:[%s6082_s1 + $0x504] ss:$8 sps:$4 sm:$0xff]  }
  0x68   :  { %2697 = vmatprep.subr.bf16.mxu0 %v3990_v59  ;;  %v4066_v59 = vld [vmem:[%s6082_s1 + $0x400] ss:$8 sps:$4 sm:$0xff]  }
  0x69   :  { %2737 = vmatpush2.bf16.msra.mxu1 %v3985_v60  ;;  %v4074_v60 = vld [vmem:[%s6082_s1 + $0x4f4] ss:$8 sps:$4 sm:$0xff]  }
  0x6a   :  { %2738 = vmatprep.subr.bf16.mxu1 %v3993_v61  ;;  %v4069_v61 = vld [vmem:[%s6082_s1 + $0x500] ss:$8 sps:$4 sm:$0xff]  }
  0x6b   :  { %2698 = vmatpush2.bf16.msra.mxu0 %v3988_v62  ;;  %v4077_v62 = vld [vmem:[%s6082_s1 + $0x5f4] ss:$8 sps:$4 sm:$0xff]  }
  0x6c   :  { %2699 = vmatprep.subr.bf16.mxu0 %v3996_v63  ;;  %v4072_v63 = vld [vmem:[%s6082_s1 + $0x4f0] ss:$8 sps:$4 sm:$0xff]  }
  0x6d   :  { %2739 = vmatpush2.bf16.msra.mxu1 %v3991_v0  ;;  %v4080_v0 = vld [vmem:[%s6082_s1 + $0x4e4] ss:$8 sps:$4 sm:$0xff]  }
  0x6e   :  { %2740 = vmatprep.subr.bf16.mxu1 %v3999_v1  ;;  %v4075_v1 = vld [vmem:[%s6082_s1 + $0x5f0] ss:$8 sps:$4 sm:$0xff]  }
  0x6f   :  { %2700 = vmatpush2.bf16.msra.mxu0 %v3994_v2  ;;  %v4083_v2 = vld [vmem:[%s6082_s1 + $0x5e4] ss:$8 sps:$4 sm:$0xff]  }
  0x70   :  { %2701 = vmatprep.subr.bf16.mxu0 %v4002_v3  ;;  %v4078_v3 = vld [vmem:[%s6082_s1 + $0x4e0] ss:$8 sps:$4 sm:$0xff]  }
  0x71   :  { %2741 = vmatpush2.bf16.msra.mxu1 %v3997_v4  ;;  %v4086_v4 = vld [vmem:[%s6082_s1 + $0x4d4] ss:$8 sps:$4 sm:$0xff]  }
  0x72   :  { %2742 = vmatprep.subr.bf16.mxu1 %v4005_v6  ;;  %v4081_v6 = vld [vmem:[%s6082_s1 + $0x5e0] ss:$8 sps:$4 sm:$0xff]  }
  0x73   :  { %2702 = vmatpush2.bf16.msra.mxu0 %v4000_v7  ;;  %v4089_v7 = vld [vmem:[%s6082_s1 + $0x5d4] ss:$8 sps:$4 sm:$0xff]  }
  0x74   :  { %2703 = vmatprep.subr.bf16.mxu0 %v4008_v8  ;;  %v4084_v8 = vld [vmem:[%s6082_s1 + $0x4d0] ss:$8 sps:$4 sm:$0xff]  }
  0x75   :  { %2743 = vmatpush2.bf16.msra.mxu1 %v4003_v9  ;;  %v4092_v9 = vld [vmem:[%s6082_s1 + $0x4c4] ss:$8 sps:$4 sm:$0xff]  }
  0x76   :  { %2744 = vmatprep.subr.bf16.mxu1 %v4011_v10  ;;  %v4087_v10 = vld [vmem:[%s6082_s1 + $0x5d0] ss:$8 sps:$4 sm:$0xff]  }
  0x77   :  { %2704 = vmatpush2.bf16.msra.mxu0 %v4006_v11  ;;  %v4095_v11 = vld [vmem:[%s6082_s1 + $0x5c4] ss:$8 sps:$4 sm:$0xff]  }
  0x78   :  { %2705 = vmatprep.subr.bf16.mxu0 %v4014_v12  ;;  %v4090_v12 = vld [vmem:[%s6082_s1 + $0x4c0] ss:$8 sps:$4 sm:$0xff]  }
  0x79   :  { %2745 = vmatpush2.bf16.msra.mxu1 %v4009_v13  ;;  %v4098_v13 = vld [vmem:[%s6082_s1 + $0x4b4] ss:$8 sps:$4 sm:$0xff]  }
  0x7a   :  { %2746 = vmatprep.subr.bf16.mxu1 %v4017_v14  ;;  %v4093_v14 = vld [vmem:[%s6082_s1 + $0x5c0] ss:$8 sps:$4 sm:$0xff]  }
  0x7b   :  { %2706 = vmatpush2.bf16.msra.mxu0 %v4012_v15  ;;  %v4101_v15 = vld [vmem:[%s6082_s1 + $0x5b4] ss:$8 sps:$4 sm:$0xff]  }
  0x7c   :  { %2707 = vmatprep.subr.bf16.mxu0 %v4020_v16  ;;  %v4096_v16 = vld [vmem:[%s6082_s1 + $0x4b0] ss:$8 sps:$4 sm:$0xff]  }
  0x7d   :  { %2747 = vmatpush2.bf16.msra.mxu1 %v4015_v17  ;;  %v4104_v17 = vld [vmem:[%s6082_s1 + $0x4a4] ss:$8 sps:$4 sm:$0xff]  }
  0x7e   :  { %2748 = vmatprep.subr.bf16.mxu1 %v4023_v18  ;;  %v4099_v18 = vld [vmem:[%s6082_s1 + $0x5b0] ss:$8 sps:$4 sm:$0xff]  }
  0x7f   :  { %2708 = vmatpush2.bf16.msra.mxu0 %v4018_v19  ;;  %v495_v19 = vcombine.high %v4916_v26, %v4916_v26  ;;  %v4116_v26 = vld [vmem:[%s6082_s1 + $0x484] ss:$8 sps:$4 sm:$0xff]  }
  0x80   :  { %2759 = vmatprep.subr.bf16.mxu0 %v4026_v21  ;;  %v4102_v21 = vld [vmem:[%s6082_s1 + $0x4a0] ss:$8 sps:$4 sm:$0xff]  }
  0x81   :  { %2749 = vmatpush2.bf16.msra.mxu1 %v4021_v22  ;;  %v4110_v22 = vld [vmem:[%s6082_s1 + $0x494] ss:$8 sps:$4 sm:$0xff]  }
  0x82   :  { %2710 = vmatmul.mubr.bf16.vlgmr.msra.gmra.mxu0 %v476_v20  ;;  %2800 = vmatprep.subr.bf16.mxu1 %v4029_v23  ;;  %v4107_v20 = vld [vmem:[%s6082_s1 + $0x5a4] ss:$8 sps:$4 sm:$0xff]   ;;  %v4105_v23 = vld [vmem:[%s6082_s1 + $0x5a0] ss:$8 sps:$4 sm:$0xff]  }
  0x83   :  { %2760 = vmatpush1.bf16.msra.mxu0 %v4024_v24  ;;  %2791 = vmatprep.mubr.bf16.mxu0 %v532_v34  ;;  %v5087_v24 = vrot.slane %v495_v19, %v4630_v48  ;;  %v4117_v34 = vld [vmem:[%s6082_s1 + $0x580] ss:$8 sps:$4 sm:$0xff]   ;;  %v4183_v19 = vld [vmem:[%s6082_s1 + $0x7d0] ss:$8 sps:$4 sm:$0xff]  }
  0x84   :  { %2751 = vmatmul.mubr.bf16.vlgmr.msra.gmra.mxu1 %v492_v5  ;;  %2761 = vmatprep.subr.bf16.mxu0 %v4032_v25  ;;  %v4113_v5 = vld [vmem:[%s6082_s1 + $0x594] ss:$8 sps:$4 sm:$0xff]   ;;  %v4108_v25 = vld [vmem:[%s6082_s1 + $0x490] ss:$8 sps:$4 sm:$0xff]  }
  0x85   :  { %2801 = vmatpush1.bf16.msra.mxu1 %v4027_v27  ;;  %2832 = vmatprep.mubr.bf16.mxu1 %v542_v37  ;;  %v4111_v27 = vld [vmem:[%s6082_s1 + $0x590] ss:$8 sps:$4 sm:$0xff]  }
  0x86   :  { %2802 = vmatprep.subr.bf16.mxu1 %v4035_v29  ;;  %v511_v29 = vcombine.high %v5087_v24, %v5087_v24 }
  0x87   :  { %2762 = vmatpush1.bf16.msra.mxu0 %v4030_v30  ;;  %v4119_v30 = vld [vmem:[%s6082_s1 + $0x584] ss:$8 sps:$4 sm:$0xff]  }
  0x88   :  { %2763 = vmatprep.subr.bf16.mxu0 %v4038_v32  ;;  %v518_v32 = vrot.slane %v4923_v28, %v4630_v48  ;;  %v4120_v28 = vld [vmem:[%s6082_s1 + $0x670] ss:$8 sps:$4 sm:$0xff]  }
  0x89   :  { %2803 = vmatpush1.bf16.msra.mxu1 %v4033_v33  ;;  %v4122_v33 = vld [vmem:[%s6082_s1 + $0x674] ss:$8 sps:$4 sm:$0xff]  }
  0x8a   :  { %2804 = vmatprep.subr.bf16.mxu1 %v4041_v35  ;;  %v539_v35 = vrot.slane %v511_v29, %v4630_v48  ;;  %v540_v37 = vcombine.high %v518_v32, %v518_v32  ;;  %v4203_v29 = vld [vmem:[%s6082_s1 + $0x7a4] ss:$8 sps:$4 sm:$0xff]  }
  0x8b   :  { %2764 = vmatpush1.bf16.msra.mxu0 %v4036_v36  ;;  %v4125_v36 = vld [vmem:[%s6082_s1 + $0x774] ss:$8 sps:$4 sm:$0xff]  }
  0x8c   :  { %2765 = vmatprep.subr.bf16.mxu0 %v4044_v38  ;;  %v4128_v38 = vld [vmem:[%s6082_s1 + $0x664] ss:$8 sps:$4 sm:$0xff]  }
  0x8d   :  { %2805 = vmatpush1.bf16.msra.mxu1 %v4039_v39  ;;  %v4123_v39 = vld [vmem:[%s6082_s1 + $0x770] ss:$8 sps:$4 sm:$0xff]  }
  0x8e   :  { %2806 = vmatprep.subr.bf16.mxu1 %v4047_v40  ;;  %v543_v40 = vcombine.high %v539_v35, %v539_v35 }
  0x8f   :  { %2766 = vmatpush1.bf16.msra.mxu0 %v4042_v41  ;;  %v4131_v41 = vld [vmem:[%s6082_s1 + $0x764] ss:$8 sps:$4 sm:$0xff]  }
  0x90   :  { %2767 = vmatprep.subr.bf16.mxu0 %v4050_v43  ;;  %v4126_v43 = vld [vmem:[%s6082_s1 + $0x660] ss:$8 sps:$4 sm:$0xff]  }
  0x91   :  { %2807 = vmatpush1.bf16.msra.mxu1 %v4045_v44  ;;  %v4134_v44 = vld [vmem:[%s6082_s1 + $0x654] ss:$8 sps:$4 sm:$0xff]  }
  0x92   :  { %2808 = vmatprep.subr.bf16.mxu1 %v4053_v45  ;;  %v4129_v45 = vld [vmem:[%s6082_s1 + $0x760] ss:$8 sps:$4 sm:$0xff]  }
  0x93   :  { %2768 = vmatpush1.bf16.msra.mxu0 %v4048_v46  ;;  %v4137_v46 = vld [vmem:[%s6082_s1 + $0x754] ss:$8 sps:$4 sm:$0xff]  }
  0x94   :  { %2769 = vmatprep.subr.bf16.mxu0 %v4056_v47  ;;  %v4132_v47 = vld [vmem:[%s6082_s1 + $0x650] ss:$8 sps:$4 sm:$0xff]  }
  0x95   :  { %2809 = vmatpush1.bf16.msra.mxu1 %v4051_v49  ;;  %v4140_v49 = vld [vmem:[%s6082_s1 + $0x644] ss:$8 sps:$4 sm:$0xff]  }
  0x96   :  { %2810 = vmatprep.subr.bf16.mxu1 %v4059_v50  ;;  %v4135_v50 = vld [vmem:[%s6082_s1 + $0x750] ss:$8 sps:$4 sm:$0xff]  }
  0x97   :  { %2770 = vmatpush1.bf16.msra.mxu0 %v4054_v51  ;;  %v4143_v51 = vld [vmem:[%s6082_s1 + $0x744] ss:$8 sps:$4 sm:$0xff]  }
  0x98   :  { %2771 = vmatprep.subr.bf16.mxu0 %v4062_v52  ;;  %v4138_v52 = vld [vmem:[%s6082_s1 + $0x640] ss:$8 sps:$4 sm:$0xff]  }
  0x99   :  { %2811 = vmatpush1.bf16.msra.mxu1 %v4057_v53  ;;  %v4146_v53 = vld [vmem:[%s6082_s1 + $0x634] ss:$8 sps:$4 sm:$0xff]  }
  0x9a   :  { %2812 = vmatprep.subr.bf16.mxu1 %v4065_v54  ;;  %v4141_v54 = vld [vmem:[%s6082_s1 + $0x740] ss:$8 sps:$4 sm:$0xff]  }
  0x9b   :  { %2772 = vmatpush1.bf16.msra.mxu0 %v4060_v55  ;;  %v4149_v55 = vld [vmem:[%s6082_s1 + $0x734] ss:$8 sps:$4 sm:$0xff]  }
  0x9c   :  { %2773 = vmatprep.subr.bf16.mxu0 %v4068_v56  ;;  %v4144_v56 = vld [vmem:[%s6082_s1 + $0x630] ss:$8 sps:$4 sm:$0xff]  }
  0x9d   :  { %2813 = vmatpush1.bf16.msra.mxu1 %v4063_v57  ;;  %v4152_v57 = vld [vmem:[%s6082_s1 + $0x624] ss:$8 sps:$4 sm:$0xff]  }
  0x9e   :  { %2814 = vmatprep.subr.bf16.mxu1 %v4071_v58  ;;  %v4147_v58 = vld [vmem:[%s6082_s1 + $0x730] ss:$8 sps:$4 sm:$0xff]  }
  0x9f   :  { %2774 = vmatpush1.bf16.msra.mxu0 %v4066_v59  ;;  %v4155_v59 = vld [vmem:[%s6082_s1 + $0x724] ss:$8 sps:$4 sm:$0xff]  }
  0xa0   :  { %2775 = vmatprep.subr.bf16.mxu0 %v4074_v60  ;;  %v4150_v60 = vld [vmem:[%s6082_s1 + $0x620] ss:$8 sps:$4 sm:$0xff]  }
  0xa1   :  { %2815 = vmatpush1.bf16.msra.mxu1 %v4069_v61  ;;  %v4158_v61 = vld [vmem:[%s6082_s1 + $0x614] ss:$8 sps:$4 sm:$0xff]  }
  0xa2   :  { %2816 = vmatprep.subr.bf16.mxu1 %v4077_v62  ;;  %v4153_v62 = vld [vmem:[%s6082_s1 + $0x720] ss:$8 sps:$4 sm:$0xff]  }
  0xa3   :  { %2776 = vmatpush2.bf16.msra.mxu0 %v4072_v63  ;;  %v4161_v63 = vld [vmem:[%s6082_s1 + $0x714] ss:$8 sps:$4 sm:$0xff]  }
  0xa4   :  { %2777 = vmatprep.subr.bf16.mxu0 %v4080_v0  ;;  %v4156_v0 = vld [vmem:[%s6082_s1 + $0x610] ss:$8 sps:$4 sm:$0xff]  }
  0xa5   :  { %2817 = vmatpush2.bf16.msra.mxu1 %v4075_v1  ;;  %v4164_v1 = vld [vmem:[%s6082_s1 + $0x604] ss:$8 sps:$4 sm:$0xff]  }
  0xa6   :  { %2818 = vmatprep.subr.bf16.mxu1 %v4083_v2  ;;  %v4159_v2 = vld [vmem:[%s6082_s1 + $0x710] ss:$8 sps:$4 sm:$0xff]  }
  0xa7   :  { %2778 = vmatpush2.bf16.msra.mxu0 %v4078_v3  ;;  %v4167_v3 = vld [vmem:[%s6082_s1 + $0x704] ss:$8 sps:$4 sm:$0xff]  }
  0xa8   :  { %2779 = vmatprep.subr.bf16.mxu0 %v4086_v4  ;;  %v4162_v4 = vld [vmem:[%s6082_s1 + $0x600] ss:$8 sps:$4 sm:$0xff]  }
  0xa9   :  { %2819 = vmatpush2.bf16.msra.mxu1 %v4081_v6  ;;  %v4170_v6 = vld [vmem:[%s6082_s1 + $0x6f4] ss:$8 sps:$4 sm:$0xff]  }
  0xaa   :  { %2820 = vmatprep.subr.bf16.mxu1 %v4089_v7  ;;  %v4165_v7 = vld [vmem:[%s6082_s1 + $0x700] ss:$8 sps:$4 sm:$0xff]  }
  0xab   :  { %2780 = vmatpush2.bf16.msra.mxu0 %v4084_v8  ;;  %v4173_v8 = vld [vmem:[%s6082_s1 + $0x7f4] ss:$8 sps:$4 sm:$0xff]  }
  0xac   :  { %2781 = vmatprep.subr.bf16.mxu0 %v4092_v9  ;;  %v4168_v9 = vld [vmem:[%s6082_s1 + $0x6f0] ss:$8 sps:$4 sm:$0xff]  }
  0xad   :  { %2821 = vmatpush2.bf16.msra.mxu1 %v4087_v10  ;;  %v4176_v10 = vld [vmem:[%s6082_s1 + $0x6e4] ss:$8 sps:$4 sm:$0xff]  }
  0xae   :  { %2822 = vmatprep.subr.bf16.mxu1 %v4095_v11  ;;  %v4171_v11 = vld [vmem:[%s6082_s1 + $0x7f0] ss:$8 sps:$4 sm:$0xff]  }
  0xaf   :  { %2782 = vmatpush2.bf16.msra.mxu0 %v4090_v12  ;;  %v4179_v12 = vld [vmem:[%s6082_s1 + $0x7e4] ss:$8 sps:$4 sm:$0xff]  }
  0xb0   :  { %2783 = vmatprep.subr.bf16.mxu0 %v4098_v13  ;;  %v4174_v13 = vld [vmem:[%s6082_s1 + $0x6e0] ss:$8 sps:$4 sm:$0xff]  }
  0xb1   :  { %2823 = vmatpush2.bf16.msra.mxu1 %v4093_v14  ;;  %v4182_v14 = vld [vmem:[%s6082_s1 + $0x6d4] ss:$8 sps:$4 sm:$0xff]  }
  0xb2   :  { %2824 = vmatprep.subr.bf16.mxu1 %v4101_v15  ;;  %v4177_v15 = vld [vmem:[%s6082_s1 + $0x7e0] ss:$8 sps:$4 sm:$0xff]  }
  0xb3   :  { %2784 = vmatpush2.bf16.msra.mxu0 %v4096_v16  ;;  %v4185_v16 = vld [vmem:[%s6082_s1 + $0x7d4] ss:$8 sps:$4 sm:$0xff]  }
  0xb4   :  { %2785 = vmatprep.subr.bf16.mxu0 %v4104_v17  ;;  %v4180_v17 = vld [vmem:[%s6082_s1 + $0x6d0] ss:$8 sps:$4 sm:$0xff]  }
  0xb5   :  { %2825 = vmatpush2.bf16.msra.mxu1 %v4099_v18  ;;  %v4188_v18 = vld [vmem:[%s6082_s1 + $0x6c4] ss:$8 sps:$4 sm:$0xff]  }
  0xb6   :  { %2826 = vmatprep.subr.bf16.mxu1 %v4107_v20  ;;  %v4191_v20 = vld [vmem:[%s6082_s1 + $0x7c4] ss:$8 sps:$4 sm:$0xff]  }
  0xb7   :  { %2786 = vmatpush2.bf16.msra.mxu0 %v4102_v21  ;;  %v4186_v21 = vld [vmem:[%s6082_s1 + $0x6c0] ss:$8 sps:$4 sm:$0xff]  }
  0xb8   :  { %2787 = vmatprep.subr.bf16.mxu0 %v4110_v22  ;;  %v4194_v22 = vld [vmem:[%s6082_s1 + $0x6b4] ss:$8 sps:$4 sm:$0xff]  }
  0xb9   :  { %2827 = vmatpush2.bf16.msra.mxu1 %v4105_v23  ;;  %v4189_v23 = vld [vmem:[%s6082_s1 + $0x7c0] ss:$8 sps:$4 sm:$0xff]  }
  0xba   :  { %2828 = vmatprep.subr.bf16.mxu1 %v4113_v5  ;;  %v4197_v5 = vld [vmem:[%s6082_s1 + $0x7b4] ss:$8 sps:$4 sm:$0xff]  }
  0xbb   :  { %2788 = vmatpush2.bf16.msra.mxu0 %v4108_v25  ;;  %v4192_v25 = vld [vmem:[%s6082_s1 + $0x6b0] ss:$8 sps:$4 sm:$0xff]  }
  0xbc   :  { %2789 = vmatprep.subr.bf16.mxu0 %v4116_v26  ;;  %v4200_v26 = vld [vmem:[%s6082_s1 + $0x6a4] ss:$8 sps:$4 sm:$0xff]  }
  0xbd   :  { %2829 = vmatpush2.bf16.msra.mxu1 %v4111_v27  ;;  %v4195_v27 = vld [vmem:[%s6082_s1 + $0x7b0] ss:$8 sps:$4 sm:$0xff]  }
  0xbe   :  { %2830 = vmatprep.subr.bf16.mxu1 %v4119_v30  ;;  %v5280_v30 = vld [vmem:[%s6081_s0 + $0x10] sm:$0xff] }
  0xbf   :  { %2790 = vmatpush2.bf16.msra.mxu0 %v4114_v31  ;;  %v4198_v31 = vld [vmem:[%s6082_s1 + $0x6a0] ss:$8 sps:$4 sm:$0xff]  }
  0xc0   :  { %2841 = vmatprep.subr.bf16.mxu0 %v4122_v33  ;;  %v4201_v33 = vld [vmem:[%s6082_s1 + $0x7a0] ss:$8 sps:$4 sm:$0xff]  }
  0xc1   :  { %2831 = vmatpush2.bf16.msra.mxu1 %v4117_v34  ;;  %v5293_v34 = vrot.slane %v5280_v30, %v4630_v48 }
  0xc2   :  { %2792 = vmatmul.mubr.bf16.vlgmr.msra.gmra.mxu0 %v518_v32  ;;  %2882 = vmatprep.subr.bf16.mxu1 %v4125_v36  ;;  %v4206_v32 = vld [vmem:[%s6082_s1 + $0x694] ss:$8 sps:$4 sm:$0xff]   ;;  %v4204_v36 = vld [vmem:[%s6082_s1 + $0x690] ss:$8 sps:$4 sm:$0xff]  }
  0xc3   :  { %2842 = vmatpush1.bf16.msra.mxu0 %v4120_v28  ;;  %2873 = vmatprep.mubr.bf16.mxu0 %v539_v35  ;;  %v4209_v35 = vld [vmem:[%s6082_s1 + $0x794] ss:$8 sps:$4 sm:$0xff]   ;;  %v4212_v28 = vld [vmem:[%s6082_s1 + $0x684] ss:$8 sps:$4 sm:$0xff]  }
  0xc4   :  { %2833 = vmatmul.mubr.bf16.vlgmr.msra.gmra.mxu1 %v540_v37  ;;  %2843 = vmatprep.subr.bf16.mxu0 %v4128_v38  ;;  %v4207_v37 = vld [vmem:[%s6082_s1 + $0x790] ss:$8 sps:$4 sm:$0xff]   ;;  %v559_v38 = vcombine.high %v5293_v34, %v5293_v34 }
  0xc5   :  { %2883 = vmatpush1.bf16.msra.mxu1 %v4123_v39  ;;  %2914 = vmatprep.mubr.bf16.mxu1 %v543_v40  ;;  %v4215_v39 = vld [vmem:[%s6082_s1 + $0x784] ss:$8 sps:$4 sm:$0xff]   ;;  %v4210_v40 = vld [vmem:[%s6082_s1 + $0x680] ss:$8 sps:$4 sm:$0xff]  }
  0xc6   :  { %2884 = vmatprep.subr.bf16.mxu1 %v4131_v41  ;;  %v430_v41 = vld [vmem:[%s6083_s2] sm:$0x3] }
  0xc7   :  { %2844 = vmatpush1.bf16.msra.mxu0 %v4126_v43  ;;  %v434_v43 = vsub.s32 0, %v4615_v42 }
  0xc8   :  { %2845 = vmatprep.subr.bf16.mxu0 %v4134_v44  ;;  %v525_v44 = vrot.slane %v5087_v24, %v4630_v48 }
  0xc9   :  { %2885 = vmatpush1.bf16.msra.mxu1 %v4129_v45  ;;  %v4219_v45 = vld [vmem:[%s6082_s1 + $0x874] ss:$8 sps:$4 sm:$0xff]   ;;  %v435_v24 = vrot.slane %v430_v41, %v434_v43 }
  0xca   :  { %2886 = vmatprep.subr.bf16.mxu1 %v4137_v46  ;;  %v4213_v46 = vld [vmem:[%s6082_s1 + $0x780] ss:$8 sps:$4 sm:$0xff]  }
  0xcb   :  { %2846 = vmatpush1.bf16.msra.mxu0 %v4132_v47  ;;  %v438_v47 = vsub.s32 1, %v4615_v42 }
  0xcc   :  { %2847 = vmatprep.subr.bf16.mxu0 %v4140_v49  ;;  %v581_v49 = vrot.slane %v559_v38, %v4630_v48 }
  0xcd   :  { %2887 = vmatpush1.bf16.msra.mxu1 %v4135_v50  ;;  %v4222_v50 = vld [vmem:[%s6082_s1 + $0x974] ss:$8 sps:$4 sm:$0xff]  }
  0xce   :  { %2888 = vmatprep.subr.bf16.mxu1 %v4143_v51  ;;  %v4217_v51 = vld [vmem:[%s6082_s1 + $0x870] ss:$8 sps:$4 sm:$0xff]  }
  0xcf   :  { %2848 = vmatpush1.bf16.msra.mxu0 %v4138_v52  ;;  %v541_v52 = vcombine.high %v525_v44, %v525_v44 }
  0xd0   :  { %2849 = vmatprep.subr.bf16.mxu0 %v4146_v53  ;;  %v4225_v53 = vld [vmem:[%s6082_s1 + $0x864] ss:$8 sps:$4 sm:$0xff]  }
  0xd1   :  { %2889 = vmatpush1.bf16.msra.mxu1 %v4141_v54  ;;  %v439_v54 = vrot.slane %v430_v41, %v438_v47 }
  0xd2   :  { %2890 = vmatprep.subr.bf16.mxu1 %v4149_v55  ;;  %v4220_v55 = vld [vmem:[%s6082_s1 + $0x970] ss:$8 sps:$4 sm:$0xff]  }
  0xd3   :  { %2850 = vmatpush1.bf16.msra.mxu0 %v4144_v56  ;;  %v591_v56 = vcombine.high %v581_v49, %v581_v49 }
  0xd4   :  { %2851 = vmatprep.subr.bf16.mxu0 %v4152_v57 }
  0xd5   :  { %2891 = vmatpush1.bf16.msra.mxu1 %v4147_v58  ;;  %v4223_v58 = vld [vmem:[%s6082_s1 + $0x860] ss:$8 sps:$4 sm:$0xff]  }
  0xd6   :  { %2892 = vmatprep.subr.bf16.mxu1 %v4155_v59  ;;  %v4228_v59 = vld [vmem:[%s6082_s1 + $0x964] ss:$8 sps:$4 sm:$0xff]  }
  0xd7   :  { %2852 = vmatpush1.bf16.msra.mxu0 %v4150_v60 }
  0xd8   :  { %2853 = vmatprep.subr.bf16.mxu0 %v4158_v61 }
  0xd9   :  { %2893 = vmatpush1.bf16.msra.mxu1 %v4153_v62 }
  0xda   :  { %2894 = vmatprep.subr.bf16.mxu1 %v4161_v63  ;;  %v4231_v63 = vld [vmem:[%s6082_s1 + $0x854] ss:$8 sps:$4 sm:$0xff]  }
  0xdb   :  { %2854 = vmatpush1.bf16.msra.mxu0 %v4156_v0 }
  0xdc   :  { %2855 = vmatprep.subr.bf16.mxu0 %v4164_v1 }
  0xdd   :  { %2895 = vmatpush1.bf16.msra.mxu1 %v4159_v2  ;;  %v4226_v2 = vld [vmem:[%s6082_s1 + $0x960] ss:$8 sps:$4 sm:$0xff]  }
  0xde   :  { %2896 = vmatprep.subr.bf16.mxu1 %v4167_v3 }
  0xdf   :  { %2856 = vmatpush1.bf16.msra.mxu0 %v4162_v4 }
  0xe0   :  { %2857 = vmatprep.subr.bf16.mxu0 %v4170_v6 }
  0xe1   :  { %2897 = vmatpush1.bf16.msra.mxu1 %v4165_v7 }
  0xe2   :  { %2898 = vmatprep.subr.bf16.mxu1 %v4173_v8 }
  0xe3   :  { %2858 = vmatpush2.bf16.msra.mxu0 %v4168_v9 }
  0xe4   :  { %2859 = vmatprep.subr.bf16.mxu0 %v4176_v10 }
  0xe5   :  { %2899 = vmatpush2.bf16.msra.mxu1 %v4171_v11 }
  0xe6   :  { %2900 = vmatprep.subr.bf16.mxu1 %v4179_v12 }
  0xe7   :  { %2860 = vmatpush2.bf16.msra.mxu0 %v4174_v13 }
  0xe8   :  { %2861 = vmatprep.subr.bf16.mxu0 %v4182_v14 }
  0xe9   :  { %2901 = vmatpush2.bf16.msra.mxu1 %v4177_v15 }
  0xea   :  { %2902 = vmatprep.subr.bf16.mxu1 %v4185_v16 }
  0xeb   :  { %2862 = vmatpush2.bf16.msra.mxu0 %v4180_v17 }
  0xec   :  { %2863 = vmatprep.subr.bf16.mxu0 %v4188_v18 }
  0xed   :  { %2903 = vmatpush2.bf16.msra.mxu1 %v4183_v19 }
  0xee   :  { %2904 = vmatprep.subr.bf16.mxu1 %v4191_v20 }
  0xef   :  { %2864 = vmatpush2.bf16.msra.mxu0 %v4186_v21 }
  0xf0   :  { %2865 = vmatprep.subr.bf16.mxu0 %v4194_v22 }
  0xf1   :  { %2905 = vmatpush2.bf16.msra.mxu1 %v4189_v23 }
  0xf2   :  { %2906 = vmatprep.subr.bf16.mxu1 %v4197_v5 }
  0xf3   :  { %2866 = vmatpush2.bf16.msra.mxu0 %v4192_v25 }
  0xf4   :  { %2867 = vmatprep.subr.bf16.mxu0 %v4200_v26 }
  0xf5   :  { %2907 = vmatpush2.bf16.msra.mxu1 %v4195_v27 }
  0xf6   :  { %2908 = vmatprep.subr.bf16.mxu1 %v4203_v29 }
  0xf7   :  { %2868 = vmatpush2.bf16.msra.mxu0 %v4198_v31 }
  0xf8   :  { %2869 = vmatprep.subr.bf16.mxu0 %v4206_v32 }
  0xf9   :  { %2909 = vmatpush2.bf16.msra.mxu1 %v4201_v33 }
  0xfa   :  { %2910 = vmatprep.subr.bf16.mxu1 %v4209_v35 }
  0xfb   :  { %2870 = vmatpush2.bf16.msra.mxu0 %v4204_v36 }
  0xfc   :  { %2871 = vmatprep.subr.bf16.mxu0 %v4212_v28 }
  0xfd   :  { %2911 = vmatpush2.bf16.msra.mxu1 %v4207_v37 }
  0xfe   :  { %2912 = vmatprep.subr.bf16.mxu1 %v4215_v39 }
  0xff   :  { %2872 = vmatpush2.bf16.msra.mxu0 %v4210_v40 }
 0x100   :  { %2923 = vmatprep.subr.bf16.mxu0 %v4219_v45 }
 0x101   :  { %2913 = vmatpush2.bf16.msra.mxu1 %v4213_v46 }
 0x102   :  { %v2629_v57 = vpop.f32.mrf.mxu0  ;;  %2874 = vmatmul.mubr.bf16.vlgmr.msra.gmra.mxu0 %v525_v44  ;;  %2964 = vmatprep.subr.bf16.mxu1 %v4222_v50 }
 0x103   :  { %v2630_v60 = vadd.f32 %v2629_v57, %v435_v24  ;;  %2924 = vmatpush1.bf16.msra.mxu0 %v4217_v51  ;;  %2955 = vmatprep.mubr.bf16.mxu0 %v581_v49 }
 0x104   :  { %v2631_v61 = vpop.f32.mrf.mxu0  ;;  %v2670_v62 = vpop.f32.mrf.mxu1  ;;  %2915 = vmatmul.mubr.bf16.vlgmr.msra.gmra.mxu1 %v541_v52  ;;  %2925 = vmatprep.subr.bf16.mxu0 %v4225_v53 }
 0x105   :  { %v2632_v0 = vadd.f32 %v2631_v61, %v439_v54  ;;  %v5352_v1 = vadd.f32 %v2670_v62, %v2630_v60  ;;  %2965 = vmatpush1.bf16.msra.mxu1 %v4220_v55  ;;  %2996 = vmatprep.mubr.bf16.mxu1 %v591_v56 }
 0x106   :  { %14 = vsyncpa [#allocation3], 0  ;;  %v2633_v3 = vpop.f32.mrf.mxu0  ;;  %v2672_v4 = vpop.f32.mrf.mxu1  ;;  %2966 = vmatprep.subr.bf16.mxu1 %v4228_v59  ;;  %v4234_v6 = vld [vmem:[%s6082_s1 + $0x954] ss:$8 sps:$4 sm:$0xff]   ;;  %v4229_v8 = vld [vmem:[%s6082_s1 + $0x850] ss:$8 sps:$4 sm:$0xff]   ;;  %v544_v59 = vcombine.high %v5280_v30, %v5280_v30 }
 0x107   :  { %v5360_v7 = vadd.f32 %v2672_v4, %v2632_v0  ;;  %2926 = vmatpush1.bf16.msra.mxu0 %v4223_v58  ;;  %v4237_v10 = vld [vmem:[%s6082_s1 + $0x844] ss:$8 sps:$4 sm:$0xff]   ;;  %v4232_v12 = vld [vmem:[%s6082_s1 + $0x950] ss:$8 sps:$4 sm:$0xff]   ;;  %v4235_v15 = vld [vmem:[%s6082_s1 + $0x840] ss:$8 sps:$4 sm:$0xff]  }
 0x108   :  { %v2634_v9 = vpop.f32.mrf.mxu0  ;;  %2927 = vmatprep.subr.bf16.mxu0 %v4231_v63  ;;  %v2674_v11 = vpop.f32.mrf.mxu1  ;;  %v4240_v13 = vld [vmem:[%s6082_s1 + $0x944] ss:$8 sps:$4 sm:$0xff]   ;;  %v4243_v16 = vld [vmem:[%s6082_s1 + $0x834] ss:$8 sps:$4 sm:$0xff]   ;;  %v4238_v17 = vld [vmem:[%s6082_s1 + $0x940] ss:$8 sps:$4 sm:$0xff]   ;;  %v5507_v63 = vrot.slane %v544_v59, %v4630_v48 }
 0x109   :  { %2967 = vmatpush1.bf16.msra.mxu1 %v4226_v2  ;;  %v4246_v18 = vld [vmem:[%s6082_s1 + $0x934] ss:$8 sps:$4 sm:$0xff]   ;;  %v4241_v19 = vld [vmem:[%s6082_s1 + $0x830] ss:$8 sps:$4 sm:$0xff]   ;;  %v4249_v20 = vld [vmem:[%s6082_s1 + $0x824] ss:$8 sps:$4 sm:$0xff]  }
 0x10a   :  { %2968 = vmatprep.subr.bf16.mxu1 %v4234_v6  ;;  %v2675_v14 = vpop.f32.mrf.mxu1  ;;  %v4445_v21 = vmov 0   ;;  %v4244_v22 = vld [vmem:[%s6082_s1 + $0x930] ss:$8 sps:$4 sm:$0xff]   ;;  %v4252_v23 = vld [vmem:[%s6082_s1 + $0x924] ss:$8 sps:$4 sm:$0xff]   ;;  %v560_v6 = vcombine.high %v5507_v63, %v5507_v63  ;;  %vm2591_vm0 = vcmask 523264  }
 0x10b   :  { %2928 = vmatpush1.bf16.msra.mxu0 %v4229_v8  ;;  %3830 = vset.pattern.permute.xlu0 %v4445_v21  ;;  %v4247_v5 = vld [vmem:[%s6082_s1 + $0x820] ss:$8 sps:$4 sm:$0xff]   ;;  %v4255_v25 = vld [vmem:[%s6082_s1 + $0x814] ss:$8 sps:$4 sm:$0xff]   ;;  %v4253_v29 = vld [vmem:[%s6082_s1 + $0x810] ss:$8 sps:$4 sm:$0xff]  }
 0x10c   :  { %2929 = vmatprep.subr.bf16.mxu0 %v4237_v10  ;;  %v4250_v26 = vld [vmem:[%s6082_s1 + $0x920] ss:$8 sps:$4 sm:$0xff]   ;;  %v4258_v27 = vld [vmem:[%s6082_s1 + $0x914] ss:$8 sps:$4 sm:$0xff]   ;;  %v4261_v31 = vld [vmem:[%s6082_s1 + $0x804] ss:$8 sps:$4 sm:$0xff]   ;;  %v567_v10 = vrot.slane %v5293_v34, %v4630_v48 }
 0x10d   :  { %2969 = vmatpush1.bf16.msra.mxu1 %v4232_v12  ;;  %v4256_v32 = vld [vmem:[%s6082_s1 + $0x910] ss:$8 sps:$4 sm:$0xff]   ;;  %v4264_v33 = vld [vmem:[%s6082_s1 + $0x904] ss:$8 sps:$4 sm:$0xff]   ;;  %v4259_v35 = vld [vmem:[%s6082_s1 + $0x800] ss:$8 sps:$4 sm:$0xff]  }
 0x10e   :  { %2970 = vmatprep.subr.bf16.mxu1 %v4240_v13  ;;  %v4267_v36 = vld [vmem:[%s6082_s1 + $0x8f4] ss:$8 sps:$4 sm:$0xff]   ;;  %v4262_v28 = vld [vmem:[%s6082_s1 + $0x900] ss:$8 sps:$4 sm:$0xff]   ;;  %v4265_v38 = vld [vmem:[%s6082_s1 + $0x8f0] ss:$8 sps:$4 sm:$0xff]   ;;  %v588_v13 = vrot.slane %v560_v6, %v4630_v48 }
 0x10f   :  { %2930 = vmatpush1.bf16.msra.mxu0 %v4235_v15  ;;  %v4270_v37 = vld [vmem:[%s6082_s1 + $0x9f4] ss:$8 sps:$4 sm:$0xff]   ;;  %v4273_v39 = vld [vmem:[%s6082_s1 + $0x8e4] ss:$8 sps:$4 sm:$0xff]   ;;  %v4268_v40 = vld [vmem:[%s6082_s1 + $0x9f0] ss:$8 sps:$4 sm:$0xff]   ;;  %v589_v15 = vcombine.high %v567_v10, %v567_v10 }
 0x110   :  { %2931 = vmatprep.subr.bf16.mxu0 %v4243_v16  ;;  %v4276_v41 = vld [vmem:[%s6082_s1 + $0x9e4] ss:$8 sps:$4 sm:$0xff]   ;;  %v4271_v44 = vld [vmem:[%s6082_s1 + $0x8e0] ss:$8 sps:$4 sm:$0xff]   ;;  %v4279_v45 = vld [vmem:[%s6082_s1 + $0x8d4] ss:$8 sps:$4 sm:$0xff]  }
 0x111   :  { %2971 = vmatpush1.bf16.msra.mxu1 %v4238_v17  ;;  %v4274_v46 = vld [vmem:[%s6082_s1 + $0x9e0] ss:$8 sps:$4 sm:$0xff]   ;;  %v4282_v47 = vld [vmem:[%s6082_s1 + $0x9d4] ss:$8 sps:$4 sm:$0xff]   ;;  %v4277_v49 = vld [vmem:[%s6082_s1 + $0x8d0] ss:$8 sps:$4 sm:$0xff]  }
 0x112   :  { %2972 = vmatprep.subr.bf16.mxu1 %v4246_v18  ;;  %v4285_v50 = vld [vmem:[%s6082_s1 + $0x8c4] ss:$8 sps:$4 sm:$0xff]   ;;  %v4280_v24 = vld [vmem:[%s6082_s1 + $0x9d0] ss:$8 sps:$4 sm:$0xff]   ;;  %v4283_v52 = vld [vmem:[%s6082_s1 + $0x8c0] ss:$8 sps:$4 sm:$0xff]   ;;  %v592_v18 = vcombine.high %v588_v13, %v588_v13 }
 0x113   :  { %2932 = vmatpush1.bf16.msra.mxu0 %v4241_v19  ;;  %v4288_v51 = vld [vmem:[%s6082_s1 + $0x9c4] ss:$8 sps:$4 sm:$0xff]   ;;  %v4291_v53 = vld [vmem:[%s6082_s1 + $0x8b4] ss:$8 sps:$4 sm:$0xff]   ;;  %v4286_v54 = vld [vmem:[%s6082_s1 + $0x9c0] ss:$8 sps:$4 sm:$0xff]  }
 0x114   :  { %2933 = vmatprep.subr.bf16.mxu0 %v4249_v20  ;;  %v4294_v55 = vld [vmem:[%s6082_s1 + $0x9b4] ss:$8 sps:$4 sm:$0xff]   ;;  %v4289_v56 = vld [vmem:[%s6082_s1 + $0x8b0] ss:$8 sps:$4 sm:$0xff]   ;;  %v4297_v57 = vld [vmem:[%s6082_s1 + $0x8a4] ss:$8 sps:$4 sm:$0xff]  }
 0x115   :  { %2973 = vmatpush1.bf16.msra.mxu1 %v4244_v22  ;;  %v4292_v58 = vld [vmem:[%s6082_s1 + $0x9b0] ss:$8 sps:$4 sm:$0xff]   ;;  %v4300_v60 = vld [vmem:[%s6082_s1 + $0x9a4] ss:$8 sps:$4 sm:$0xff]   ;;  %v4295_v61 = vld [vmem:[%s6082_s1 + $0x8a0] ss:$8 sps:$4 sm:$0xff]  }
 0x116   :  { %2974 = vmatprep.subr.bf16.mxu1 %v4252_v23  ;;  %v4303_v62 = vld [vmem:[%s6082_s1 + $0x894] ss:$8 sps:$4 sm:$0xff]   ;;  %v4298_v30 = vld [vmem:[%s6082_s1 + $0x9a0] ss:$8 sps:$4 sm:$0xff]   ;;  %v4301_v2 = vld [vmem:[%s6082_s1 + $0x890] ss:$8 sps:$4 sm:$0xff]  }
 0x117   :  { %2934 = vmatpush1.bf16.msra.mxu0 %v4247_v5  ;;  %v4306_v0 = vld [vmem:[%s6082_s1 + $0x994] ss:$8 sps:$4 sm:$0xff]   ;;  %v4309_v3 = vld [vmem:[%s6082_s1 + $0x884] ss:$8 sps:$4 sm:$0xff]   ;;  %v4304_v4 = vld [vmem:[%s6082_s1 + $0x990] ss:$8 sps:$4 sm:$0xff]  }
 0x118   :  { %2935 = vmatprep.subr.bf16.mxu0 %v4255_v25  ;;  %v4312_v8 = vld [vmem:[%s6082_s1 + $0x984] ss:$8 sps:$4 sm:$0xff]   ;;  %v4307_v9 = vld [vmem:[%s6082_s1 + $0x880] ss:$8 sps:$4 sm:$0xff]   ;;  %v4315_v11 = vld [vmem:[%s6082_s1 + $0xa74] ss:$8 sps:$4 sm:$0xff]  }
 0x119   :  { %2975 = vmatpush1.bf16.msra.mxu1 %v4250_v26  ;;  %v4310_v12 = vld [vmem:[%s6082_s1 + $0x980] ss:$8 sps:$4 sm:$0xff]   ;;  %v4318_v14 = vld [vmem:[%s6082_s1 + $0xb74] ss:$8 sps:$4 sm:$0xff]   ;;  %v4313_v34 = vld [vmem:[%s6082_s1 + $0xa70] ss:$8 sps:$4 sm:$0xff]  }
 0x11a   :  { %2976 = vmatprep.subr.bf16.mxu1 %v4258_v27  ;;  %v4321_v16 = vld [vmem:[%s6082_s1 + $0xa64] ss:$8 sps:$4 sm:$0xff]   ;;  %v4316_v17 = vld [vmem:[%s6082_s1 + $0xb70] ss:$8 sps:$4 sm:$0xff]   ;;  %v4319_v23 = vld [vmem:[%s6082_s1 + $0xa60] ss:$8 sps:$4 sm:$0xff]  }
 0x11b   :  { %2936 = vmatpush1.bf16.msra.mxu0 %v4253_v29  ;;  %v4324_v20 = vld [vmem:[%s6082_s1 + $0xb64] ss:$8 sps:$4 sm:$0xff]   ;;  %v4327_v26 = vld [vmem:[%s6082_s1 + $0xa54] ss:$8 sps:$4 sm:$0xff]   ;;  %v4355_v59 = vld [vmem:[%s6082_s1 + $0xa00] ss:$8 sps:$4 sm:$0xff]  }
 0x11c   :  { %2937 = vmatprep.subr.bf16.mxu0 %v4261_v31  ;;  %v4375_v6 = vld [vmem:[%s6082_s1 + $0xad4] ss:$8 sps:$4 sm:$0xff]   ;;  %s4447_s16 = smov [#allocation2]   ;;  %vm3381_vm1 = vcmask 25600  }
 0x11d   :  { %2977 = vmatpush1.bf16.msra.mxu1 %v4256_v32 }
 0x11e   :  { %2978 = vmatprep.subr.bf16.mxu1 %v4264_v33  ;;  %v4330_v33 = vld [vmem:[%s6082_s1 + $0xb54] ss:$8 sps:$4 sm:$0xff]  }
 0x11f   :  { %2938 = vmatpush1.bf16.msra.mxu0 %v4259_v35 }
 0x120   :  { %2939 = vmatprep.subr.bf16.mxu0 %v4267_v36 }
 0x121   :  { %2979 = vmatpush1.bf16.msra.mxu1 %v4262_v28  ;;  %v4333_v28 = vld [vmem:[%s6082_s1 + $0xa44] ss:$8 sps:$4 sm:$0xff]  }
 0x122   :  { %2980 = vmatprep.subr.bf16.mxu1 %v4270_v37 }
 0x123   :  { %2940 = vmatpush2.bf16.msra.mxu0 %v4265_v38  ;;  %v4328_v38 = vld [vmem:[%s6082_s1 + $0xb50] ss:$8 sps:$4 sm:$0xff]  }
 0x124   :  { %2941 = vmatprep.subr.bf16.mxu0 %v4273_v39  ;;  %v4336_v39 = vld [vmem:[%s6082_s1 + $0xb44] ss:$8 sps:$4 sm:$0xff]  }
 0x125   :  { %2981 = vmatpush2.bf16.msra.mxu1 %v4268_v40 }
 0x126   :  { %2982 = vmatprep.subr.bf16.mxu1 %v4276_v41  ;;  %v4331_v41 = vld [vmem:[%s6082_s1 + $0xa40] ss:$8 sps:$4 sm:$0xff]  }
 0x127   :  { %2942 = vmatpush2.bf16.msra.mxu0 %v4271_v44  ;;  %v4339_v44 = vld [vmem:[%s6082_s1 + $0xa34] ss:$8 sps:$4 sm:$0xff]  }
 0x128   :  { %2943 = vmatprep.subr.bf16.mxu0 %v4279_v45  ;;  %v4334_v45 = vld [vmem:[%s6082_s1 + $0xb40] ss:$8 sps:$4 sm:$0xff]  }
 0x129   :  { %2983 = vmatpush2.bf16.msra.mxu1 %v4274_v46  ;;  %v4342_v46 = vld [vmem:[%s6082_s1 + $0xb34] ss:$8 sps:$4 sm:$0xff]  }
 0x12a   :  { %2984 = vmatprep.subr.bf16.mxu1 %v4282_v47  ;;  %v4337_v47 = vld [vmem:[%s6082_s1 + $0xa30] ss:$8 sps:$4 sm:$0xff]  }
 0x12b   :  { %2944 = vmatpush2.bf16.msra.mxu0 %v4277_v49  ;;  %v4345_v49 = vld [vmem:[%s6082_s1 + $0xa24] ss:$8 sps:$4 sm:$0xff]  }
 0x12c   :  { %2945 = vmatprep.subr.bf16.mxu0 %v4285_v50  ;;  %v4340_v50 = vld [vmem:[%s6082_s1 + $0xb30] ss:$8 sps:$4 sm:$0xff]  }
 0x12d   :  { %2985 = vmatpush2.bf16.msra.mxu1 %v4280_v24  ;;  %v4348_v24 = vld [vmem:[%s6082_s1 + $0xb24] ss:$8 sps:$4 sm:$0xff]  }
 0x12e   :  { %2986 = vmatprep.subr.bf16.mxu1 %v4288_v51  ;;  %v4343_v51 = vld [vmem:[%s6082_s1 + $0xa20] ss:$8 sps:$4 sm:$0xff]  }
 0x12f   :  { %2946 = vmatpush2.bf16.msra.mxu0 %v4283_v52  ;;  %v4351_v52 = vld [vmem:[%s6082_s1 + $0xa14] ss:$8 sps:$4 sm:$0xff]  }
 0x130   :  { %2947 = vmatprep.subr.bf16.mxu0 %v4291_v53  ;;  %v4346_v53 = vld [vmem:[%s6082_s1 + $0xb20] ss:$8 sps:$4 sm:$0xff]  }
 0x131   :  { %2987 = vmatpush2.bf16.msra.mxu1 %v4286_v54  ;;  %v4354_v54 = vld [vmem:[%s6082_s1 + $0xb14] ss:$8 sps:$4 sm:$0xff]  }
 0x132   :  { %2988 = vmatprep.subr.bf16.mxu1 %v4294_v55  ;;  %v4349_v55 = vld [vmem:[%s6082_s1 + $0xa10] ss:$8 sps:$4 sm:$0xff]  }
 0x133   :  { %2948 = vmatpush2.bf16.msra.mxu0 %v4289_v56  ;;  %v4357_v56 = vld [vmem:[%s6082_s1 + $0xa04] ss:$8 sps:$4 sm:$0xff]  }
 0x134   :  { %2949 = vmatprep.subr.bf16.mxu0 %v4297_v57  ;;  %v4352_v57 = vld [vmem:[%s6082_s1 + $0xb10] ss:$8 sps:$4 sm:$0xff]  }
 0x135   :  { %2989 = vmatpush2.bf16.msra.mxu1 %v4292_v58  ;;  %v4360_v58 = vld [vmem:[%s6082_s1 + $0xb04] ss:$8 sps:$4 sm:$0xff]  }
 0x136   :  { %2990 = vmatprep.subr.bf16.mxu1 %v4300_v60  ;;  %v4363_v60 = vld [vmem:[%s6082_s1 + $0xaf4] ss:$8 sps:$4 sm:$0xff]  }
 0x137   :  { %2950 = vmatpush2.bf16.msra.mxu0 %v4295_v61  ;;  %v4358_v61 = vld [vmem:[%s6082_s1 + $0xb00] ss:$8 sps:$4 sm:$0xff]  }
 0x138   :  { %2951 = vmatprep.subr.bf16.mxu0 %v4303_v62  ;;  %v4366_v62 = vld [vmem:[%s6082_s1 + $0xbf4] ss:$8 sps:$4 sm:$0xff]  }
 0x139   :  { %2991 = vmatpush2.bf16.msra.mxu1 %v4298_v30  ;;  %v4361_v30 = vld [vmem:[%s6082_s1 + $0xaf0] ss:$8 sps:$4 sm:$0xff]  }
 0x13a   :  { %2992 = vmatprep.subr.bf16.mxu1 %v4306_v0  ;;  %v4369_v0 = vld [vmem:[%s6082_s1 + $0xae4] ss:$8 sps:$4 sm:$0xff]  }
 0x13b   :  { %2952 = vmatpush2.bf16.msra.mxu0 %v4301_v2  ;;  %v4364_v2 = vld [vmem:[%s6082_s1 + $0xbf0] ss:$8 sps:$4 sm:$0xff]  }
 0x13c   :  { %2953 = vmatprep.subr.bf16.mxu0 %v4309_v3  ;;  %v4372_v3 = vld [vmem:[%s6082_s1 + $0xbe4] ss:$8 sps:$4 sm:$0xff]  }
 0x13d   :  { %2993 = vmatpush2.bf16.msra.mxu1 %v4304_v4  ;;  %v4367_v4 = vld [vmem:[%s6082_s1 + $0xae0] ss:$8 sps:$4 sm:$0xff]  }
 0x13e   :  { %2994 = vmatprep.subr.bf16.mxu1 %v4312_v8  ;;  %v4370_v8 = vld [vmem:[%s6082_s1 + $0xbe0] ss:$8 sps:$4 sm:$0xff]  }
 0x13f   :  { %2954 = vmatpush2.bf16.msra.mxu0 %v4307_v9  ;;  %v4378_v9 = vld [vmem:[%s6082_s1 + $0xbd4] ss:$8 sps:$4 sm:$0xff]  }
 0x140   :  { %3005 = vmatprep.subr.bf16.mxu0 %v4315_v11  ;;  %v4381_v11 = vld [vmem:[%s6082_s1 + $0xac4] ss:$8 sps:$4 sm:$0xff]  }
 0x141   :  { %2995 = vmatpush2.bf16.msra.mxu1 %v4310_v12  ;;  %v4376_v12 = vld [vmem:[%s6082_s1 + $0xbd0] ss:$8 sps:$4 sm:$0xff]  }
 0x142   :  { %v2711_v19 = vpop.f32.mrf.mxu0  ;;  %2956 = vmatmul.mubr.bf16.vlgmr.msra.gmra.mxu0 %v567_v10  ;;  %3046 = vmatprep.subr.bf16.mxu1 %v4318_v14  ;;  %v4373_v10 = vld [vmem:[%s6082_s1 + $0xad0] ss:$8 sps:$4 sm:$0xff]   ;;  %v4379_v14 = vld [vmem:[%s6082_s1 + $0xac0] ss:$8 sps:$4 sm:$0xff]  }
 0x143   :  { %v2712_v22 = vadd.f32 %v2711_v19, %v5352_v1  ;;  %3006 = vmatpush1.bf16.msra.mxu0 %v4313_v34  ;;  %3037 = vmatprep.mubr.bf16.mxu0 %v588_v13  ;;  %v4322_v1 = vld [vmem:[%s6082_s1 + $0xb60] ss:$8 sps:$4 sm:$0xff]   ;;  %v4384_v13 = vld [vmem:[%s6082_s1 + $0xbc4] ss:$8 sps:$4 sm:$0xff]   ;;  %v4387_v34 = vld [vmem:[%s6082_s1 + $0xab4] ss:$8 sps:$4 sm:$0xff]  }
 0x144   :  { %v2713_v5 = vpop.f32.mrf.mxu0  ;;  %v2752_v25 = vpop.f32.mrf.mxu1  ;;  %2997 = vmatmul.mubr.bf16.vlgmr.msra.gmra.mxu1 %v589_v15  ;;  %3007 = vmatprep.subr.bf16.mxu0 %v4321_v16  ;;  %v4382_v15 = vld [vmem:[%s6082_s1 + $0xbc0] ss:$8 sps:$4 sm:$0xff]   ;;  %v4390_v16 = vld [vmem:[%s6082_s1 + $0xbb4] ss:$8 sps:$4 sm:$0xff]   ;;  %v4388_v19 = vld [vmem:[%s6082_s1 + $0xbb0] ss:$8 sps:$4 sm:$0xff]  }
 0x145   :  { %v2714_v27 = vadd.f32 %v2713_v5, %v5360_v7  ;;  %v5561_v29 = vadd.f32 %v2752_v25, %v2712_v22  ;;  %3047 = vmatpush1.bf16.msra.mxu1 %v4316_v17  ;;  %3078 = vmatprep.mubr.bf16.mxu1 %v592_v18  ;;  %v4325_v7 = vld [vmem:[%s6082_s1 + $0xa50] ss:$8 sps:$4 sm:$0xff]   ;;  %v4393_v18 = vld [vmem:[%s6082_s1 + $0xaa4] ss:$8 sps:$4 sm:$0xff]   ;;  %v4391_v22 = vld [vmem:[%s6082_s1 + $0xaa0] ss:$8 sps:$4 sm:$0xff]  }
 0x146   :  { %v2715_v31 = vpop.f32.mrf.mxu0  ;;  %v2754_v32 = vpop.f32.mrf.mxu1  ;;  %3048 = vmatprep.subr.bf16.mxu1 %v4324_v20  ;;  %v4385_v17 = vld [vmem:[%s6082_s1 + $0xab0] ss:$8 sps:$4 sm:$0xff]   ;;  %v4396_v20 = vld [vmem:[%s6082_s1 + $0xba4] ss:$8 sps:$4 sm:$0xff]   ;;  %v4394_v5 = vld [vmem:[%s6082_s1 + $0xba0] ss:$8 sps:$4 sm:$0xff]  }
 0x147   :  { %v5569_v35 = vadd.f32 %v2754_v32, %v2714_v27  ;;  %3008 = vmatpush1.bf16.msra.mxu0 %v4319_v23  ;;  %v4399_v23 = vld [vmem:[%s6082_s1 + $0xa94] ss:$8 sps:$4 sm:$0xff]   ;;  %v4405_v27 = vld [vmem:[%s6082_s1 + $0xa84] ss:$8 sps:$4 sm:$0xff]   ;;  %v4403_v32 = vld [vmem:[%s6082_s1 + $0xa80] ss:$8 sps:$4 sm:$0xff]  }
 0x148   :  { %v2716_v36 = vpop.f32.mrf.mxu0  ;;  %3009 = vmatprep.subr.bf16.mxu0 %v4327_v26  ;;  %v2756_v37 = vpop.f32.mrf.mxu1  ;;  %v4402_v25 = vld [vmem:[%s6082_s1 + $0xb94] ss:$8 sps:$4 sm:$0xff]   ;;  %v4397_v26 = vld [vmem:[%s6082_s1 + $0xa90] ss:$8 sps:$4 sm:$0xff]   ;;  %v4408_v31 = vld [vmem:[%s6082_s1 + $0xb84] ss:$8 sps:$4 sm:$0xff]  }
 0x149   :  { %3049 = vmatpush1.bf16.msra.mxu1 %v4322_v1  ;;  %v4400_v1 = vld [vmem:[%s6082_s1 + $0xb90] ss:$8 sps:$4 sm:$0xff]   ;;  %v4406_v36 = vld [vmem:[%s6082_s1 + $0xb80] ss:$8 sps:$4 sm:$0xff]  }
 0x14a   :  { %3050 = vmatprep.subr.bf16.mxu1 %v4330_v33  ;;  %v2757_v40 = vpop.f32.mrf.mxu1  ;;  %v574_v33 = vrot.slane %v5507_v63, %v4630_v48  ;;  %v4415_v63 = vld [vmem:[%s6082_s1 + $0xc24] ss:$8 sps:$4 sm:$0xff]  }
 0x14b   :  { %3010 = vmatpush1.bf16.msra.mxu0 %v4325_v7  ;;  %v4412_v7 = vld [vmem:[%s6082_s1 + $0xc34] ss:$8 sps:$4 sm:$0xff]   ;;  %v4413_v40 = vld [vmem:[%s6082_s1 + $0xc20] ss:$8 sps:$4 sm:$0xff]  }
 0x14c   :  { %3011 = vmatprep.subr.bf16.mxu0 %v4333_v28  ;;  %v4410_v28 = vld [vmem:[%s6082_s1 + $0xc30] ss:$8 sps:$4 sm:$0xff]   ;;  %v590_v37 = vcombine.high %v574_v33, %v574_v33 }
 0x14d   :  { %3051 = vmatpush1.bf16.msra.mxu1 %v4328_v38 }
 0x14e   :  { %3052 = vmatprep.subr.bf16.mxu1 %v4336_v39 }
 0x14f   :  { %3012 = vmatpush1.bf16.msra.mxu0 %v4331_v41 }
 0x150   :  { %3013 = vmatprep.subr.bf16.mxu0 %v4339_v44 }
 0x151   :  { %3053 = vmatpush1.bf16.msra.mxu1 %v4334_v45  ;;  %v4418_v45 = vld [vmem:[%s6082_s1 + $0xc14] ss:$8 sps:$4 sm:$0xff]  }
 0x152   :  { %3054 = vmatprep.subr.bf16.mxu1 %v4342_v46 }
 0x153   :  { %3014 = vmatpush1.bf16.msra.mxu0 %v4337_v47 }
 0x154   :  { %3015 = vmatprep.subr.bf16.mxu0 %v4345_v49 }
 0x155   :  { %3055 = vmatpush1.bf16.msra.mxu1 %v4340_v50 }
 0x156   :  { %3056 = vmatprep.subr.bf16.mxu1 %v4348_v24 }
 0x157   :  { %3016 = vmatpush1.bf16.msra.mxu0 %v4343_v51  ;;  %v4421_v51 = vld [vmem:[%s6082_s1 + $0xc04] ss:$8 sps:$4 sm:$0xff]  }
 0x158   :  { %3017 = vmatprep.subr.bf16.mxu0 %v4351_v52 }
 0x159   :  { %3057 = vmatpush1.bf16.msra.mxu1 %v4346_v53  ;;  %v3397_v53 = vld.sshfl [vmem:[%s6081_s0 + $0x18] sm:$0x1 pattern:$0x75316420] }
 0x15a   :  { %3058 = vmatprep.subr.bf16.mxu1 %v4354_v54 }
 0x15b   :  { %3018 = vmatpush1.bf16.msra.mxu0 %v4349_v55  ;;  %v3161_v55 = vld [vmem:[%s6084_s3 + $0xf8] sm:$0xff] }
 0x15c   :  { %3019 = vmatprep.subr.bf16.mxu0 %v4357_v56  ;;  %v3193_v56 = vld [vmem:[%s6085_s4 + $0xf8] sm:$0xff] }
 0x15d   :  { %3059 = vmatpush1.bf16.msra.mxu1 %v4352_v57  ;;  %v3225_v57 = vld [vmem:[%s6086_s5 + $0xf8] sm:$0xff] }
 0x15e   :  { %3060 = vmatprep.subr.bf16.mxu1 %v4360_v58  ;;  %v3257_v58 = vmul.f32 %v3225_v57, %v3193_v56  ;;  %v3140_v57 = vld [vmem:[%s6084_s3 + $0x50] sm:$0xff] }
 0x15f   :  { %3020 = vmatpush1.bf16.msra.mxu0 %v4355_v59  ;;  %v3145_v59 = vld [vmem:[%s6084_s3 + $0x78] sm:$0xff] }
 0x160   :  { %3021 = vmatprep.subr.bf16.mxu0 %v4363_v60  ;;  %v3177_v60 = vld [vmem:[%s6085_s4 + $0x78] sm:$0xff] }
 0x161   :  { %3061 = vmatpush1.bf16.msra.mxu1 %v4358_v61  ;;  %v3209_v61 = vld [vmem:[%s6086_s5 + $0x78] sm:$0xff] }
 0x162   :  { %3062 = vmatprep.subr.bf16.mxu1 %v4366_v62  ;;  %v3241_v62 = vmul.f32 %v3209_v61, %v3177_v60  ;;  %v3203_v60 = vld [vmem:[%s6086_s5 + $0x48] sm:$0xff] }
 0x163   :  { %3022 = vmatpush2.bf16.msra.mxu0 %v4361_v30  ;;  %v3160_v30 = vld [vmem:[%s6084_s3 + $0xf0] sm:$0xff] }
 0x164   :  { %3023 = vmatprep.subr.bf16.mxu0 %v4369_v0  ;;  %v3192_v0 = vld [vmem:[%s6085_s4 + $0xf0] sm:$0xff] }
 0x165   :  { %3063 = vmatpush2.bf16.msra.mxu1 %v4364_v2  ;;  %v3224_v2 = vld [vmem:[%s6086_s5 + $0xf0] sm:$0xff] }
 0x166   :  { %3064 = vmatprep.subr.bf16.mxu1 %v4372_v3  ;;  %v3289_v3 = vadd.f32 %v3257_v58, %v3161_v55 }
 0x167   :  { %3024 = vmatpush2.bf16.msra.mxu0 %v4367_v4  ;;  %v3256_v4 = vmul.f32 %v3224_v2, %v3192_v0  ;;  %v3186_v2 = vld [vmem:[%s6085_s4 + $0xc0] sm:$0xff] }
 0x168   :  { %3025 = vmatprep.subr.bf16.mxu0 %v4375_v6  ;;  %v3144_v6 = vld [vmem:[%s6084_s3 + $0x70] sm:$0xff] }
 0x169   :  { %3065 = vmatpush2.bf16.msra.mxu1 %v4370_v8  ;;  %v3176_v8 = vld [vmem:[%s6085_s4 + $0x70] sm:$0xff] }
 0x16a   :  { %3066 = vmatprep.subr.bf16.mxu1 %v4378_v9  ;;  %v3208_v9 = vld [vmem:[%s6086_s5 + $0x70] sm:$0xff] }
 0x16b   :  { %3026 = vmatpush2.bf16.msra.mxu0 %v4373_v10  ;;  %v606_v10 = vrot.slane %v3397_v53, %v4630_v48  ;;  %v3143_v48 = vld [vmem:[%s6084_s3 + $0x68] sm:$0xff] }
 0x16c   :  { %3027 = vmatprep.subr.bf16.mxu0 %v4381_v11  ;;  %v3273_v11 = vadd.f32 %v3241_v62, %v3145_v59  ;;  %v3187_v53 = vld [vmem:[%s6085_s4 + $0xc8] sm:$0xff] }
 0x16d   :  { %3067 = vmatpush2.bf16.msra.mxu1 %v4376_v12  ;;  %v3240_v12 = vmul.f32 %v3208_v9, %v3176_v8  ;;  %v3171_v59 = vld [vmem:[%s6085_s4 + $0x48] sm:$0xff] }
 0x16e   :  { %3068 = vmatprep.subr.bf16.mxu1 %v4384_v13  ;;  %v3159_v13 = vld [vmem:[%s6084_s3 + $0xe8] sm:$0xff]  ;;  %v3235_v0 = vmul.f32 %v3203_v60, %v3171_v59  ;;  %v3166_v60 = vld [vmem:[%s6085_s4 + $0x20] sm:$0xff] }
 0x16f   :  { %3028 = vmatpush2.bf16.msra.mxu0 %v4379_v14  ;;  %v3191_v14 = vld [vmem:[%s6085_s4 + $0xe8] sm:$0xff] }
 0x170   :  { %3029 = vmatprep.subr.bf16.mxu0 %v4387_v34  ;;  %v3223_v34 = vld [vmem:[%s6086_s5 + $0xe8] sm:$0xff] }
 0x171   :  { %3069 = vmatpush2.bf16.msra.mxu1 %v4382_v15  ;;  %v3288_v15 = vadd.f32 %v3256_v4, %v3160_v30  ;;  %v3155_v30 = vld [vmem:[%s6084_s3 + $0xc8] sm:$0xff] }
 0x172   :  { %3070 = vmatprep.subr.bf16.mxu1 %v4390_v16  ;;  %v3255_v16 = vmul.f32 %v3223_v34, %v3191_v14  ;;  %v3154_v34 = vld [vmem:[%s6084_s3 + $0xc0] sm:$0xff] }
 0x173   :  { %3030 = vmatpush2.bf16.msra.mxu0 %v4385_v17  ;;  %v3175_v17 = vld [vmem:[%s6085_s4 + $0x68] sm:$0xff] }
 0x174   :  { %3031 = vmatprep.subr.bf16.mxu0 %v4393_v18  ;;  %v3207_v18 = vld [vmem:[%s6086_s5 + $0x68] sm:$0xff] }
 0x175   :  { %3071 = vmatpush2.bf16.msra.mxu1 %v4388_v19  ;;  %v3272_v19 = vadd.f32 %v3240_v12, %v3144_v6 }
 0x176   :  { %3072 = vmatprep.subr.bf16.mxu1 %v4396_v20  ;;  %v3239_v20 = vmul.f32 %v3207_v18, %v3175_v17 }
 0x177   :  { %3032 = vmatpush2.bf16.msra.mxu0 %v4391_v22  ;;  %v3158_v22 = vld [vmem:[%s6084_s3 + $0xe0] sm:$0xff] }
 0x178   :  { %3033 = vmatprep.subr.bf16.mxu0 %v4399_v23  ;;  %v3190_v23 = vld [vmem:[%s6085_s4 + $0xe0] sm:$0xff] }
 0x179   :  { %3073 = vmatpush2.bf16.msra.mxu1 %v4394_v5  ;;  %v3222_v5 = vld [vmem:[%s6086_s5 + $0xe0] sm:$0xff] }
 0x17a   :  { %3074 = vmatprep.subr.bf16.mxu1 %v4402_v25  ;;  %v3287_v25 = vadd.f32 %v3255_v16, %v3159_v13  ;;  %v3185_v16 = vld [vmem:[%s6085_s4 + $0xb8] sm:$0xff] }
 0x17b   :  { %3034 = vmatpush2.bf16.msra.mxu0 %v4397_v26  ;;  %v3254_v26 = vmul.f32 %v3222_v5, %v3190_v23  ;;  %v3201_v23 = vld [vmem:[%s6086_s5 + $0x38] sm:$0xff] }
 0x17c   :  { %3035 = vmatprep.subr.bf16.mxu0 %v4405_v27  ;;  %v3142_v27 = vld [vmem:[%s6084_s3 + $0x60] sm:$0xff] }
 0x17d   :  { %3075 = vmatpush2.bf16.msra.mxu1 %v4400_v1  ;;  %v3174_v1 = vld [vmem:[%s6085_s4 + $0x60] sm:$0xff] }
 0x17e   :  { %3076 = vmatprep.subr.bf16.mxu1 %v4408_v31  ;;  %v3206_v31 = vld [vmem:[%s6086_s5 + $0x60] sm:$0xff] }
 0x17f   :  { %3036 = vmatpush2.bf16.msra.mxu0 %v4403_v32  ;;  %v3271_v32 = vadd.f32 %v3239_v20, %v3143_v48  ;;  %v3217_v48 = vld [vmem:[%s6086_s5 + $0xb8] sm:$0xff] }
 0x180   :  { %3095 = vmatprep.subr.bf16.mxu0 %v4412_v7  ;;  %v3286_v7 = vadd.f32 %v3254_v26, %v3158_v22  ;;  %v3249_v20 = vmul.f32 %v3217_v48, %v3185_v16  ;;  %v3169_v22 = vld [vmem:[%s6085_s4 + $0x38] sm:$0xff]  ;;  %v3196_v16 = vld [vmem:[%s6086_s5 + $0x10] sm:$0xff] }
 0x181   :  { %3077 = vmatpush2.bf16.msra.mxu1 %v4406_v36  ;;  %v3153_v26 = vld [vmem:[%s6084_s3 + $0xb8] sm:$0xff] }
 0x182   :  { %v2793_v38 = vpop.f32.mrf.mxu0  ;;  %3038 = vmatmul.mubr.bf16.vlgmr.msra.gmra.mxu0 %v574_v33  ;;  %3791 = vmatprep.subr.mxu1 %v3289_v3  ;;  %v3238_v33 = vmul.f32 %v3206_v31, %v3174_v1  ;;  %v3218_v3 = vld [vmem:[%s6086_s5 + $0xc0] sm:$0xff]  ;;  %v3184_v1 = vld [vmem:[%s6085_s4 + $0xb0] sm:$0xff] }
 0x183   :  { %v2794_v39 = vadd.f32 %v2793_v38, %v5561_v29  ;;  %3096 = vmatpush1.bf16.msra.mxu0 %v4410_v28  ;;  %3119 = vmatprep.mubr.bf16.mxu0 %v4445_v21  ;;  %v4416_v21 = vld [vmem:[%s6082_s1 + $0xc10] ss:$8 sps:$4 sm:$0xff]   ;;  %v3250_v9 = vmul.f32 %v3218_v3, %v3186_v2 }
 0x184   :  { %v2795_v41 = vpop.f32.mrf.mxu0  ;;  %v2834_v44 = vpop.f32.mrf.mxu1  ;;  %3079 = vmatmul.mubr.bf16.vlgmr.msra.gmra.mxu1 %v590_v37  ;;  %3097 = vmatprep.subr.bf16.mxu0 %v4415_v63  ;;  %v3270_v36 = vadd.f32 %v3238_v33, %v3142_v27  ;;  %v3189_v28 = vld [vmem:[%s6085_s4 + $0xd8] sm:$0xff]  ;;  %v3233_v27 = vmul.f32 %v3201_v23, %v3169_v22  ;;  %v3216_v31 = vld [vmem:[%s6086_s5 + $0xb0] sm:$0xff] }
 0x185   :  { %v2796_v46 = vadd.f32 %v2795_v41, %v5569_v35  ;;  %v5753_v47 = vadd.f32 %v2834_v44, %v2794_v39  ;;  %v4419_v35 = vld [vmem:[%s6082_s1 + $0xc00] ss:$8 sps:$4 sm:$0xff]   ;;  %3792 = vmatpush3.msra.mxu1 %v3273_v11  ;;  %v3221_v37 = vld [vmem:[%s6086_s5 + $0xd8] sm:$0xff]  ;;  %v3188_v44 = vld [vmem:[%s6085_s4 + $0xd0] sm:$0xff] }
 0x186   :  { %v2797_v29 = vpop.f32.mrf.mxu0  ;;  %v2836_v49 = vpop.f32.mrf.mxu1  ;;  %3793 = vmatprep.subr.mxu1 %v3288_v15  ;;  %v3253_v63 = vmul.f32 %v3221_v37, %v3189_v28  ;;  %v3173_v38 = vld [vmem:[%s6085_s4 + $0x58] sm:$0xff]  ;;  %v3202_v11 = vld [vmem:[%s6086_s5 + $0x40] sm:$0xff]  ;;  %v3152_v28 = vld [vmem:[%s6084_s3 + $0xb0] sm:$0xff]  ;;  %v3248_v37 = vmul.f32 %v3216_v31, %v3184_v1 }
 0x187   :  { %v5755_v50 = vadd.f32 %v2836_v49, %v2796_v46  ;;  %3098 = vmatpush1.bf16.msra.mxu0 %v4413_v40  ;;  %3794 = vmatpush3.msra.mxu1 %v3272_v19  ;;  %v3205_v39 = vld [vmem:[%s6086_s5 + $0x58] sm:$0xff]  ;;  %v3138_v19 = vld [vmem:[%s6084_s3 + $0x40] sm:$0xff]  ;;  %v3132_v23 = vld [vmem:[%s6084_s3 + $0x10] sm:$0xff] }
 0x188   :  { %v2798_v24 = vpop.f32.mrf.mxu0  ;;  %3099 = vmatprep.subr.bf16.mxu0 %v4418_v45  ;;  %v2838_v52 = vpop.f32.mrf.mxu1  ;;  %3795 = vmatprep.subr.mxu1 %v3287_v25  ;;  %v3157_v40 = vld [vmem:[%s6084_s3 + $0xd8] sm:$0xff]  ;;  %v3237_v41 = vmul.f32 %v3205_v39, %v3173_v38  ;;  %v3220_v45 = vld [vmem:[%s6086_s5 + $0xd0] sm:$0xff]  ;;  %v3147_v31 = vld [vmem:[%s6084_s3 + $0x88] sm:$0xff] }
 0x189   :  { %3796 = vmatpush3.msra.mxu1 %v3271_v32  ;;  %v3285_v46 = vadd.f32 %v3253_v63, %v3157_v40  ;;  %v3141_v29 = vld [vmem:[%s6084_s3 + $0x58] sm:$0xff]  ;;  %v3252_v49 = vmul.f32 %v3220_v45, %v3188_v44  ;;  %v3204_v24 = vld [vmem:[%s6086_s5 + $0x50] sm:$0xff]  ;;  %v3280_v45 = vadd.f32 %v3248_v37, %v3152_v28  ;;  %v3131_v28 = vld [vmem:[%s6084_s3 + $0x8] sm:$0xff] }
 0x18a   :  { %v2839_v54 = vpop.f32.mrf.mxu1  ;;  %3797 = vmatprep.subr.mxu1 %v3286_v7  ;;  %v3156_v52 = vld [vmem:[%s6084_s3 + $0xd0] sm:$0xff]  ;;  %v3281_v7 = vadd.f32 %v3249_v20, %v3153_v26  ;;  %v3213_v2 = vld [vmem:[%s6086_s5 + $0x98] sm:$0xff]  ;;  %v3211_v20 = vld [vmem:[%s6086_s5 + $0x88] sm:$0xff] }
 0x18b   :  { %3100 = vmatpush1.bf16.msra.mxu0 %v4416_v21  ;;  %3798 = vmatpush3.msra.mxu1 %v3270_v36  ;;  %v3172_v21 = vld [vmem:[%s6085_s4 + $0x50] sm:$0xff]  ;;  %v3219_v54 = vld [vmem:[%s6086_s5 + $0xc8] sm:$0xff]  ;;  %v3284_v56 = vadd.f32 %v3252_v49, %v3156_v52  ;;  %v3137_v36 = vld [vmem:[%s6084_s3 + $0x38] sm:$0xff] }
 0x18c   :  { %3101 = vmatprep.subr.bf16.mxu0 %v4421_v51  ;;  %v3269_v51 = vadd.f32 %v3237_v41, %v3141_v29  ;;  %3799 = vmatprep.subr.mxu1 %v3285_v46  ;;  %v3251_v58 = vmul.f32 %v3219_v54, %v3187_v53  ;;  %v3136_v63 = vld [vmem:[%s6084_s3 + $0x30] sm:$0xff]  ;;  %v3265_v38 = vadd.f32 %v3233_v27, %v3137_v36  ;;  %v3151_v41 = vld [vmem:[%s6084_s3 + $0xa8] sm:$0xff]  ;;  %v3165_v3 = vld [vmem:[%s6085_s4 + $0x18] sm:$0xff] }
 0x18d   :  { %v3168_v39 = vld [vmem:[%s6085_s4 + $0x30] sm:$0xff]  ;;  %v3183_v29 = vld [vmem:[%s6085_s4 + $0xa8] sm:$0xff] }
 0x18e   :  { %3800 = vmatpush3.msra.mxu1 %v3269_v51  ;;  %v3283_v8 = vadd.f32 %v3251_v58, %v3155_v30  ;;  %v3200_v40 = vld [vmem:[%s6086_s5 + $0x30] sm:$0xff]  ;;  %v3215_v49 = vld [vmem:[%s6086_s5 + $0xa8] sm:$0xff] }
 0x18f   :  { %3102 = vmatpush1.bf16.msra.mxu0 %v4419_v35  ;;  %v3236_v35 = vmul.f32 %v3204_v24, %v3172_v21  ;;  %3801 = vmatprep.subr.mxu1 %v3284_v56  ;;  %v3232_v46 = vmul.f32 %v3200_v40, %v3168_v39  ;;  %v3135_v21 = vld [vmem:[%s6084_s3 + $0x28] sm:$0xff]  ;;  %v3247_v24 = vmul.f32 %v3215_v49, %v3183_v29  ;;  %v3214_v56 = vld [vmem:[%s6086_s5 + $0xa0] sm:$0xff] }
 0x190   :  { %v3167_v51 = vld [vmem:[%s6085_s4 + $0x28] sm:$0xff]  ;;  %v3146_v40 = vld [vmem:[%s6084_s3 + $0x80] sm:$0xff] }
 0x191   :  { %v3268_v62 = vadd.f32 %v3236_v35, %v3140_v57  ;;  %v3199_v52 = vld [vmem:[%s6086_s5 + $0x28] sm:$0xff]  ;;  %v3150_v35 = vld [vmem:[%s6084_s3 + $0xa0] sm:$0xff]  ;;  %v3264_v53 = vadd.f32 %v3232_v46, %v3136_v63  ;;  %v3279_v58 = vadd.f32 %v3247_v24, %v3151_v41 }
 0x192   :  { %3790 = vmatmul.mubr.msk.bf16.vlgmr.msra.gmra.mxu0 %vm2591_vm0, %v606_v10  ;;  %v3170_v10 = vld [vmem:[%s6085_s4 + $0x40] sm:$0xff]  ;;  %v3231_v54 = vmul.f32 %v3199_v52, %v3167_v51  ;;  %v3163_v26 = vld [vmem:[%s6085_s4 + $0x8] sm:$0xff] }
 0x193   :  { %3802 = vmatpush3.msra.mxu1 %v3268_v62  ;;  %v3234_v15 = vmul.f32 %v3202_v11, %v3170_v10  ;;  %v3134_v57 = vld [vmem:[%s6084_s3 + $0x20] sm:$0xff]  ;;  %v3181_v62 = vld [vmem:[%s6085_s4 + $0x98] sm:$0xff]  ;;  %v3180_v10 = vld [vmem:[%s6085_s4 + $0x90] sm:$0xff] }
 0x194   :  { %3803 = vmatprep.subr.mxu1 %v3283_v8  ;;  %v3263_v30 = vadd.f32 %v3231_v54, %v3135_v21  ;;  %v3149_v8 = vld [vmem:[%s6084_s3 + $0x98] sm:$0xff]  ;;  %v3212_v11 = vld [vmem:[%s6086_s5 + $0x90] sm:$0xff]  ;;  %v3195_v27 = vld [vmem:[%s6086_s5 + $0x8] sm:$0xff] }
 0x195   :  { %v3266_v25 = vadd.f32 %v3234_v15, %v3138_v19  ;;  %v3164_v15 = vld [vmem:[%s6085_s4 + $0x10] sm:$0xff]  ;;  %v3179_v19 = vld [vmem:[%s6085_s4 + $0x88] sm:$0xff]  ;;  %v3162_v63 = vld [vmem:[%s6085_s4] sm:$0xff] }
 0x1c2   :  { %v2875_v55 = vpop.f32.mrf.mxu0 }
 0x1c3   :  { %v2876_v61 = vadd.f32 %v2875_v55, %v5753_v47  ;;  %v3139_v47 = vld [vmem:[%s6084_s3 + $0x48] sm:$0xff]  ;;  %v3182_v55 = vld [vmem:[%s6085_s4 + $0xa0] sm:$0xff] }
 0x1c4   :  { %v2877_v4 = vpop.f32.mrf.mxu0  ;;  %v2916_v6 = vpop.f32.mrf.mxu1  ;;  %v3267_v14 = vadd.f32 %v3235_v0, %v3139_v47  ;;  %v3246_v59 = vmul.f32 %v3214_v56, %v3182_v55  ;;  %v3245_v47 = vmul.f32 %v3213_v2, %v3181_v62 }
 0x1c5   :  { %v2878_v12 = vadd.f32 %v2877_v4, %v5755_v50  ;;  %v5911_v13 = vadd.f32 %v2916_v6, %v2876_v61  ;;  %v3282_v50 = vadd.f32 %v3250_v9, %v3154_v34  ;;  %v3198_v61 = vld [vmem:[%s6086_s5 + $0x20] sm:$0xff]  ;;  %v3197_v4 = vld [vmem:[%s6086_s5 + $0x18] sm:$0xff]  ;;  %v3244_v34 = vmul.f32 %v3212_v11, %v3180_v10 }
 0x1c6   :  { %v2879_v17 = vpop.f32.mrf.mxu0  ;;  %v2918_v18 = vpop.f32.mrf.mxu1  ;;  %3804 = vmatpush3.msra.mxu1 %v3267_v14  ;;  %v3230_v0 = vmul.f32 %v3198_v61, %v3166_v60  ;;  %v3278_v6 = vadd.f32 %v3246_v59, %v3150_v35  ;;  %v3229_v9 = vmul.f32 %v3197_v4, %v3165_v3  ;;  %v3133_v14 = vld [vmem:[%s6084_s3 + $0x18] sm:$0xff]  ;;  %v3277_v48 = vadd.f32 %v3245_v47, %v3149_v8 }
 0x1c7   :  { %v5931_v5 = vadd.f32 %v2918_v18, %v2878_v12  ;;  %3805 = vmatprep.subr.mxu1 %v3282_v50  ;;  %v3148_v18 = vld [vmem:[%s6084_s3 + $0x90] sm:$0xff]  ;;  %v3228_v50 = vmul.f32 %v3196_v16, %v3164_v15  ;;  %v3292_v15 = vld [vmem:[%s6089_s8] sm:$0x1]  ;;  %s3389_s8 = sshll.u32 %s4447_s16, 4  ;;  %s3390_s8 = int_to_ptr.vmem [resolvable:$true] %s3389_s8 }
 0x1c8   :  { %v2880_v32 = vpop.f32.mrf.mxu0  ;;  %v2920_v33 = vpop.f32.mrf.mxu1  ;;  %3806 = vmatpush3.msra.mxu1 %v3266_v25  ;;  %v3262_v12 = vadd.f32 %v3230_v0, %v3134_v57  ;;  %v3261_v17 = vadd.f32 %v3229_v9, %v3133_v14  ;;  %v3276_v22 = vadd.f32 %v3244_v34, %v3148_v18  ;;  %v3243_v25 = vmul.f32 %v3211_v20, %v3179_v19  ;;  %v3291_v34 = vld [vmem:[%s6088_s7] sm:$0x1]  ;;  %s4446_s7 = smov 127   ;;  %p4427_p1 = scmp.lt.s32.totalorder %s3390_s8, %s3390_s8 }
 0x1c9   :  { %3807 = vmatprep.subr.mxu1 %v3281_v7  ;;  %v3260_v1 = vadd.f32 %v3228_v50, %v3132_v23  ;;  %v3227_v32 = vmul.f32 %v3195_v27, %v3163_v26  ;;  %v3178_v33 = vld [vmem:[%s6085_s4 + $0x80] sm:$0xff]  ;;  %v3293_v16 = vmul.f32 %v3292_v15, %v3291_v34 }
 0x1ca   :  { %v2921_v44 = vpop.f32.mrf.mxu1  ;;  %3808 = vmatpush3.msra.mxu1 %v3265_v38  ;;  %v3210_v7 = vld [vmem:[%s6086_s5 + $0x80] sm:$0xff]  ;;  %v3275_v36 = vadd.f32 %v3243_v25, %v3147_v31 }
 0x1cb   :  { %3809 = vmatprep.subr.mxu1 %v3280_v45  ;;  %v3242_v37 = vmul.f32 %v3210_v7, %v3178_v33  ;;  %v3194_v38 = vld [vmem:[%s6086_s5] sm:$0xff]  ;;  %v3259_v39 = vadd.f32 %v3227_v32, %v3131_v28 }
 0x1cc   :  { %3810 = vmatpush3.msra.mxu1 %v3264_v53  ;;  %v3226_v41 = vmul.f32 %v3194_v38, %v3162_v63  ;;  %v3130_v45 = vld [vmem:[%s6084_s3] sm:$0xff] }
 0x1cd   :  { %3811 = vmatprep.subr.mxu1 %v3279_v58  ;;  %v3274_v44 = vadd.f32 %v3242_v37, %v3146_v40 }
 0x1ce   :  { %3812 = vmatpush3.msra.mxu1 %v3263_v30  ;;  %v3258_v46 = vadd.f32 %v3226_v41, %v3130_v45 }
 0x1cf   :  { %3813 = vmatprep.subr.mxu1 %v3278_v6 }
 0x1d0   :  { %3814 = vmatpush3.msra.mxu1 %v3262_v12 }
 0x1d1   :  { %3815 = vmatprep.subr.mxu1 %v3277_v48  ;;  %v3290_v48 = vld [vmem:[%s6087_s6] sm:$0x1]  ;;  %s4422_s6 = scalar_lea.vmem %s3390_s8, 32 }
 0x1d2   :  { %3816 = vmatpush3.msra.mxu1 %v3261_v17  ;;  %v3294_v17 = vadd.f32 %v3293_v16, %v3290_v48  ;;  %p4423_p0 = scmp.ne.s32.totalorder %s3390_s8, %s4422_s6  ;;  %p4428_p2 = scmp.lt.s32.totalorder %s4422_s6, %s4422_s6 }
 0x1d3   :  { %3817 = vmatprep.subr.mxu1 %v3276_v22 }
 0x1d4   :  { %3818 = vmatpush3.msra.mxu1 %v3260_v1  ;;  %v3299_v50 = vrot.slane %v3294_v17, %v434_v43  ;;  %p4429_p3 = por %p4428_p2, %p4427_p1 }
 0x1d5   :  { %3819 = vmatprep.subr.mxu1 %v3275_v36 }
 0x1d6   :  { %3820 = vmatpush3.msra.mxu1 %v3259_v39  ;;  %p4430_p4 = pnand %p4429_p3, %p4423_p0 }
 0x1d7   :  { %3821 = vmatprep.subr.mxu1 %v3274_v44 }
 0x1d8   :  { %3822 = vmatpush3.msra.mxu1 %v3258_v46 }
 0x202   :  { %v2957_v29 = vpop.f32.mrf.mxu0 }
 0x203   :  { %v2958_v49 = vadd.f32 %v2957_v29, %v5911_v13 }
 0x204   :  { %v2959_v21 = vpop.f32.mrf.mxu0  ;;  %v2998_v24 = vpop.f32.mrf.mxu1 }
 0x205   :  { %v2960_v51 = vadd.f32 %v2959_v21, %v5931_v5  ;;  %v2999_v52 = vadd.f32 %v2998_v24, %v2958_v49 }
 0x206   :  { %v2961_v35 = vpop.f32.mrf.mxu0  ;;  %v3000_v53 = vpop.f32.mrf.mxu1 }
 0x207   :  { %v3001_v54 = vadd.f32 %v3000_v53, %v2960_v51 }
 0x208   :  { %v2962_v55 = vpop.f32.mrf.mxu0  ;;  %v3002_v56 = vpop.f32.mrf.mxu1 }
 0x20a   :  { %v3003_v57 = vpop.f32.mrf.mxu1 }
 0x242   :  { %v3039_v58 = vpop.f32.mrf.mxu0 }
 0x243   :  { %v3040_v13 = vadd.f32 %v3039_v58, %v2999_v52 }
 0x244   :  { %v3041_v59 = vpop.f32.mrf.mxu0  ;;  %v3080_v60 = vpop.f32.mrf.mxu1 }
 0x245   :  { %v3042_v3 = vadd.f32 %v3041_v59, %v3001_v54  ;;  %v3081_v4 = vadd.f32 %v3080_v60, %v3040_v13 }
 0x246   :  { %v3043_v61 = vpop.f32.mrf.mxu0  ;;  %v3082_v62 = vpop.f32.mrf.mxu1 }
 0x247   :  { %v3083_v5 = vadd.f32 %v3082_v62, %v3042_v3 }
 0x248   :  { %v3044_v30 = vpop.f32.mrf.mxu0  ;;  %v3084_v0 = vpop.f32.mrf.mxu1 }
 0x24a   :  { %v3085_v2 = vpop.f32.mrf.mxu1 }
 0x252   :  { %v3121_v6 = vpop.f32.mrf.mxu0 }
 0x253   :  { %v3122_v8 = vadd.f32 %v3121_v6, %v3081_v4 }
 0x254   :  { %v3123_v47 = vpop.f32.mrf.mxu0 }
 0x255   :  { %v3124_v9 = vadd.f32 %v3123_v47, %v3083_v5  ;;  %v3128_v12 = vmax.f32 %v3122_v8, 0.0 }
 0x256   :  { %v3125_v10 = vpop.f32.mrf.mxu0 }
 0x257   :  { %v3129_v11 = vmax.f32 %v3124_v9, 0.0 }
 0x258   :  { %v3126_v14 = vpop.f32.mrf.mxu0 }
 0x259   :  { %3365 = vmatprep.mubr.f32.mxu1 %v3129_v11 }
 0x25a   :  { %3366 = vmatmul.mubr.f32.vlgmr.msra.gmra.mxu1 %v3128_v12 }
 0x31a   :  { %v3823_v18 = vpop.f32.mrf.mxu1 }
 0x31c   :  { %v3824_v19 = vpop.f32.mrf.mxu1 }
 0x31d   :  { %v3825_v20 = vadd.f32 %v3824_v19, %v3823_v18 }
 0x31f   :  { %v3368_v22 = vadd.f32 %v3825_v20, %v3299_v50 }
 0x321   :  { %3373 = vperm.xlu0 %3830, %v3368_v22  }
 0x39c   :  { %v3374_v23 = vpop.permute.xlu0 %3373 }
 0x39d   :  { %v3376_v25 = vadd.f32 %v3374_v23, %v3368_v22 }
 0x39f   :  { %3378 = vrot.lane.b32.xlu0 %v3376_v25, %s4446_s7 }
 0x411   :  { %v3379_v26 = vpop.permute.xlu0 %3378 }
 0x412   :  { %3382 = vst.msk [vmem:[#allocation2] sm:$0x3] %vm3381_vm1, %v3379_v26 }
 0x413   :  { %4433 = shalt.err (!%p4430_p4)
}
 0x414   :  { %3392 = dma.vmem_to_hbm [thread:$0]  %s3390_s8, 32, %s6090_s9, [#allocation3]  }
 0x415   :  { %4442 = dma.done.wait [#allocation3], 32  }
 0x416   :  { %4443 = vsyncadd [#allocation3], 4294967264 }
 0x417   :  { %3396 = vsyncpa [#allocation3], 1 }

</bundles_post_ra>
